<compile_context>
chip_gen: v6e
topology: v6e:2x2x1
jax: 0.10.0
libtpu: 0.0.40
codegen_flags: <defaults>
</compile_context>

<pallas_src>
import functools

import numpy as np
import jax
import jax.numpy as jnp
from jax import lax
from jax.experimental import pallas as pl
from jax.experimental.pallas import tpu as pltpu

LEAK, SUB = 0.1, 0.4                       # GeneralReLU(leak=0.1, sub=0.4)
_ROW_TILE_BUDGET = 512 * 1024              # per-tile byte budget (pre double-buffer)


def _ceil_to(x, m):
    return (x + m - 1) // m * m


def _grelu(y, leak, sub):
    return jnp.where(y >= 0.0, y, leak * y) - sub


# ------------------------------ Pallas kernels ------------------------------

def _im2col_matmul(x_ref, w_ref, *, s, KH, KW, TH, Wo, Cp):
    """'same' conv tile as ONE matmul: all taps folded into the contraction dim.

    x_ref : [s*TH + KH - 1, WG, s*Cp]  halo'd row window whose columns are
            grouped by stride phase (WG groups of s*Cp channels), so strided
            tap extraction is plain static slicing in VMEM (no strided loads,
            no HBM im2col copy).
    w_ref : [KH*KW*Cp, Cout]
    returns f32 [TH*Wo, Cout]
    """
    taps = []
    for kh in range(KH):
        rows = x_ref[pl.ds(kh, s * TH), :, :]              # [s*TH, WG, s*Cp]
        if s > 1:                                          # keep every s-th row
            rows = rows.reshape(TH, s, rows.shape[1], s * Cp)[:, 0]
        for kw in range(KW):
            g0, ph = kw // s, kw % s                       # column group / phase
            taps.append(rows[:, g0:g0 + Wo, ph * Cp:(ph + 1) * Cp])   # [TH,Wo,Cp]
    patches = jnp.concatenate(taps, axis=-1)               # [TH, Wo, KH*KW*Cp]
    patches = patches.reshape(TH * Wo, KH * KW * Cp)
    return jnp.dot(patches, w_ref[...], preferred_element_type=jnp.float32)


def _conv_bias_act_kernel(x_ref, w_ref, b_ref, o_ref, *,
                          s, KH, KW, TH, Wo, Cout, Cp, leak, sub, apply_act):
    """Fused conv + bias (+ GeneralReLU)."""
    y = _im2col_matmul(x_ref, w_ref, s=s, KH=KH, KW=KW, TH=TH, Wo=Wo, Cp=Cp)
    y = y + b_ref[...]
    if apply_act:
        y = _grelu(y, leak, sub)
    o_ref[...] = y.reshape(TH, Wo, Cout)


def _conv_res_act_kernel(x_ref, w_ref, b_ref, id_ref, *rest,
                         s, KH, KW, TH, Wo, Cout, Cp, has_idconv, leak, sub):
    """Fused conv(stride s) + bias + [1x1 id-conv | identity] residual + GeneralReLU."""
    if has_idconv:
        wi_ref, bi_ref, o_ref = rest
    else:
        (o_ref,) = rest
    y = _im2col_matmul(x_ref, w_ref, s=s, KH=KH, KW=KW, TH=TH, Wo=Wo, Cp=Cp)
    y = y + b_ref[...]
    idp = id_ref[...].reshape(TH * Wo, id_ref.shape[-1])
    if has_idconv:
        y = y + jnp.dot(idp, wi_ref[...], preferred_element_type=jnp.float32)
        y = y + bi_ref[...]
    else:                         # fi == fo: plain residual add, no eye-matmul
        y = y + idp
    y = _grelu(y, leak, sub)
    o_ref[...] = y.reshape(TH, Wo, Cout)


# -------------------------------- wrappers ----------------------------------

def _pick_row_tile(Ho, row_bytes, budget=_ROW_TILE_BUDGET):
    """Largest row tile dividing Ho whose (double-buffered) tile stays under a
    conservative byte budget (safe for v7x's 64 MiB VMEM / 32 MiB scoped default)."""
    cap = max(1, budget // max(int(row_bytes), 1))
    fitting = [d for d in range(1, Ho + 1) if Ho % d == 0 and d <= cap]
    return max(fitting) if fitting else 1


def _vmem_limit_bytes(*tile_bytes):
    est = 2 * int(sum(tile_bytes)) + (2 << 20)   # double-buffered tiles + slack
    return int(min(max(est, 32 << 20), 48 << 20))


def _prep_conv_inputs(x_nhwc, w_oihw, *, s, TH, Ho, Wo):
    """'same'-pad spatially, pad channels to a multiple of 8, fold taps into one
    [KH*KW*Cp, Cout] weight matrix and build halo'd row-window tiles
    [N, n_tiles, RH, WG, s*Cp] whose columns are grouped by stride phase."""
    N, H, W, Cin = x_nhwc.shape
    Cout, _, KH, KW = w_oihw.shape
    ph, pw = KH // 2, KW // 2
    Cp = _ceil_to(Cin, 8)
    RH = s * TH + KH - 1
    WG = -(-(s * Wo + KW - 1) // s)
    WPp = s * WG
    need_h = Ho * s + KH - 1
    xq = jnp.pad(x_nhwc.astype(jnp.float32),
                 ((0, 0),
                  (ph, max(need_h - H - ph, 0)),
                  (pw, max(WPp - W - pw, 0)),
                  (0, Cp - Cin)))
    xg = xq.reshape(N, xq.shape[1], WG, s * Cp)        # group columns by phase (free)
    n_tiles = Ho // TH
    wins = jnp.stack([xg[:, j * TH * s: j * TH * s + RH] for j in range(n_tiles)],
                     axis=1)                           # [N, n_tiles, RH, WG, s*Cp]
    wmat = jnp.pad(w_oihw.astype(jnp.float32),
                   ((0, 0), (0, Cp - Cin), (0, 0), (0, 0)))
    wmat = jnp.transpose(wmat, (2, 3, 1, 0)).reshape(KH * KW * Cp, Cout)
    return wins, wmat, n_tiles, Cp


def conv2d_bias_act(x_nhwc, w_oihw, b, *, stride=1, apply_act=True,
                    leak=LEAK, sub=SUB, row_tile=None):
    """Fused 'same' Conv2d(stride) + bias (+ GeneralReLU).  NHWC in / NHWC out."""
    N, H, W, Cin = x_nhwc.shape
    Cout, _, KH, KW = w_oihw.shape
    Ho, Wo = -(-H // stride), -(-W // stride)
    Cp = _ceil_to(Cin, 8)
    WG = -(-(stride * Wo + KW - 1) // stride)
    row_bytes = 4 * (stride * WG * stride * Cp + Wo * Cout)
    TH = int(row_tile) if row_tile is not None else _pick_row_tile(Ho, row_bytes)
    assert Ho % TH == 0, (Ho, TH)
    wins, wmat, n_tiles, Cp = _prep_conv_inputs(x_nhwc, w_oihw, s=stride,
                                                TH=TH, Ho=Ho, Wo=Wo)
    RH, WG, SCp = wins.shape[2], wins.shape[3], wins.shape[4]
    K = KH * KW * Cp
    b2 = b.reshape(1, Cout).astype(jnp.float32)

    kernel = functools.partial(
        _conv_bias_act_kernel, s=stride, KH=KH, KW=KW, TH=TH, Wo=Wo,
        Cout=Cout, Cp=Cp, leak=leak, sub=sub, apply_act=apply_act)

    in_tile_b = 4 * RH * WG * SCp
    out_tile_b = 4 * TH * Wo * Cout
    out = pl.pallas_call(
        kernel,
        out_shape=jax.ShapeDtypeStruct((N, Ho, Wo, Cout), jnp.float32),
        grid=(N, n_tiles),
        in_specs=[
            pl.BlockSpec((None, None, RH, WG, SCp), lambda n, j: (n, j, 0, 0, 0)),
            pl.BlockSpec((K, Cout), lambda n, j: (0, 0)),
            pl.BlockSpec((1, Cout), lambda n, j: (0, 0)),
        ],
        out_specs=pl.BlockSpec((None, TH, Wo, Cout), lambda n, j: (n, j, 0, 0)),
        compiler_params=pltpu.CompilerParams(
            dimension_semantics=("parallel", "parallel"),
            vmem_limit_bytes=_vmem_limit_bytes(in_tile_b, out_tile_b, 4 * K * Cout)),
        cost_estimate=pl.CostEstimate(
            flops=2 * N * Ho * Wo * K * Cout,
            transcendentals=0,
            bytes_accessed=4 * (wins.size + wmat.size + N * Ho * Wo * Cout)),
    )(wins, wmat, b2)
    return out


def conv2d_residual_act(h_nhwc, w_oihw, b, id_nhwc, wi=None, bi=None, *,
                        stride=1, leak=LEAK, sub=SUB, row_tile=None):
    """GeneralReLU( conv_same(h; stride) + bias + (id @ wi + bi  |  id) ).  NHWC."""
    N, H, W, Cin = h_nhwc.shape
    Cout, _, KH, KW = w_oihw.shape
    Ho, Wo = -(-H // stride), -(-W // stride)
    assert id_nhwc.shape[:3] == (N, Ho, Wo), (id_nhwc.shape, (N, Ho, Wo))
    has_idconv = wi is not None

    Cp = _ceil_to(Cin, 8)
    WG = -(-(stride * Wo + KW - 1) // stride)
    if has_idconv:
        Ci = id_nhwc.shape[-1]
        Cip = _ceil_to(Ci, 8)
        idp = jnp.pad(id_nhwc.astype(jnp.float32),
                      ((0, 0), (0, 0), (0, 0), (0, Cip - Ci)))
        wim = jnp.pad(wi.astype(jnp.float32), ((0, 0), (0, Cip - Ci), (0, 0), (0, 0)))
        wim = wim[:, :, 0, 0].T                        # [Cip, Cout]
        bi2 = bi.reshape(1, Cout).astype(jnp.float32)
    else:
        assert id_nhwc.shape[-1] == Cout
        Cip = Cout
        idp = id_nhwc.astype(jnp.float32)

    row_bytes = 4 * (stride * WG * stride * Cp + Wo * Cout + Wo * Cip)
    TH = int(row_tile) if row_tile is not None else _pick_row_tile(Ho, row_bytes)
    assert Ho % TH == 0, (Ho, TH)
    wins, wmat, n_tiles, Cp = _prep_conv_inputs(h_nhwc, w_oihw, s=stride,
                                                TH=TH, Ho=Ho, Wo=Wo)
    RH, WG, SCp = wins.shape[2], wins.shape[3], wins.shape[4]
    K = KH * KW * Cp
    b2 = b.reshape(1, Cout).astype(jnp.float32)

    kernel = functools.partial(
        _conv_res_act_kernel, s=stride, KH=KH, KW=KW, TH=TH, Wo=Wo,
        Cout=Cout, Cp=Cp, has_idconv=has_idconv, leak=leak, sub=sub)

    operands = [wins, wmat, b2, idp]
    in_specs = [
        pl.BlockSpec((None, None, RH, WG, SCp), lambda n, j: (n, j, 0, 0, 0)),
        pl.BlockSpec((K, Cout), lambda n, j: (0, 0)),
        pl.BlockSpec((1, Cout), lambda n, j: (0, 0)),
        pl.BlockSpec((None, TH, Wo, Cip), lambda n, j: (n, j, 0, 0)),
    ]
    flops = 2 * N * Ho * Wo * K * Cout
    bytes_accessed = 4 * (wins.size + wmat.size + idp.size + N * Ho * Wo * Cout)
    if has_idconv:
        operands += [wim, bi2]
        in_specs += [pl.BlockSpec((Cip, Cout), lambda n, j: (0, 0)),
                     pl.BlockSpec((1, Cout), lambda n, j: (0, 0))]
        flops += 2 * N * Ho * Wo * Cip * Cout
        bytes_accessed += 4 * (wim.size + bi2.size)

    in_tile_b = 4 * (RH * WG * SCp + TH * Wo * Cip)
    out_tile_b = 4 * TH * Wo * Cout
    out = pl.pallas_call(
        kernel,
        out_shape=jax.ShapeDtypeStruct((N, Ho, Wo, Cout), jnp.float32),
        grid=(N, n_tiles),
        in_specs=in_specs,
        out_specs=pl.BlockSpec((None, TH, Wo, Cout), lambda n, j: (n, j, 0, 0)),
        compiler_params=pltpu.CompilerParams(
            dimension_semantics=("parallel", "parallel"),
            vmem_limit_bytes=_vmem_limit_bytes(in_tile_b, out_tile_b, 4 * K * Cout)),
        cost_estimate=pl.CostEstimate(flops=flops, transcendentals=0,
                                      bytes_accessed=bytes_accessed),
    )(*operands)
    return out


def _avg_pool2_ceil(x_nhwc):
    """AvgPool2d(2, stride=2, ceil_mode=True): partial edge windows average over
    valid elements only (PyTorch semantics with padding=0).  Plain-JAX glue."""
    N, H, W, C = x_nhwc.shape
    ph, pw = (-H) % 2, (-W) % 2
    pads = ((0, 0), (0, ph), (0, pw), (0, 0))
    ssum = lax.reduce_window(x_nhwc, jnp.float32(0), lax.add,
                             (1, 2, 2, 1), (1, 2, 2, 1), pads)
    cnt = lax.reduce_window(jnp.ones((1, H, W, 1), jnp.float32), jnp.float32(0),
                            lax.add, (1, 2, 2, 1), (1, 2, 2, 1), pads)
    return ssum / cnt


@functools.partial(jax.jit,
                   static_argnames=("fi", "fo", "stride", "ks", "leak", "sub", "row_tile"))
def res_block_forward(x_nchw, p, *, fi, fo, stride=1, ks=3,
                      leak=LEAK, sub=SUB, row_tile=None):
    """ResBlock.forward: act(convs(x) + id_conv(pool(x))).  NCHW in / NCHW out."""
    assert p["w1"].shape == (fo, fi, ks, ks)
    x = jnp.transpose(x_nchw, (0, 2, 3, 1)).astype(jnp.float32)        # -> NHWC

    # conv(fi->fo, stride=1) + bias + GeneralReLU, fused in one Pallas kernel.
    h = conv2d_bias_act(x, p["w1"], p["b1"], stride=1, apply_act=True,
                        leak=leak, sub=sub, row_tile=row_tile)

    # identity path: AvgPool2d(2, ceil_mode=True) when strided (plain-JAX glue).
    idp = _avg_pool2_ceil(x) if stride != 1 else x

    # conv(fo->fo, stride=s, no act) evaluated only at the strided outputs and
    # fused with the (optional) 1x1 id-conv, the residual add and the GeneralReLU.
    if fi != fo:
        out = conv2d_residual_act(h, p["w2"], p["b2"], idp, p["wi"], p["bi"],
                                  stride=stride, leak=leak, sub=sub, row_tile=row_tile)
    else:
        out = conv2d_residual_act(h, p["w2"], p["b2"], idp,
                                  stride=stride, leak=leak, sub=sub, row_tile=row_tile)
    return jnp.transpose(out, (0, 3, 1, 2))                            # -> NCHW


# ---------------------------- pure-JAX reference -----------------------------

def ref_forward(x, p, *, fi, fo, stride, ks, leak=LEAK, sub=SUB):
    def conv2d(h, w, b, s, pad):
        y = lax.conv_general_dilated(h, w, (s, s), [(pad, pad), (pad, pad)],
                                     dimension_numbers=("NCHW", "OIHW", "NCHW"),
                                     precision=lax.Precision.HIGHEST)
        return y + b[None, :, None, None]

    def grelu(h):
        return jnp.where(h >= 0, h, leak * h) - sub

    h = grelu(conv2d(x, p["w1"], p["b1"], 1, ks // 2))
    h = conv2d(h, p["w2"], p["b2"], stride, ks // 2)
    idx = x
    if stride != 1:
        N, C, H, W = idx.shape
        idx = idx.reshape(N, C, H // 2, 2, W // 2, 2).mean(axis=(3, 5))  # even H/W
    if fi != fo:
        idx = conv2d(idx, p["wi"], p["bi"], 1, 0)
    return grelu(h + idx)


# ----------------------------------- main ------------------------------------

def _make_params(key, fi, fo, ks, with_id):
    k = jax.random.split(key, 7)
    p = dict(
        w1=0.2 * jax.random.normal(k[1], (fo, fi, ks, ks), jnp.float32),
        b1=0.1 * jax.random.normal(k[2], (fo,), jnp.float32),
        w2=0.2 * jax.random.normal(k[3], (fo, fo, ks, ks), jnp.float32),
        b2=0.1 * jax.random.normal(k[4], (fo,), jnp.float32),
    )
    if with_id:
        p["wi"] = 0.2 * jax.random.normal(k[5], (fo, fi, 1, 1), jnp.float32)
        p["bi"] = 0.1 * jax.random.normal(k[6], (fo,), jnp.float32)
    return p


if __name__ == "__main__":
    key = jax.random.PRNGKey(0)

    # Case 1: fi != fo, stride 2 (pool + 1x1 id-conv path), auto row tiles.
    fi, fo, stride, ks = 4, 8, 2, 3
    kx, kp = jax.random.split(key)
    x = jax.random.normal(kx, (2, fi, 16, 16), jnp.float32)
    params = _make_params(kp, fi, fo, ks, with_id=True)

    y = jax.block_until_ready(
        res_block_forward(x, params, fi=fi, fo=fo, stride=stride, ks=ks))
    assert y.shape == (2, fo, 8, 8), y.shape
    y_ref = ref_forward(x, params, fi=fi, fo=fo, stride=stride, ks=ks)
    np.testing.assert_allclose(np.asarray(y), np.asarray(y_ref), rtol=1e-3, atol=1e-3)

    # Case 2: same problem with a forced smaller row tile -> multi-tile grid.
    y2 = jax.block_until_ready(
        res_block_forward(x, params, fi=fi, fo=fo, stride=stride, ks=ks, row_tile=8))
    np.testing.assert_allclose(np.asarray(y2), np.asarray(y_ref), rtol=1e-3, atol=1e-3)

    # Case 3: fi == fo, stride 1 (identity residual, no pool, no id-conv matmul).
    fi3 = fo
    x3 = jax.random.normal(jax.random.fold_in(key, 3), (2, fi3, 16, 16), jnp.float32)
    params3 = _make_params(jax.random.fold_in(key, 4), fi3, fo, ks, with_id=False)
    y3 = jax.block_until_ready(
        res_block_forward(x3, params3, fi=fi3, fo=fo, stride=1, ks=ks))
    assert y3.shape == (2, fo, 16, 16), y3.shape
    y3_ref = ref_forward(x3, params3, fi=fi3, fo=fo, stride=1, ks=ks)
    np.testing.assert_allclose(np.asarray(y3), np.asarray(y3_ref), rtol=1e-3, atol=1e-3)

    print("KERNEL_OK")
</pallas_src>

<mosaic_0001>
module attributes {stable_mosaic.version = 11 : i64} {
  func.func @_conv_bias_act_kernel(%arg0: i32, %arg1: i32, %arg2: memref<1x1x18x18x8xf32, #tpu.memory_space<vmem>>, %arg3: memref<72x8xf32, #tpu.memory_space<vmem>>, %arg4: memref<1x8xf32, #tpu.memory_space<vmem>>, %arg5: memref<1x16x16x8xf32, #tpu.memory_space<vmem>>) attributes {dimension_semantics = [#tpu.dimension_semantics<parallel>, #tpu.dimension_semantics<parallel>], iteration_bounds = array<i64: 2, 1>, scalar_prefetch = 0 : i64, scratch_operands = 0 : i64, tpu.core_type = #tpu.core_type<tc>, window_params = [{transform_indices = @transform_0, window_bounds = array<i64: 1, 1, 18, 18, 8>}, {pipeline_mode = #tpu.pipeline_mode<synchronous>, transform_indices = @transform_1, window_bounds = array<i64: 72, 8>}, {pipeline_mode = #tpu.pipeline_mode<synchronous>, transform_indices = @transform_2, window_bounds = array<i64: 1, 8>}, {transform_indices = @transform_3, window_bounds = array<i64: 1, 16, 16, 8>}]} {
    %c0 = arith.constant 0 : index
    %c0_0 = arith.constant 0 : index
    %c0_1 = arith.constant 0 : index
    %c0_2 = arith.constant 0 : index
    %c0_3 = arith.constant 0 : index
    %0 = vector.load %arg2[%c0, %c0_0, %c0_1, %c0_2, %c0_3] : memref<1x1x18x18x8xf32, #tpu.memory_space<vmem>>, vector<1x1x16x18x8xf32>
    %1 = vector.shape_cast %0 : vector<1x1x16x18x8xf32> to vector<16x18x8xf32>
    %2 = vector.extract_strided_slice %1 {offsets = [0, 0, 0], sizes = [16, 16, 8], strides = [1, 1, 1]} : vector<16x18x8xf32> to vector<16x16x8xf32>
    %3 = vector.extract_strided_slice %1 {offsets = [0, 1, 0], sizes = [16, 16, 8], strides = [1, 1, 1]} : vector<16x18x8xf32> to vector<16x16x8xf32>
    %4 = vector.extract_strided_slice %1 {offsets = [0, 2, 0], sizes = [16, 16, 8], strides = [1, 1, 1]} : vector<16x18x8xf32> to vector<16x16x8xf32>
    %c0_4 = arith.constant 0 : index
    %c0_5 = arith.constant 0 : index
    %c1 = arith.constant 1 : index
    %c0_6 = arith.constant 0 : index
    %c0_7 = arith.constant 0 : index
    %5 = vector.load %arg2[%c0_4, %c0_5, %c1, %c0_6, %c0_7] : memref<1x1x18x18x8xf32, #tpu.memory_space<vmem>>, vector<1x1x16x18x8xf32>
    %6 = vector.shape_cast %5 : vector<1x1x16x18x8xf32> to vector<16x18x8xf32>
    %7 = vector.extract_strided_slice %6 {offsets = [0, 0, 0], sizes = [16, 16, 8], strides = [1, 1, 1]} : vector<16x18x8xf32> to vector<16x16x8xf32>
    %8 = vector.extract_strided_slice %6 {offsets = [0, 1, 0], sizes = [16, 16, 8], strides = [1, 1, 1]} : vector<16x18x8xf32> to vector<16x16x8xf32>
    %9 = vector.extract_strided_slice %6 {offsets = [0, 2, 0], sizes = [16, 16, 8], strides = [1, 1, 1]} : vector<16x18x8xf32> to vector<16x16x8xf32>
    %c0_8 = arith.constant 0 : index
    %c0_9 = arith.constant 0 : index
    %c2 = arith.constant 2 : index
    %c0_10 = arith.constant 0 : index
    %c0_11 = arith.constant 0 : index
    %10 = vector.load %arg2[%c0_8, %c0_9, %c2, %c0_10, %c0_11] : memref<1x1x18x18x8xf32, #tpu.memory_space<vmem>>, vector<1x1x16x18x8xf32>
    %11 = vector.shape_cast %10 : vector<1x1x16x18x8xf32> to vector<16x18x8xf32>
    %12 = vector.extract_strided_slice %11 {offsets = [0, 0, 0], sizes = [16, 16, 8], strides = [1, 1, 1]} : vector<16x18x8xf32> to vector<16x16x8xf32>
    %13 = vector.extract_strided_slice %11 {offsets = [0, 1, 0], sizes = [16, 16, 8], strides = [1, 1, 1]} : vector<16x18x8xf32> to vector<16x16x8xf32>
    %14 = vector.extract_strided_slice %11 {offsets = [0, 2, 0], sizes = [16, 16, 8], strides = [1, 1, 1]} : vector<16x18x8xf32> to vector<16x16x8xf32>
    %15 = tpu.concatenate %2, %3, %4, %7, %8, %9, %12, %13, %14 in 2 : vector<16x16x8xf32>, vector<16x16x8xf32>, vector<16x16x8xf32>, vector<16x16x8xf32>, vector<16x16x8xf32>, vector<16x16x8xf32>, vector<16x16x8xf32>, vector<16x16x8xf32>, vector<16x16x8xf32> -> vector<16x16x72xf32>
    %16 = vector.shape_cast %15 : vector<16x16x72xf32> to vector<256x72xf32>
    %c0_12 = arith.constant 0 : index
    %c0_13 = arith.constant 0 : index
    %17 = vector.load %arg3[%c0_12, %c0_13] : memref<72x8xf32, #tpu.memory_space<vmem>>, vector<72x8xf32>
    %cst = arith.constant dense<0.000000e+00> : vector<256x8xf32>
    %18 = tpu.matmul %16, %17, %cst {dimension_numbers = #tpu.dot_dimension_numbers<[1], [0], [0], [1], [0, 0, 1, 1], [], []>} : vector<256x72xf32>, vector<72x8xf32>, vector<256x8xf32> -> vector<256x8xf32>
    %c0_14 = arith.constant 0 : index
    %c0_15 = arith.constant 0 : index
    %19 = vector.load %arg4[%c0_14, %c0_15] : memref<1x8xf32, #tpu.memory_space<vmem>>, vector<1x8xf32>
    %20 = vector.broadcast %19 : vector<1x8xf32> to vector<256x8xf32>
    %21 = arith.addf %18, %20 : vector<256x8xf32>
    %cst_16 = arith.constant 0.000000e+00 : f32
    %22 = vector.broadcast %cst_16 : f32 to vector<256x8xf32>
    %23 = arith.cmpf oge, %21, %22 : vector<256x8xf32>
    %cst_17 = arith.constant 1.000000e-01 : f32
    %24 = vector.broadcast %cst_17 : f32 to vector<256x8xf32>
    %25 = arith.mulf %24, %21 : vector<256x8xf32>
    %26 = arith.select %23, %21, %25 : vector<256x8xi1>, vector<256x8xf32>
    %cst_18 = arith.constant 4.000000e-01 : f32
    %27 = vector.broadcast %cst_18 : f32 to vector<256x8xf32>
    %28 = arith.subf %26, %27 : vector<256x8xf32>
    %29 = vector.shape_cast %28 : vector<256x8xf32> to vector<16x16x8xf32>
    %c0_19 = arith.constant 0 : index
    %c0_20 = arith.constant 0 : index
    %c0_21 = arith.constant 0 : index
    %c0_22 = arith.constant 0 : index
    %30 = vector.load %arg5[%c0_19, %c0_20, %c0_21, %c0_22] : memref<1x16x16x8xf32, #tpu.memory_space<vmem>>, vector<1x16x16x8xf32>
    %31 = vector.shape_cast %30 : vector<1x16x16x8xf32> to vector<16x16x8xf32>
    %32 = vector.shape_cast %29 : vector<16x16x8xf32> to vector<1x16x16x8xf32>
    tpu.vector_store %arg5[%c0_19, %c0_20, %c0_21, %c0_22], %32 {strides = array<i32>} : memref<1x16x16x8xf32, #tpu.memory_space<vmem>>, vector<1x16x16x8xf32>,
    return
  }
  func.func @transform_0(%arg0: i32, %arg1: i32) -> (i32, i32, i32, i32, i32) {
    %c0_i32 = arith.constant 0 : i32
    %c0_i32_0 = arith.constant 0 : i32
    %c0_i32_1 = arith.constant 0 : i32
    %c0_i32_2 = arith.constant 0 : i32
    return %arg0, %arg1, %c0_i32, %c0_i32_0, %c0_i32_1 : i32, i32, i32, i32, i32
  }
  func.func @transform_1(%arg0: i32, %arg1: i32) -> (i32, i32) {
    %c0_i32 = arith.constant 0 : i32
    %c0_i32_0 = arith.constant 0 : i32
    %c0_i32_1 = arith.constant 0 : i32
    return %c0_i32, %c0_i32_0 : i32, i32
  }
  func.func @transform_2(%arg0: i32, %arg1: i32) -> (i32, i32) {
    %c0_i32 = arith.constant 0 : i32
    %c0_i32_0 = arith.constant 0 : i32
    %c0_i32_1 = arith.constant 0 : i32
    return %c0_i32, %c0_i32_0 : i32, i32
  }
  func.func @transform_3(%arg0: i32, %arg1: i32) -> (i32, i32, i32, i32) {
    %c0_i32 = arith.constant 0 : i32
    %c0_i32_0 = arith.constant 0 : i32
    %c0_i32_1 = arith.constant 0 : i32
    return %arg0, %arg1, %c0_i32, %c0_i32_0 : i32, i32, i32, i32
  }
}

module attributes {stable_mosaic.version = 11 : i64} {
  func.func @_conv_res_act_kernel(%arg0: i32, %arg1: i32, %arg2: memref<1x1x18x9x16xf32, #tpu.memory_space<vmem>>, %arg3: memref<72x8xf32, #tpu.memory_space<vmem>>, %arg4: memref<1x8xf32, #tpu.memory_space<vmem>>, %arg5: memref<1x8x8x8xf32, #tpu.memory_space<vmem>>, %arg6: memref<8x8xf32, #tpu.memory_space<vmem>>, %arg7: memref<1x8xf32, #tpu.memory_space<vmem>>, %arg8: memref<1x8x8x8xf32, #tpu.memory_space<vmem>>) attributes {dimension_semantics = [#tpu.dimension_semantics<parallel>, #tpu.dimension_semantics<parallel>], iteration_bounds = array<i64: 2, 1>, scalar_prefetch = 0 : i64, scratch_operands = 0 : i64, tpu.core_type = #tpu.core_type<tc>, window_params = [{transform_indices = @transform_0, window_bounds = array<i64: 1, 1, 18, 9, 16>}, {pipeline_mode = #tpu.pipeline_mode<synchronous>, transform_indices = @transform_1, window_bounds = array<i64: 72, 8>}, {pipeline_mode = #tpu.pipeline_mode<synchronous>, transform_indices = @transform_2, window_bounds = array<i64: 1, 8>}, {transform_indices = @transform_3, window_bounds = array<i64: 1, 8, 8, 8>}, {pipeline_mode = #tpu.pipeline_mode<synchronous>, transform_indices = @transform_4, window_bounds = array<i64: 8, 8>}, {pipeline_mode = #tpu.pipeline_mode<synchronous>, transform_indices = @transform_5, window_bounds = array<i64: 1, 8>}, {transform_indices = @transform_6, window_bounds = array<i64: 1, 8, 8, 8>}]} {
    %c0 = arith.constant 0 : index
    %c0_0 = arith.constant 0 : index
    %c0_1 = arith.constant 0 : index
    %c0_2 = arith.constant 0 : index
    %c0_3 = arith.constant 0 : index
    %0 = vector.load %arg2[%c0, %c0_0, %c0_1, %c0_2, %c0_3] : memref<1x1x18x9x16xf32, #tpu.memory_space<vmem>>, vector<1x1x16x9x16xf32>
    %1 = vector.shape_cast %0 : vector<1x1x16x9x16xf32> to vector<16x9x16xf32>
    %2 = vector.shape_cast %1 : vector<16x9x16xf32> to vector<8x2x9x16xf32>
    %3 = vector.extract_strided_slice %2 {offsets = [0, 0, 0, 0], sizes = [8, 1, 9, 16], strides = [1, 1, 1, 1]} : vector<8x2x9x16xf32> to vector<8x1x9x16xf32>
    %4 = vector.shape_cast %3 : vector<8x1x9x16xf32> to vector<8x9x16xf32>
    %5 = vector.extract_strided_slice %4 {offsets = [0, 0, 0], sizes = [8, 8, 8], strides = [1, 1, 1]} : vector<8x9x16xf32> to vector<8x8x8xf32>
    %6 = vector.extract_strided_slice %4 {offsets = [0, 0, 8], sizes = [8, 8, 8], strides = [1, 1, 1]} : vector<8x9x16xf32> to vector<8x8x8xf32>
    %7 = vector.extract_strided_slice %4 {offsets = [0, 1, 0], sizes = [8, 8, 8], strides = [1, 1, 1]} : vector<8x9x16xf32> to vector<8x8x8xf32>
    %c0_4 = arith.constant 0 : index
    %c0_5 = arith.constant 0 : index
    %c1 = arith.constant 1 : index
    %c0_6 = arith.constant 0 : index
    %c0_7 = arith.constant 0 : index
    %8 = vector.load %arg2[%c0_4, %c0_5, %c1, %c0_6, %c0_7] : memref<1x1x18x9x16xf32, #tpu.memory_space<vmem>>, vector<1x1x16x9x16xf32>
    %9 = vector.shape_cast %8 : vector<1x1x16x9x16xf32> to vector<16x9x16xf32>
    %10 = vector.shape_cast %9 : vector<16x9x16xf32> to vector<8x2x9x16xf32>
    %11 = vector.extract_strided_slice %10 {offsets = [0, 0, 0, 0], sizes = [8, 1, 9, 16], strides = [1, 1, 1, 1]} : vector<8x2x9x16xf32> to vector<8x1x9x16xf32>
    %12 = vector.shape_cast %11 : vector<8x1x9x16xf32> to vector<8x9x16xf32>
    %13 = vector.extract_strided_slice %12 {offsets = [0, 0, 0], sizes = [8, 8, 8], strides = [1, 1, 1]} : vector<8x9x16xf32> to vector<8x8x8xf32>
    %14 = vector.extract_strided_slice %12 {offsets = [0, 0, 8], sizes = [8, 8, 8], strides = [1, 1, 1]} : vector<8x9x16xf32> to vector<8x8x8xf32>
    %15 = vector.extract_strided_slice %12 {offsets = [0, 1, 0], sizes = [8, 8, 8], strides = [1, 1, 1]} : vector<8x9x16xf32> to vector<8x8x8xf32>
    %c0_8 = arith.constant 0 : index
    %c0_9 = arith.constant 0 : index
    %c2 = arith.constant 2 : index
    %c0_10 = arith.constant 0 : index
    %c0_11 = arith.constant 0 : index
    %16 = vector.load %arg2[%c0_8, %c0_9, %c2, %c0_10, %c0_11] : memref<1x1x18x9x16xf32, #tpu.memory_space<vmem>>, vector<1x1x16x9x16xf32>
    %17 = vector.shape_cast %16 : vector<1x1x16x9x16xf32> to vector<16x9x16xf32>
    %18 = vector.shape_cast %17 : vector<16x9x16xf32> to vector<8x2x9x16xf32>
    %19 = vector.extract_strided_slice %18 {offsets = [0, 0, 0, 0], sizes = [8, 1, 9, 16], strides = [1, 1, 1, 1]} : vector<8x2x9x16xf32> to vector<8x1x9x16xf32>
    %20 = vector.shape_cast %19 : vector<8x1x9x16xf32> to vector<8x9x16xf32>
    %21 = vector.extract_strided_slice %20 {offsets = [0, 0, 0], sizes = [8, 8, 8], strides = [1, 1, 1]} : vector<8x9x16xf32> to vector<8x8x8xf32>
    %22 = vector.extract_strided_slice %20 {offsets = [0, 0, 8], sizes = [8, 8, 8], strides = [1, 1, 1]} : vector<8x9x16xf32> to vector<8x8x8xf32>
    %23 = vector.extract_strided_slice %20 {offsets = [0, 1, 0], sizes = [8, 8, 8], strides = [1, 1, 1]} : vector<8x9x16xf32> to vector<8x8x8xf32>
    %24 = tpu.concatenate %5, %6, %7, %13, %14, %15, %21, %22, %23 in 2 : vector<8x8x8xf32>, vector<8x8x8xf32>, vector<8x8x8xf32>, vector<8x8x8xf32>, vector<8x8x8xf32>, vector<8x8x8xf32>, vector<8x8x8xf32>, vector<8x8x8xf32>, vector<8x8x8xf32> -> vector<8x8x72xf32>
    %25 = vector.shape_cast %24 : vector<8x8x72xf32> to vector<64x72xf32>
    %c0_12 = arith.constant 0 : index
    %c0_13 = arith.constant 0 : index
    %26 = vector.load %arg3[%c0_12, %c0_13] : memref<72x8xf32, #tpu.memory_space<vmem>>, vector<72x8xf32>
    %cst = arith.constant dense<0.000000e+00> : vector<64x8xf32>
    %27 = tpu.matmul %25, %26, %cst {dimension_numbers = #tpu.dot_dimension_numbers<[1], [0], [0], [1], [0, 0, 1, 1], [], []>} : vector<64x72xf32>, vector<72x8xf32>, vector<64x8xf32> -> vector<64x8xf32>
    %c0_14 = arith.constant 0 : index
    %c0_15 = arith.constant 0 : index
    %28 = vector.load %arg4[%c0_14, %c0_15] : memref<1x8xf32, #tpu.memory_space<vmem>>, vector<1x8xf32>
    %29 = vector.broadcast %28 : vector<1x8xf32> to vector<64x8xf32>
    %30 = arith.addf %27, %29 : vector<64x8xf32>
    %c0_16 = arith.constant 0 : index
    %c0_17 = arith.constant 0 : index
    %c0_18 = arith.constant 0 : index
    %c0_19 = arith.constant 0 : index
    %31 = vector.load %arg5[%c0_16, %c0_17, %c0_18, %c0_19] : memref<1x8x8x8xf32, #tpu.memory_space<vmem>>, vector<1x8x8x8xf32>
    %32 = vector.shape_cast %31 : vector<1x8x8x8xf32> to vector<8x8x8xf32>
    %33 = vector.shape_cast %32 : vector<8x8x8xf32> to vector<64x8xf32>
    %c0_20 = arith.constant 0 : index
    %c0_21 = arith.constant 0 : index
    %34 = vector.load %arg6[%c0_20, %c0_21] : memref<8x8xf32, #tpu.memory_space<vmem>>, vector<8x8xf32>
    %cst_22 = arith.constant dense<0.000000e+00> : vector<64x8xf32>
    %35 = tpu.matmul %33, %34, %cst_22 {dimension_numbers = #tpu.dot_dimension_numbers<[1], [0], [0], [1], [0, 0, 1, 1], [], []>} : vector<64x8xf32>, vector<8x8xf32>, vector<64x8xf32> -> vector<64x8xf32>
    %36 = arith.addf %30, %35 : vector<64x8xf32>
    %c0_23 = arith.constant 0 : index
    %c0_24 = arith.constant 0 : index
    %37 = vector.load %arg7[%c0_23, %c0_24] : memref<1x8xf32, #tpu.memory_space<vmem>>, vector<1x8xf32>
    %38 = vector.broadcast %37 : vector<1x8xf32> to vector<64x8xf32>
    %39 = arith.addf %36, %38 : vector<64x8xf32>
    %cst_25 = arith.constant 0.000000e+00 : f32
    %40 = vector.broadcast %cst_25 : f32 to vector<64x8xf32>
    %41 = arith.cmpf oge, %39, %40 : vector<64x8xf32>
    %cst_26 = arith.constant 1.000000e-01 : f32
    %42 = vector.broadcast %cst_26 : f32 to vector<64x8xf32>
    %43 = arith.mulf %42, %39 : vector<64x8xf32>
    %44 = arith.select %41, %39, %43 : vector<64x8xi1>, vector<64x8xf32>
    %cst_27 = arith.constant 4.000000e-01 : f32
    %45 = vector.broadcast %cst_27 : f32 to vector<64x8xf32>
    %46 = arith.subf %44, %45 : vector<64x8xf32>
    %47 = vector.shape_cast %46 : vector<64x8xf32> to vector<8x8x8xf32>
    %c0_28 = arith.constant 0 : index
    %c0_29 = arith.constant 0 : index
    %c0_30 = arith.constant 0 : index
    %c0_31 = arith.constant 0 : index
    %48 = vector.load %arg8[%c0_28, %c0_29, %c0_30, %c0_31] : memref<1x8x8x8xf32, #tpu.memory_space<vmem>>, vector<1x8x8x8xf32>
    %49 = vector.shape_cast %48 : vector<1x8x8x8xf32> to vector<8x8x8xf32>
    %50 = vector.shape_cast %47 : vector<8x8x8xf32> to vector<1x8x8x8xf32>
    tpu.vector_store %arg8[%c0_28, %c0_29, %c0_30, %c0_31], %50 {strides = array<i32>} : memref<1x8x8x8xf32, #tpu.memory_space<vmem>>, vector<1x8x8x8xf32>,
    return
  }
  func.func @transform_0(%arg0: i32, %arg1: i32) -> (i32, i32, i32, i32, i32) {
    %c0_i32 = arith.constant 0 : i32
    %c0_i32_0 = arith.constant 0 : i32
    %c0_i32_1 = arith.constant 0 : i32
    %c0_i32_2 = arith.constant 0 : i32
    return %arg0, %arg1, %c0_i32, %c0_i32_0, %c0_i32_1 : i32, i32, i32, i32, i32
  }
  func.func @transform_1(%arg0: i32, %arg1: i32) -> (i32, i32) {
    %c0_i32 = arith.constant 0 : i32
    %c0_i32_0 = arith.constant 0 : i32
    %c0_i32_1 = arith.constant 0 : i32
    return %c0_i32, %c0_i32_0 : i32, i32
  }
  func.func @transform_2(%arg0: i32, %arg1: i32) -> (i32, i32) {
    %c0_i32 = arith.constant 0 : i32
    %c0_i32_0 = arith.constant 0 : i32
    %c0_i32_1 = arith.constant 0 : i32
    return %c0_i32, %c0_i32_0 : i32, i32
  }
  func.func @transform_3(%arg0: i32, %arg1: i32) -> (i32, i32, i32, i32) {
    %c0_i32 = arith.constant 0 : i32
    %c0_i32_0 = arith.constant 0 : i32
    %c0_i32_1 = arith.constant 0 : i32
    return %arg0, %arg1, %c0_i32, %c0_i32_0 : i32, i32, i32, i32
  }
  func.func @transform_4(%arg0: i32, %arg1: i32) -> (i32, i32) {
    %c0_i32 = arith.constant 0 : i32
    %c0_i32_0 = arith.constant 0 : i32
    %c0_i32_1 = arith.constant 0 : i32
    return %c0_i32, %c0_i32_0 : i32, i32
  }
  func.func @transform_5(%arg0: i32, %arg1: i32) -> (i32, i32) {
    %c0_i32 = arith.constant 0 : i32
    %c0_i32_0 = arith.constant 0 : i32
    %c0_i32_1 = arith.constant 0 : i32
    return %c0_i32, %c0_i32_0 : i32, i32
  }
  func.func @transform_6(%arg0: i32, %arg1: i32) -> (i32, i32, i32, i32) {
    %c0_i32 = arith.constant 0 : i32
    %c0_i32_0 = arith.constant 0 : i32
    %c0_i32_1 = arith.constant 0 : i32
    return %arg0, %arg1, %c0_i32, %c0_i32_0 : i32, i32, i32, i32
  }
}

</mosaic_0001>

<bundles_post_ra>
// kernel: res_block_forward.3
= control target key start
LH: loop header
LB: loop body
LE: loop exit
PB: predicated region body
PF: predicated region fallthrough
CT: control target
= control target key end

     0   :  { %s1371_s21 = smov 0   ;;  %s1373_s22 = smov 0   ;;  %s1772_s0 = inlined_call_operand.vmem [shape: f32[2,1,18,9,16], index: 0, kind: input, shape index: {}]   ;;  %s1773_s1 = inlined_call_operand.vmem [shape: f32[72,8], index: 1, kind: input, shape index: {}]   ;;  %s1774_s2 = inlined_call_operand.vmem [shape: f32[1,8], index: 2, kind: input, shape index: {}]   ;;  %s1775_s3 = inlined_call_operand.vmem [shape: f32[2,8,8,8], index: 3, kind: input, shape index: {}]   ;;  %s1776_s4 = inlined_call_operand.vmem [shape: f32[8,8], index: 4, kind: input, shape index: {}]   ;;  %s1777_s5 = inlined_call_operand.vmem [shape: f32[1,8], index: 5, kind: input, shape index: {}]   ;;  %s1778_s6 = inlined_call_operand.vmem [shape: f32[2,8,8,8], index: 6, kind: output, shape index: {}]  }
   0x1   :  { %s1375_s23 = smov 0  }
   0x2 LB: > { %s28_s24 = sadd.s32 1, %s1325_s22  ;;  %p1139_p0 = scmp.ge.s32.totalorder %s1329_s23, 1  ;;  %s1329_s23 = sphi %s1375_s23, %s16_s23   ;;  %s1325_s22 = sphi %s1373_s22, %s1780_s22   ;;  %s1321_s21 = sphi %s1371_s21, %s1779_s21  }
   0x3   : > { %p30_p1 = scmp.ge.s32.totalorder %s28_s24, 2  ;;  %p249_p2 = scmp.lt.s32.totalorder %s1329_s23, 3 }
   0x5   : > { %s1782_s24 = smov (%p30_p1, %s28_s24), 0  ;;  %p250_p3 = pnand %p1139_p0, %p249_p2 }
   0x6   : > { %p296_p4 = scmp.lt.s32.totalorder (!%p250_p3), %s1321_s21, 1  ;;  %s1331_s29 = smov (!%p250_p3), 24  }
   0x7   : > { %253 = sbr.rel (%p250_p3) target bundleno = 420 (0x1a4), region = 44  ;;  %s1332_s30 = smov (!%p250_p3), 16  }
   0x8   : > { %s1333_s7 = smov (!%p250_p3), 40   ;;  %s1334_s8 = smov (!%p250_p3), 48  }
   0x9   : > { %s1335_s14 = smov (!%p250_p3), 64  }
   0xc   : > { %s1784_s21 = smov (!%p296_p4, %s1321_s21), 1  ;;  %vm391_vm0 = vcmask 1046528   ;;  %v687_v49 = vld [vmem:[%s1773_s1 + $0x40] sm:$0xff]  ;;  %v686_v54 = vld [vmem:[%s1773_s1 + $0x38] sm:$0xff]  ;;  %v685_v60 = vld [vmem:[%s1773_s1 + $0x30] sm:$0xff]  ;;  %vm834_vm1 = vcmask 64512  }
   0xd   : > { %s1277_s25 = smul.u32 288, %s1784_s21  ;;  %1233 = vmatprep.subr.mxu0 %v687_v49  ;;  %s1205_s15 = sshll.u32 %s1784_s21, 6  ;;  %vm616_vm2 = vcmask 130048   ;;  %vm625_vm3 = vcmask 195584   ;;  %vm634_vm4 = vcmask 261120   ;;  %vm643_vm5 = vcmask 326656  }
   0xe   : > { %1234 = vmatpush3.msra.mxu0 %v687_v49  ;;  %s1521_s26 = scalar_lea.vmem %s1775_s3, %s1205_s15  ;;  %vm652_vm6 = vcmask 392192   ;;  %vm661_vm7 = vcmask 457728   ;;  %vm670_vm8 = vcmask 523264   ;;  %vm695_vm9 = vcmask 588800  }
   0xf   : > { %s1395_s28 = scalar_lea.vmem %s1772_s0, %s1277_s25  ;;  %1235 = vmatprep.subr.mxu0 %v686_v54  ;;  %v828_v49 = vld [vmem:[%s1521_s26 + $0x18] sm:$0xff]  ;;  %s1733_s25 = scalar_lea.vmem %s1778_s6, %s1205_s15 }
  0x10   : > { %v1145_v0 = vld [vmem:[%s1395_s28 + $0x10] sm:$0xff]  ;;  %v1399_v1 = vld [vmem:[%s1395_s28] sm:$0xff]  ;;  %v326_v2 = vld [vmem:[%s1395_s28 + $0x8] sm:$0x1]  ;;  %1236 = vmatpush3.msra.mxu0 %v686_v54 }
  0x11   : > { %448 = vrot.lane.b32.xlu1 %v1145_v0, %s1331_s29  ;;  %v392_v3 = vrot.slane %v1399_v1, 1  ;;  %v393_v4 = vrot.slane %v326_v2, 1  ;;  %v1405_v5 = vld [vmem:[%s1395_s28 + $0x20] sm:$0xff]  ;;  %v1147_v7 = vld [vmem:[%s1395_s28 + $0x30] sm:$0xff]  ;;  %v328_v8 = vld [vmem:[%s1395_s28 + $0x28] sm:$0x1]  ;;  %1237 = vmatprep.subr.mxu0 %v685_v60 }
  0x12   : > { %v1408_v6 = vld [vmem:[%s1395_s28 + $0x40] sm:$0xff]  ;;  %v395_v9 = vrot.slane %v1405_v5, 1  ;;  %v330_v10 = vld [vmem:[%s1395_s28 + $0x48] sm:$0x1]  ;;  %v396_v12 = vrot.slane %v328_v8, 1  ;;  %v480_v16 = vrot.slane %v1145_v0, 1  ;;  %1238 = vmatpush3.msra.mxu0 %v685_v60 }
  0x13   : > { %v394_v11 = vsel %vm391_vm0, %v392_v3, %v393_v4  ;;  %v398_v13 = vrot.slane %v1408_v6, 1  ;;  %v399_v14 = vrot.slane %v330_v10, 1  ;;  %v1146_v15 = vld [vmem:[%s1395_s28 + $0x18] sm:$0x1]  ;;  %v483_v21 = vrot.slane %v1147_v7, 1  ;;  %v1430_v24 = vld [vmem:[%s1395_s28 + $0x60] sm:$0xff] }
  0x14   : > { %416 = vrot.lane.b32.xlu0 %v394_v11, %s1332_s30  ;;  %v397_v17 = vsel %vm391_vm0, %v395_v9, %v396_v12  ;;  %v481_v18 = vrot.slane %v1146_v15, 1  ;;  %v1148_v20 = vld [vmem:[%s1395_s28 + $0x38] sm:$0x1]  ;;  %v332_v25 = vld [vmem:[%s1395_s28 + $0x68] sm:$0x1]  ;;  %v1435_v27 = vld [vmem:[%s1395_s28 + $0xa0] sm:$0xff] }
  0x15   : > { %450 = vrot.lane.b32.xlu1 %v1147_v7, %s1331_s29  ;;  %v400_v19 = vsel %vm391_vm0, %v398_v13, %v399_v14  ;;  %v484_v23 = vrot.slane %v1148_v20, 1  ;;  %v1150_v26 = vld [vmem:[%s1395_s28 + $0x58] sm:$0x1]  ;;  %v1438_v28 = vld [vmem:[%s1395_s28 + $0xc0] sm:$0xff]  ;;  %v1149_v30 = vld [vmem:[%s1395_s28 + $0x50] sm:$0xff]  ;;  %v401_v31 = vrot.slane %v1430_v24, 1 }
  0x16   : > { %v482_v22 = vsel %vm391_vm0, %v480_v16, %v481_v18  ;;  %v402_v32 = vrot.slane %v332_v25, 1  ;;  %v1447_v33 = vld [vmem:[%s1395_s28 + $0xe0] sm:$0xff]  ;;  %v486_v34 = vrot.slane %v1149_v30, 1  ;;  %v487_v35 = vrot.slane %v1150_v26, 1  ;;  %v1452_v38 = vld [vmem:[%s1395_s28 + $0xf0] sm:$0xff]  ;;  %v684_v3 = vld [vmem:[%s1773_s1 + $0x28] sm:$0xff] }
  0x17   : > { %v485_v29 = vsel %vm391_vm0, %v483_v21, %v484_v23  ;;  %v407_v36 = vrot.slane %v1435_v27, 1  ;;  %v410_v37 = vrot.slane %v1438_v28, 1  ;;  %v1455_v39 = vld [vmem:[%s1395_s28 + $0x100] sm:$0xff]  ;;  %v413_v40 = vrot.slane %v1447_v33, 1  ;;  %v1170_v42 = vld [vmem:[%s1395_s28 + $0xa8] sm:$0x1]  ;;  %1239 = vmatprep.subr.mxu0 %v684_v3 }
  0x18   : > { %418 = vrot.lane.b32.xlu0 %v397_v17, %s1332_s30  ;;  %v501_v41 = vrot.slane %v1452_v38, 1  ;;  %v1160_v43 = vld [vmem:[%s1395_s28 + $0xf8] sm:$0x1]  ;;  %v1463_v44 = vld [vmem:[%s1395_s28 + $0x70] sm:$0xff]  ;;  %v581_v45 = vrot.slane %v1170_v42, 1  ;;  %v589_v48 = vrot.slane %v1455_v39, 1  ;;  %v403_v50 = vsel %vm391_vm0, %v401_v31, %v402_v32  ;;  %1240 = vmatpush3.msra.mxu0 %v684_v3 }
  0x19   : > { %420 = vrot.lane.b32.xlu1 %v400_v19, %s1332_s30  ;;  %v502_v46 = vrot.slane %v1160_v43, 1  ;;  %v1172_v47 = vld [vmem:[%s1395_s28 + $0xc8] sm:$0x1]  ;;  %v1493_v61 = vld [vmem:[%s1395_s28 + $0x80] sm:$0xff]  ;;  %v488_v8 = vsel %vm391_vm0, %v486_v34, %v487_v35  ;;  %v682_v16 = vld [vmem:[%s1773_s1 + $0x18] sm:$0xff]  ;;  %v489_v23 = vrot.slane %v1463_v44, 1 }
  0x1a   : > { %v584_v51 = vrot.slane %v1172_v47, 1  ;;  %v1176_v52 = vld [vmem:[%s1395_s28 + $0x108] sm:$0x1]  ;;  %v1483_v56 = vsel %vm391_vm0, %v407_v36, %v581_v45  ;;  %v833_v4 = vld [vmem:[%s1776_s4] sm:$0xff]  ;;  %v404_v10 = vrot.slane %v1493_v61, 1  ;;  %v1153_v34 = vld [vmem:[%s1395_s28 + $0x90] sm:$0xff] }
  0x1b   : > { %v1174_v53 = vld [vmem:[%s1395_s28 + $0xe8] sm:$0x1]  ;;  %v1486_v57 = vsel %vm391_vm0, %v501_v41, %v502_v46  ;;  %v590_v58 = vrot.slane %v1176_v52, 1  ;;  %v683_v14 = vld [vmem:[%s1773_s1 + $0x20] sm:$0xff]  ;;  %1263 = vmatprep.subr.mxu1 %v833_v4  ;;  %v1152_v21 = vld [vmem:[%s1395_s28 + $0x78] sm:$0x1] }
  0x1c   : > { %504 = vrot.lane.b32.xlu0 %v482_v22, %s1333_s7  ;;  %v1162_v55 = vld [vmem:[%s1395_s28 + $0x28] sm:$0x1]  ;;  %v587_v59 = vrot.slane %v1174_v53, 1  ;;  %v1499_v63 = vsel %vm391_vm0, %v410_v37, %v584_v51  ;;  %1264 = vmatpush3.msra.mxu1 %v833_v4  ;;  %v825_v15 = vld [vmem:[%s1521_s26] sm:$0xff]  ;;  %v681_v22 = vld [vmem:[%s1773_s1 + $0x10] sm:$0xff]  ;;  %v490_v26 = vrot.slane %v1152_v21, 1 }
  0x1d   : > { %536 = vrot.lane.b32.xlu1 %v1405_v5, %s1334_s8  ;;  %v334_v62 = vld [vmem:[%s1395_s28 + $0x88] sm:$0x1]  ;;  %v1503_v0 = vsel %vm391_vm0, %v589_v48, %v590_v58  ;;  %v569_v7 = vrot.slane %v1162_v55, 1  ;;  %1241 = vmatprep.subr.mxu0 %v683_v14  ;;  %v1154_v35 = vld [vmem:[%s1395_s28 + $0x98] sm:$0x1]  ;;  %v492_v42 = vrot.slane %v1153_v34, 1 }
  0x1e   : > { %v1508_v2 = vsel %vm391_vm0, %v413_v40, %v587_v59  ;;  %v405_v11 = vrot.slane %v334_v62, 1  ;;  %v1164_v12 = vld [vmem:[%s1395_s28 + $0x48] sm:$0x1]  ;;  %1242 = vmatpush3.msra.mxu0 %v683_v14  ;;  %1265 = vmatprep.mubr.msk.f32.mxu1 %vm834_vm1, %v825_v15  ;;  %v1155_v43 = vld [vmem:[%s1395_s28 + $0xb0] sm:$0xff]  ;;  %v1156_v55 = vld [vmem:[%s1395_s28 + $0xb8] sm:$0x1] }
  0x1f   : > { %v826_v17 = vld [vmem:[%s1521_s26 + $0x8] sm:$0xff]  ;;  %v570_v18 = vsel %vm391_vm0, %v395_v9, %v569_v7  ;;  %v572_v19 = vrot.slane %v1164_v12, 1  ;;  %1243 = vmatprep.subr.mxu0 %v682_v16  ;;  %v827_v47 = vld [vmem:[%s1521_s26 + $0x10] sm:$0xff]  ;;  %v495_v58 = vrot.slane %v1155_v43, 1  ;;  %v496_v60 = vrot.slane %v1156_v55, 1  ;;  %v832_v15 = vld [vmem:[%s1521_s26 + $0x38] sm:$0xff] }
  0x20   : > { %506 = vrot.lane.b32.xlu0 %v485_v29, %s1333_s7  ;;  %v406_v20 = vsel %vm391_vm0, %v404_v10, %v405_v11  ;;  %1266 = vmatmul.mubr.msk.f32.vlgmr.msra.gmra.mxu1 %vm834_vm1, %v826_v17  ;;  %v680_v9 = vld [vmem:[%s1773_s1 + $0x8] sm:$0xff]  ;;  %v1157_v3 = vld [vmem:[%s1395_s28 + $0xd0] sm:$0xff]  ;;  %v1158_v4 = vld [vmem:[%s1395_s28 + $0xd8] sm:$0x1] }
  0x21   : > { %452 = vrot.lane.b32.xlu1 %v1149_v30, %s1331_s29  ;;  %1244 = vmatpush3.msra.mxu0 %v682_v16  ;;  %v573_v25 = vsel %vm391_vm0, %v398_v13, %v572_v19  ;;  %v336_v29 = vld [vmem:[%s1395_s28 + $0xa8] sm:$0x1]  ;;  %v679_v30 = vld [vmem:[%s1773_s1] sm:$0xff]  ;;  %v491_v13 = vsel %vm391_vm0, %v489_v23, %v490_v26 }
  0x22   : > { %1245 = vmatprep.subr.mxu0 %v681_v22  ;;  %v408_v32 = vrot.slane %v336_v29, 1  ;;  %v1166_v45 = vld [vmem:[%s1395_s28 + $0x68] sm:$0x1]  ;;  %1268 = vmatprep.mubr.msk.f32.mxu1 %vm834_vm1, %v827_v47  ;;  %v829_v11 = vld [vmem:[%s1521_s26 + $0x20] sm:$0xff] }
  0x23   : > { %1246 = vmatpush3.msra.mxu0 %v681_v22  ;;  %v338_v46 = vld [vmem:[%s1395_s28 + $0xc8] sm:$0x1]  ;;  %v575_v48 = vrot.slane %v1166_v45, 1 }
  0x24   : > { %422 = vrot.lane.b32.xlu0 %v403_v50, %s1332_s30  ;;  %1247 = vmatprep.subr.mxu0 %v680_v9  ;;  %v409_v41 = vsel %vm391_vm0, %v407_v36, %v408_v32  ;;  %v411_v51 = vrot.slane %v338_v46, 1  ;;  %v1168_v36 = vld [vmem:[%s1395_s28 + $0x88] sm:$0x1] }
  0x25   : > { %454 = vrot.lane.b32.xlu1 %v1463_v44, %s1331_s29  ;;  %1248 = vmatpush3.msra.mxu0 %v680_v9  ;;  %v493_v44 = vrot.slane %v1154_v35, 1  ;;  %v576_v52 = vsel %vm391_vm0, %v401_v31, %v575_v48  ;;  %v578_v53 = vrot.slane %v1168_v36, 1  ;;  %v340_v62 = vld [vmem:[%s1395_s28 + $0xe8] sm:$0x1]  ;;  %v497_v31 = vsel %vm391_vm0, %v495_v58, %v496_v60 }
  0x26   : > { %1249 = vmatprep.subr.mxu0 %v679_v30  ;;  %1269 = vmatmul.mubr.msk.f32.gmra.mxu1 %vm834_vm1, %v828_v49  ;;  %v412_v54 = vsel %vm391_vm0, %v410_v37, %v411_v51  ;;  %v414_v37 = vrot.slane %v340_v62, 1  ;;  %v830_v12 = vld [vmem:[%s1521_s26 + $0x28] sm:$0xff] }
  0x27   : > { %1250 = vmatpush3.msra.mxu0 %v679_v30  ;;  %v494_v50 = vsel %vm391_vm0, %v492_v42, %v493_v44  ;;  %v579_v59 = vsel %vm391_vm0, %v404_v10, %v578_v53  ;;  %v499_v10 = vrot.slane %v1158_v4, 1  ;;  %1271 = vmatprep.mubr.msk.f32.mxu1 %vm834_vm1, %v829_v11 }
  0x28   : > { %538 = vrot.lane.b32.xlu0 %v1408_v6, %s1334_s8  ;;  %v415_v7 = vsel %vm391_vm0, %v413_v40, %v414_v37  ;;  %v831_v40 = vld [vmem:[%s1521_s26 + $0x30] sm:$0xff] }
  0x29   : > { %508 = vrot.lane.b32.xlu1 %v488_v8, %s1333_s7  ;;  %v498_v8 = vrot.slane %v1157_v3, 1 }
  0x2a   : > { %1272 = vmatmul.mubr.msk.f32.gmra.mxu1 %vm834_vm1, %v830_v12 }
  0x2b   : > { %v500_v14 = vsel %vm391_vm0, %v498_v8, %v499_v10  ;;  %1274 = vmatprep.mubr.msk.f32.mxu1 %vm834_vm1, %v831_v40 }
  0x2c   : > { %592 = vrot.lane.b32.xlu0 %v570_v18, %s1335_s14 }
  0x2d   : > { %424 = vrot.lane.b32.xlu1 %v406_v20, %s1332_s30 }
  0x2e   : > { %1275 = vmatmul.mubr.msk.f32.gmra.mxu1 %vm834_vm1, %v832_v15 }
  0x30   : > { %594 = vrot.lane.b32.xlu0 %v573_v25, %s1335_s14 }
  0x31   : > { %540 = vrot.lane.b32.xlu1 %v1430_v24, %s1334_s8 }
  0x34   : > { %510 = vrot.lane.b32.xlu0 %v491_v13, %s1333_s7 }
  0x35   : > { %456 = vrot.lane.b32.xlu1 %v1153_v34, %s1331_s29 }
  0x38   : > { %426 = vrot.lane.b32.xlu0 %v409_v41, %s1332_s30 }
  0x39   : > { %458 = vrot.lane.b32.xlu1 %v1155_v43, %s1331_s29 }
  0x3c   : > { %542 = vrot.lane.b32.xlu0 %v1493_v61, %s1334_s8 }
  0x3d   : > { %512 = vrot.lane.b32.xlu1 %v494_v50, %s1333_s7 }
  0x40   : > { %596 = vrot.lane.b32.xlu0 %v576_v52, %s1335_s14 }
  0x41   : > { %428 = vrot.lane.b32.xlu1 %v412_v54, %s1332_s30 }
  0x44   : > { %598 = vrot.lane.b32.xlu0 %v579_v59, %s1335_s14 }
  0x45   : > { %544 = vrot.lane.b32.xlu1 %v1435_v27, %s1334_s8 }
  0x48   : > { %514 = vrot.lane.b32.xlu0 %v497_v31, %s1333_s7 }
  0x49   : > { %460 = vrot.lane.b32.xlu1 %v1157_v3, %s1331_s29 }
  0x4c   : > { %430 = vrot.lane.b32.xlu0 %v415_v7, %s1332_s30 }
  0x4d   : > { %462 = vrot.lane.b32.xlu1 %v1452_v38, %s1331_s29 }
  0x50   : > { %546 = vrot.lane.b32.xlu0 %v1438_v28, %s1334_s8 }
  0x51   : > { %516 = vrot.lane.b32.xlu1 %v500_v14, %s1333_s7 }
  0x54   : > { %600 = vrot.lane.b32.xlu0 %v1483_v56, %s1335_s14 }
  0x55   : > { %518 = vrot.lane.b32.xlu1 %v1486_v57, %s1333_s7 }
  0x58   : > { %602 = vrot.lane.b32.xlu0 %v1499_v63, %s1335_s14 }
  0x59   : > { %550 = vrot.lane.b32.xlu1 %v1455_v39, %s1334_s8 }
  0x5c   : > { %548 = vrot.lane.b32.xlu0 %v1447_v33, %s1334_s8 }
  0x5d   : > { %606 = vrot.lane.b32.xlu1 %v1503_v0, %s1335_s14 }
  0x60   : > { %604 = vrot.lane.b32.xlu0 %v1508_v2, %s1335_s14 }
  0x83   : > { %v449_v38 = vpop.permute.xlu1 %448 }
  0x86   : > { %v417_v56 = vpop.permute.xlu0 %416 }
  0x87   : > { %v451_v57 = vpop.permute.xlu1 %450  ;;  %v617_v39 = vsel %vm616_vm2, %v1399_v1, %v417_v56 }
  0x88   : > { %v626_v21 = vsel %vm625_vm3, %v617_v39, %v449_v38 }
  0x89   : > { %v635_v22 = vsel %vm634_vm4, %v626_v21, %v449_v38 }
  0x8a   : > { %v419_v16 = vpop.permute.xlu0 %418 }
  0x8b   : > { %v421_v17 = vpop.permute.xlu1 %420  ;;  %v618_v2 = vsel %vm616_vm2, %v1405_v5, %v419_v16 }
  0x8c   : > { %v627_v25 = vsel %vm625_vm3, %v618_v2, %v451_v57  ;;  %v619_v48 = vsel %vm616_vm2, %v1408_v6, %v421_v17 }
  0x8d   : > { %v636_v30 = vsel %vm634_vm4, %v627_v25, %v451_v57 }
  0x8e   : > { %v505_v18 = vpop.permute.xlu0 %504 }
  0x8f   : > { %v537_v63 = vpop.permute.xlu1 %536  ;;  %v644_v23 = vsel %vm643_vm5, %v635_v22, %v505_v18 }
  0x90   : > { %v653_v1 = vsel %vm652_vm6, %v644_v23, %v537_v63 }
  0x91   : > { %v662_v13 = vsel %vm661_vm7, %v653_v1, %v537_v63 }
  0x92   : > { %v507_v19 = vpop.permute.xlu0 %506 }
  0x93   : > { %v453_v20 = vpop.permute.xlu1 %452  ;;  %v645_v5 = vsel %vm643_vm5, %v636_v30, %v507_v19 }
  0x94   : > { %v628_v49 = vsel %vm625_vm3, %v619_v48, %v453_v20 }
  0x95   : > { %v637_v52 = vsel %vm634_vm4, %v628_v49, %v453_v20 }
  0x96   : > { %v423_v0 = vpop.permute.xlu0 %422 }
  0x97   : > { %v455_v9 = vpop.permute.xlu1 %454  ;;  %v620_v51 = vsel %vm616_vm2, %v1430_v24, %v423_v0 }
  0x98   : > { %v629_v53 = vsel %vm625_vm3, %v620_v51, %v455_v9 }
  0x99   : > { %v638_v60 = vsel %vm634_vm4, %v629_v53, %v455_v9 }
  0x9a   : > { %v539_v26 = vpop.permute.xlu0 %538 }
  0x9b   : > { %v509_v29 = vpop.permute.xlu1 %508  ;;  %v654_v34 = vsel %vm652_vm6, %v645_v5, %v539_v26 }
  0x9c   : > { %v663_v42 = vsel %vm661_vm7, %v654_v34, %v539_v26  ;;  %v646_v54 = vsel %vm643_vm5, %v637_v52, %v509_v29 }
  0x9e   : > { %v593_v32 = vpop.permute.xlu0 %592 }
  0x9f   : > { %v425_v35 = vpop.permute.xlu1 %424  ;;  %v671_v41 = vsel %vm670_vm8, %v662_v13, %v593_v32 }
  0xa0   : > { %1251 = vmatprep.mubr.msk.f32.mxu0 %vm695_vm9, %v671_v41  ;;  %v621_v14 = vsel %vm616_vm2, %v1493_v61, %v425_v35 }
  0xa2   : > { %v595_v43 = vpop.permute.xlu0 %594 }
  0xa3   : > { %v672_v44 = vsel %vm670_vm8, %v663_v42, %v595_v43  ;;  %v541_v45 = vpop.permute.xlu1 %540 }
  0xa4   : > { %1252 = vmatmul.mubr.msk.f32.vlgmr.msra.gmra.mxu0 %vm695_vm9, %v672_v44  ;;  %v655_v58 = vsel %vm652_vm6, %v646_v54, %v541_v45 }
  0xa5   : > { %v664_v6 = vsel %vm661_vm7, %v655_v58, %v541_v45 }
  0xa6   : > { %v511_v46 = vpop.permute.xlu0 %510 }
  0xa7   : > { %v457_v47 = vpop.permute.xlu1 %456  ;;  %v647_v62 = vsel %vm643_vm5, %v638_v60, %v511_v46 }
  0xa8   : > { %v630_v40 = vsel %vm625_vm3, %v621_v14, %v457_v47 }
  0xa9   : > { %v639_v57 = vsel %vm634_vm4, %v630_v40, %v457_v47  ;;  %v1717_v47 = vld [vmem:[%s1774_s2] ss:$0 sm:$0xff] }
  0xaa   : > { %v427_v50 = vpop.permute.xlu0 %426 }
  0xab   : > { %v459_v36 = vpop.permute.xlu1 %458  ;;  %v622_v38 = vsel %vm616_vm2, %v1435_v27, %v427_v50 }
  0xac   : > { %v631_v16 = vsel %vm625_vm3, %v622_v38, %v459_v36 }
  0xad   : > { %v640_v19 = vsel %vm634_vm4, %v631_v16, %v459_v36  ;;  %v1723_v36 = vld [vmem:[%s1777_s5] ss:$0 sm:$0xff] }
  0xae   : > { %v543_v55 = vpop.permute.xlu0 %542 }
  0xaf   : > { %v513_v59 = vpop.permute.xlu1 %512  ;;  %v656_v24 = vsel %vm652_vm6, %v647_v62, %v543_v55 }
  0xb0   : > { %v665_v4 = vsel %vm661_vm7, %v656_v24, %v543_v55  ;;  %v648_v17 = vsel %vm643_vm5, %v639_v57, %v513_v59 }
  0xb2   : > { %v597_v31 = vpop.permute.xlu0 %596 }
  0xb3   : > { %v673_v37 = vsel %vm670_vm8, %v664_v6, %v597_v31  ;;  %v429_v3 = vpop.permute.xlu1 %428 }
  0xb4   : > { %1254 = vmatprep.mubr.msk.f32.mxu0 %vm695_vm9, %v673_v37  ;;  %v623_v9 = vsel %vm616_vm2, %v1438_v28, %v429_v3 }
  0xb6   : > { %v599_v7 = vpop.permute.xlu0 %598 }
  0xb7   : > { %v674_v8 = vsel %vm670_vm8, %v665_v4, %v599_v7  ;;  %v545_v10 = vpop.permute.xlu1 %544 }
  0xb8   : > { %1255 = vmatmul.mubr.msk.f32.gmra.mxu0 %vm695_vm9, %v674_v8  ;;  %v657_v63 = vsel %vm652_vm6, %v648_v17, %v545_v10 }
  0xb9   : > { %v666_v61 = vsel %vm661_vm7, %v657_v63, %v545_v10 }
  0xba   : > { %v515_v11 = vpop.permute.xlu0 %514 }
  0xbb   : > { %v461_v12 = vpop.permute.xlu1 %460  ;;  %v649_v20 = vsel %vm643_vm5, %v640_v19, %v515_v11 }
  0xbc   : > { %v632_v23 = vsel %vm625_vm3, %v623_v9, %v461_v12 }
  0xbd   : > { %v641_v13 = vsel %vm634_vm4, %v632_v23, %v461_v12 }
  0xbe   : > { %v431_v15 = vpop.permute.xlu0 %430 }
  0xbf   : > { %v463_v56 = vpop.permute.xlu1 %462  ;;  %v624_v22 = vsel %vm616_vm2, %v1447_v33, %v431_v15 }
  0xc0   : > { %v633_v1 = vsel %vm625_vm3, %v624_v22, %v463_v56 }
  0xc1   : > { %v642_v33 = vsel %vm634_vm4, %v633_v1, %v463_v56 }
  0xc2   : > { %v547_v18 = vpop.permute.xlu0 %546 }
  0xc3   : > { %v517_v39 = vpop.permute.xlu1 %516  ;;  %v658_v27 = vsel %vm652_vm6, %v649_v20, %v547_v18 }
  0xc4   : > { %v667_v25 = vsel %vm661_vm7, %v658_v27, %v547_v18  ;;  %v650_v5 = vsel %vm643_vm5, %v641_v13, %v517_v39 }
  0xc6   : > { %v601_v21 = vpop.permute.xlu0 %600 }
  0xc7   : > { %v675_v0 = vsel %vm670_vm8, %v666_v61, %v601_v21  ;;  %v519_v2 = vpop.permute.xlu1 %518 }
  0xc8   : > { %1257 = vmatprep.mubr.msk.f32.mxu0 %vm695_vm9, %v675_v0  ;;  %v651_v28 = vsel %vm643_vm5, %v642_v33, %v519_v2 }
  0xca   : > { %v603_v26 = vpop.permute.xlu0 %602 }
  0xcb   : > { %v676_v29 = vsel %vm670_vm8, %v667_v25, %v603_v26  ;;  %v551_v30 = vpop.permute.xlu1 %550 }
  0xcc   : > { %1258 = vmatmul.mubr.msk.f32.gmra.mxu0 %vm695_vm9, %v676_v29  ;;  %v660_v35 = vsel %vm652_vm6, %v651_v28, %v551_v30 }
  0xcd   : > { %v669_v44 = vsel %vm661_vm7, %v660_v35, %v551_v30 }
  0xce   : > { %v549_v32 = vpop.permute.xlu0 %548 }
  0xcf   : > { %v659_v34 = vsel %vm652_vm6, %v650_v5, %v549_v32  ;;  %v607_v41 = vpop.permute.xlu1 %606 }
  0xd0   : > { %v668_v42 = vsel %vm661_vm7, %v659_v34, %v549_v32  ;;  %v678_v46 = vsel %vm670_vm8, %v669_v44, %v607_v41 }
  0xd2   : > { %v605_v43 = vpop.permute.xlu0 %604 }
  0xd3   : > { %v677_v45 = vsel %vm670_vm8, %v668_v42, %v605_v43 }
  0xd4   : > { %1260 = vmatprep.mubr.msk.f32.mxu0 %vm695_vm9, %v677_v45 }
  0xd5   : > { %1261 = vmatmul.mubr.msk.f32.gmra.mxu0 %vm695_vm9, %v678_v46 }
  0xe0   : > { %v1267_v48 = vpop.f32.mrf.mxu1 }
  0xe2   : > { %v925_v52 = vpop.f32.mrf.mxu1 }
  0xe6   : > { %v1270_v3 = vpop.f32.mrf.mxu1 }
  0xe8   : > { %v935_v10 = vpop.f32.mrf.mxu1 }
  0xea   : > { %v1273_v63 = vpop.f32.mrf.mxu1 }
  0xec   : > { %v945_v20 = vpop.f32.mrf.mxu1 }
  0xee   : > { %v1276_v1 = vpop.f32.mrf.mxu1 }
  0xf0   : > { %v955_v34 = vpop.f32.mrf.mxu1 }
 0x164   : > { %v1253_v49 = vpop.f32.mrf.mxu0 }
 0x165   : > { %v792_v50 = vadd.f32 %v1253_v49, %v1717_v47 }
 0x166   : > { %v786_v51 = vpop.f32.mrf.mxu0 }
 0x167   : > { %v787_v53 = vadd.f32 %v1717_v47, %v786_v51  ;;  %v965_v54 = vadd.f32 %v1267_v48, %v792_v50 }
 0x169   : > { %v980_v55 = vadd.f32 %v1723_v36, %v965_v54  ;;  %v964_v58 = vadd.f32 %v925_v52, %v787_v53 }
 0x16b   : > { %vm988_vm10 = vcmp.ge.f32.partialorder %v980_v55, 0.0  ;;  %v996_v59 = vmul.f32 0.1, %v980_v55  ;;  %v979_v60 = vadd.f32 %v1723_v36, %v964_v58 }
 0x16d   : > { %v1004_v6 = vsel %vm988_vm10, %v980_v55, %v996_v59  ;;  %vm987_vm11 = vcmp.ge.f32.partialorder %v979_v60, 0.0  ;;  %v995_v62 = vmul.f32 0.1, %v979_v60 }
 0x16e   : > { %v1196_v31 = vadd.f32 -0.4, %v1004_v6 }
 0x16f   : > { %v1003_v24 = vsel %vm987_vm11, %v979_v60, %v995_v62 }
 0x170   : > { %1020 = vst.msk [vmem:[%s1733_s25 + $0x8] sm:$0xff] %vm834_vm1, %v1196_v31  ;;  %v1195_v37 = vadd.f32 -0.4, %v1003_v24 }
 0x172   : > { %1019 = vst.msk [vmem:[%s1733_s25] sm:$0xff] %vm834_vm1, %v1195_v37 }
 0x178   : > { %v1256_v4 = vpop.f32.mrf.mxu0 }
 0x179   : > { %v802_v7 = vadd.f32 %v1256_v4, %v1717_v47 }
 0x17a   : > { %v796_v8 = vpop.f32.mrf.mxu0 }
 0x17b   : > { %v797_v11 = vadd.f32 %v1717_v47, %v796_v8  ;;  %v967_v12 = vadd.f32 %v1270_v3, %v802_v7 }
 0x17d   : > { %v982_v14 = vadd.f32 %v1723_v36, %v967_v12  ;;  %v966_v40 = vadd.f32 %v935_v10, %v797_v11 }
 0x17f   : > { %vm990_vm12 = vcmp.ge.f32.partialorder %v982_v14, 0.0  ;;  %v998_v15 = vmul.f32 0.1, %v982_v14  ;;  %v981_v38 = vadd.f32 %v1723_v36, %v966_v40 }
 0x181   : > { %v1006_v56 = vsel %vm990_vm12, %v982_v14, %v998_v15  ;;  %vm989_vm13 = vcmp.ge.f32.partialorder %v981_v38, 0.0  ;;  %v997_v57 = vmul.f32 0.1, %v981_v38 }
 0x182   : > { %v1198_v16 = vadd.f32 -0.4, %v1006_v56 }
 0x183   : > { %v1005_v17 = vsel %vm989_vm13, %v981_v38, %v997_v57 }
 0x184   : > { %1022 = vst.msk [vmem:[%s1733_s25 + $0x18] sm:$0xff] %vm834_vm1, %v1198_v16  ;;  %v1197_v18 = vadd.f32 -0.4, %v1005_v17 }
 0x186   : > { %1021 = vst.msk [vmem:[%s1733_s25 + $0x10] sm:$0xff] %vm834_vm1, %v1197_v18 }
 0x18c   : > { %v1259_v39 = vpop.f32.mrf.mxu0 }
 0x18d   : > { %v812_v19 = vadd.f32 %v1259_v39, %v1717_v47 }
 0x18e   : > { %v806_v61 = vpop.f32.mrf.mxu0 }
 0x18f   : > { %v807_v21 = vadd.f32 %v1717_v47, %v806_v61  ;;  %v969_v27 = vadd.f32 %v1273_v63, %v812_v19 }
 0x191   : > { %v984_v0 = vadd.f32 %v1723_v36, %v969_v27  ;;  %v968_v2 = vadd.f32 %v945_v20, %v807_v21 }
 0x193   : > { %vm992_vm14 = vcmp.ge.f32.partialorder %v984_v0, 0.0  ;;  %v1000_v22 = vmul.f32 0.1, %v984_v0  ;;  %v983_v9 = vadd.f32 %v1723_v36, %v968_v2 }
 0x195   : > { %v1008_v23 = vsel %vm992_vm14, %v984_v0, %v1000_v22  ;;  %vm991_vm15 = vcmp.ge.f32.partialorder %v983_v9, 0.0  ;;  %v999_v25 = vmul.f32 0.1, %v983_v9  ;;  %v1262_v26 = vpop.f32.mrf.mxu0 }
 0x196   : > { %v1200_v29 = vadd.f32 -0.4, %v1008_v23  ;;  %v822_v30 = vadd.f32 %v1262_v26, %v1717_v47 }
 0x197   : > { %v1007_v13 = vsel %vm991_vm15, %v983_v9, %v999_v25  ;;  %v816_v33 = vpop.f32.mrf.mxu0 }
 0x198   : > { %1024 = vst.msk [vmem:[%s1733_s25 + $0x28] sm:$0xff] %vm834_vm1, %v1200_v29  ;;  %v1199_v5 = vadd.f32 -0.4, %v1007_v13  ;;  %v971_v32 = vadd.f32 %v1276_v1, %v822_v30  ;;  %v817_v28 = vadd.f32 %v1717_v47, %v816_v33 }
 0x19a   : > { %1023 = vst.msk [vmem:[%s1733_s25 + $0x20] sm:$0xff] %vm834_vm1, %v1199_v5  ;;  %v986_v35 = vadd.f32 %v1723_v36, %v971_v32  ;;  %v970_v41 = vadd.f32 %v955_v34, %v817_v28 }
 0x19c   : > { %vm994_vm0 = vcmp.ge.f32.partialorder %v986_v35, 0.0  ;;  %v1002_v42 = vmul.f32 0.1, %v986_v35  ;;  %v985_v43 = vadd.f32 %v1723_v36, %v970_v41 }
 0x19e   : > { %v1010_v44 = vsel %vm994_vm0, %v986_v35, %v1002_v42  ;;  %vm993_vm2 = vcmp.ge.f32.partialorder %v985_v43, 0.0  ;;  %v1001_v45 = vmul.f32 0.1, %v985_v43 }
 0x19f   : > { %v1202_v46 = vadd.f32 -0.4, %v1010_v44 }
 0x1a0   : > { %v1009_v48 = vsel %vm993_vm2, %v985_v43, %v1001_v45 }
 0x1a1   : > { %1026 = vst.msk [vmem:[%s1733_s25 + $0x38] sm:$0xff] %vm834_vm1, %v1202_v46  ;;  %v1201_v49 = vadd.f32 -0.4, %v1009_v48 }
 0x1a3   : > { %1025 = vst.msk [vmem:[%s1733_s25 + $0x30] sm:$0xff] %vm834_vm1, %v1201_v49 }
 0x1a4 PF: > { %s16_s23 = sadd.s32 1, %s1329_s23   ;;  %s1779_s21 = smov %s1325_s22 }
 0x1a5   : > { %p13_p5 = scmp.ge.s32.totalorder %s16_s23, 4   ;;  %s1780_s22 = smov %s1782_s24 }
 0x1a7   :  { %15 = sbr.rel (!%p13_p5) target bundleno = 2 (0x2), region = 79 }

// kernel: res_block_forward.2
= control target key start
LH: loop header
LB: loop body
LE: loop exit
PB: predicated region body
PF: predicated region fallthrough
CT: control target
= control target key end

     0   :  { %s3008_s12 = smov 0   ;;  %s3010_s13 = smov 0   ;;  %s5124_s0 = inlined_call_operand.vmem [shape: f32[2,1,18,18,8], index: 0, kind: input, shape index: {}]   ;;  %s5125_s1 = inlined_call_operand.vmem [shape: f32[72,8], index: 1, kind: input, shape index: {}]   ;;  %s5126_s2 = inlined_call_operand.vmem [shape: f32[1,8], index: 2, kind: input, shape index: {}]   ;;  %s5127_s3 = inlined_call_operand.vmem [shape: f32[2,16,16,8], index: 3, kind: output, shape index: {}]  }
   0x1   :  { %s3012_s14 = smov 0  }
   0x2 LB: > { %s25_s15 = sadd.s32 1, %s2974_s13  ;;  %p2612_p0 = scmp.ge.s32.totalorder %s2978_s14, 1  ;;  %s2978_s14 = sphi %s3012_s14, %s13_s14   ;;  %s2974_s13 = sphi %s3010_s13, %s5399_s13   ;;  %s2970_s12 = sphi %s3008_s12, %s5398_s12  }
   0x3   : > { %p27_p1 = scmp.ge.s32.totalorder %s25_s15, 2  ;;  %p157_p2 = scmp.lt.s32.totalorder %s2978_s14, 3 }
   0x5   : > { %s5401_s15 = smov (%p27_p1, %s25_s15), 0  ;;  %p158_p3 = pnand %p2612_p0, %p157_p2 }
   0x7   : > { %161 = sbr.rel (%p158_p3) target bundleno = 850 (0x352), region = 32 }
   0xc   : > { %p190_p4 = scmp.lt.s32.totalorder %s2970_s12, 1  ;;  %vm404_vm0 = vcmask 1046528   ;;  %s2980_s20 = smov 8   ;;  %vm581_vm1 = vcmask 1045504   ;;  %vm1750_vm2 = vcmask 64512   ;;  %vm1783_vm3 = vcmask 130048  }
   0xd   : > { %s2981_s21 = smov 16   ;;  %s2982_s22 = smov 24   ;;  %vm1816_vm4 = vcmask 195584   ;;  %vm1849_vm5 = vcmask 261120   ;;  %vm1882_vm6 = vcmask 326656   ;;  %vm1915_vm7 = vcmask 392192  }
   0xe   : > { %s5403_s12 = smov (!%p190_p4, %s2970_s12), 1  ;;  %s2983_s23 = smov 32   ;;  %vm1948_vm8 = vcmask 457728   ;;  %vm1981_vm9 = vcmask 523264   ;;  %vm2030_vm10 = vcmask 588800  }
   0xf   : > { %s2905_s16 = smul.u32 432, %s5403_s12  ;;  %s2984_s24 = smov 40  }
  0x10   : > { %s2985_s27 = smov 48   ;;  %s2986_s11 = smov 56  }
  0x11   : > { %s3032_s19 = scalar_lea.vmem %s5124_s0, %s2905_s16  ;;  %s2987_s25 = smov 64  }
  0x12   : > { %v3035_v0 = vld [vmem:[%s3032_s19 + $0x18] sm:$0xff]  ;;  %v3038_v1 = vld [vmem:[%s3032_s19 + $0x20] sm:$0xff]  ;;  %v3048_v5 = vld [vmem:[%s3032_s19 + $0x8] sm:$0xff] }
  0x13   : > { %v3041_v2 = vld [vmem:[%s3032_s19] sm:$0xff]  ;;  %v410_v3 = vrot.slane %v3035_v0, 1  ;;  %v3045_v4 = vrot.slane %v3038_v1, 1  ;;  %v3052_v7 = vld [vmem:[%s3032_s19 + $0x28] sm:$0x3]  ;;  %v406_v8 = vrot.slane %v3048_v5, 1 }
  0x14   : > { %v405_v6 = vrot.slane %v3041_v2, 1  ;;  %v413_v9 = vrot.slane %v3052_v7, 1  ;;  %v3057_v10 = vld [vmem:[%s3032_s19 + $0x10] sm:$0x3]  ;;  %v3060_v11 = vld [vmem:[%s3032_s19 + $0x38] sm:$0xff]  ;;  %v3092_v24 = vld [vmem:[%s3032_s19 + $0x48] sm:$0xff] }
  0x15   : > { %v3064_v12 = vsel %vm404_vm0, %v410_v3, %v3045_v4  ;;  %v408_v13 = vrot.slane %v3057_v10, 1  ;;  %v3068_v14 = vld [vmem:[%s3032_s19 + $0x40] sm:$0x3]  ;;  %v3071_v15 = vld [vmem:[%s3032_s19 + $0x30] sm:$0xff]  ;;  %v3080_v18 = vrot.slane %v3060_v11, 1  ;;  %v420_v29 = vrot.slane %v3092_v24, 1 }
  0x16   : > { %489 = vrot.lane.b32.xlu1 %v3064_v12, %s2980_s20  ;;  %v407_v16 = vsel %vm404_vm0, %v405_v6, %v406_v8  ;;  %v414_v17 = vsel %vm404_vm0, %v3045_v4, %v413_v9  ;;  %v418_v19 = vrot.slane %v3068_v14, 1  ;;  %v415_v21 = vrot.slane %v3071_v15, 1  ;;  %v3086_v22 = vld [vmem:[%s3032_s19 + $0x50] sm:$0xff]  ;;  %v3089_v23 = vld [vmem:[%s3032_s19 + $0x58] sm:$0x3]  ;;  %v3108_v30 = vld [vmem:[%s3032_s19 + $0x68] sm:$0xff] }
  0x17   : > { %485 = vrot.lane.b32.xlu0 %v407_v16, %s2980_s20  ;;  %v409_v20 = vsel %vm404_vm0, %v406_v8, %v408_v13  ;;  %v3099_v26 = vrot.slane %v3086_v22, 1  ;;  %v423_v27 = vrot.slane %v3089_v23, 1  ;;  %v3111_v31 = vld [vmem:[%s3032_s19 + $0x70] sm:$0x3]  ;;  %v3114_v32 = vld [vmem:[%s3032_s19 + $0x60] sm:$0xff]  ;;  %v3122_v34 = vrot.slane %v3108_v30, 1 }
  0x18   : > { %v419_v25 = vsel %vm404_vm0, %v3080_v18, %v418_v19  ;;  %v3104_v28 = vsel %vm404_vm0, %v415_v21, %v3080_v18  ;;  %v428_v35 = vrot.slane %v3111_v31, 1  ;;  %v425_v37 = vrot.slane %v3114_v32, 1  ;;  %v3131_v38 = vld [vmem:[%s3032_s19 + $0x80] sm:$0xff]  ;;  %v3134_v39 = vld [vmem:[%s3032_s19 + $0x88] sm:$0x3]  ;;  %v3137_v40 = vld [vmem:[%s3032_s19 + $0x78] sm:$0xff] }
  0x19   : > { %v424_v33 = vsel %vm404_vm0, %v3099_v26, %v423_v27  ;;  %5185 = vst [vmem:[#allocation2_spill] sm:$0xff] %v3122_v34  ;;  %v3127_v36 = vsel %vm404_vm0, %v420_v29, %v3099_v26  ;;  %v3145_v42 = vrot.slane %v3131_v38, 1  ;;  %v433_v43 = vrot.slane %v3134_v39, 1  ;;  %v3154_v46 = vld [vmem:[%s3032_s19 + $0x98] sm:$0xff]  ;;  %v3157_v47 = vld [vmem:[%s3032_s19 + $0xa0] sm:$0x3] }
  0x1a   : > { %491 = vrot.lane.b32.xlu1 %v414_v17, %s2980_s20  ;;  %5186 = vst [vmem:[#allocation3_spill] sm:$0xff] %v3127_v36  ;;  %v429_v41 = vsel %vm404_vm0, %v3122_v34, %v428_v35  ;;  %v3150_v44 = vsel %vm404_vm0, %v425_v37, %v3122_v34  ;;  %v430_v45 = vrot.slane %v3137_v40, 1  ;;  %v3160_v48 = vld [vmem:[%s3032_s19 + $0x90] sm:$0xff]  ;;  %v3168_v50 = vrot.slane %v3154_v46, 1  ;;  %v3180_v55 = vld [vmem:[%s3032_s19 + $0xb8] sm:$0x3] }
  0x1b   : > { %487 = vrot.lane.b32.xlu0 %v409_v20, %s2980_s20  ;;  %5187 = vst [vmem:[#allocation4_spill] sm:$0xff] %v3145_v42  ;;  %5188 = vst [vmem:[#allocation5_spill] sm:$0xff] %v3150_v44  ;;  %v434_v49 = vsel %vm404_vm0, %v3145_v42, %v433_v43  ;;  %v438_v51 = vrot.slane %v3157_v47, 1  ;;  %v435_v53 = vrot.slane %v3160_v48, 1  ;;  %v3177_v54 = vld [vmem:[%s3032_s19 + $0xb0] sm:$0xff]  ;;  %v3183_v56 = vld [vmem:[%s3032_s19 + $0xa8] sm:$0xff] }
  0x1c   : > { %5189 = vst [vmem:[#allocation6_spill] sm:$0xff] %v3168_v50  ;;  %v3173_v52 = vsel %vm404_vm0, %v430_v45, %v3145_v42  ;;  %v3191_v58 = vrot.slane %v3177_v54, 1  ;;  %v443_v59 = vrot.slane %v3180_v55, 1  ;;  %v440_v61 = vrot.slane %v3183_v56, 1  ;;  %v3200_v62 = vld [vmem:[%s3032_s19 + $0xc8] sm:$0xff]  ;;  %v3206_v3 = vld [vmem:[%s3032_s19 + $0xc0] sm:$0xff] }
  0x1d   : > { %5190 = vst [vmem:[#allocation7_spill] sm:$0xff] %v3173_v52  ;;  %v439_v57 = vsel %vm404_vm0, %v3168_v50, %v438_v51  ;;  %v3196_v60 = vsel %vm404_vm0, %v435_v53, %v3168_v50  ;;  %v3203_v63 = vld [vmem:[%s3032_s19 + $0xd0] sm:$0x3]  ;;  %v3214_v8 = vrot.slane %v3200_v62, 1  ;;  %v445_v16 = vrot.slane %v3206_v3, 1  ;;  %v3223_v17 = vld [vmem:[%s3032_s19 + $0xe0] sm:$0xff] }
  0x1e   : > { %495 = vrot.lane.b32.xlu1 %v419_v25, %s2980_s20  ;;  %5191 = vst [vmem:[#allocation8_spill] sm:$0xff] %v3191_v58  ;;  %5192 = vst [vmem:[#allocation9_spill] sm:$0xff] %v3196_v60  ;;  %v444_v6 = vsel %vm404_vm0, %v3191_v58, %v443_v59  ;;  %v448_v9 = vrot.slane %v3203_v63, 1  ;;  %v3219_v13 = vsel %vm404_vm0, %v440_v61, %v3191_v58  ;;  %v3226_v19 = vld [vmem:[%s3032_s19 + $0xe8] sm:$0x3]  ;;  %v3229_v20 = vld [vmem:[%s3032_s19 + $0xd8] sm:$0xff] }
  0x1f   : > { %493 = vrot.lane.b32.xlu0 %v3104_v28, %s2980_s20  ;;  %5193 = vst [vmem:[#allocation10_spill] sm:$0xff] %v3214_v8  ;;  %5194 = vst [vmem:[#allocation11_spill] sm:$0xff] %v3219_v13  ;;  %v3237_v25 = vrot.slane %v3223_v17, 1  ;;  %v453_v27 = vrot.slane %v3226_v19, 1  ;;  %v3242_v29 = vsel %vm404_vm0, %v445_v16, %v3214_v8  ;;  %v3246_v35 = vld [vmem:[%s3032_s19 + $0xf8] sm:$0xff]  ;;  %v3275_v61 = vld [vmem:[%s3032_s19 + $0x108] sm:$0xff] }
  0x20   : > { %v449_v21 = vsel %vm404_vm0, %v3214_v8, %v448_v9  ;;  %5196 = vst [vmem:[#allocation13_spill] sm:$0xff] %v3242_v29  ;;  %v3249_v37 = vld [vmem:[%s3032_s19 + $0x100] sm:$0x3]  ;;  %v3260_v45 = vrot.slane %v3246_v35, 1  ;;  %v3272_v59 = vld [vmem:[%s3032_s19 + $0x118] sm:$0x3] }
  0x21   : > { %5195 = vst [vmem:[#allocation12_spill] sm:$0xff] %v3237_v25  ;;  %v454_v43 = vsel %vm404_vm0, %v3237_v25, %v453_v27  ;;  %5201 = vst [vmem:[#allocation18_spill] sm:$0xff] %v3275_v61  ;;  %v463_v16 = vrot.slane %v3272_v59, 1  ;;  %v460_v27 = vrot.slane %v3275_v61, 1  ;;  %v3298_v8 = vld [vmem:[%s3032_s19 + $0x120] sm:$0xff]  ;;  %v3361_v42 = vld [vmem:[%s3032_s19 + $0x170] sm:$0xff] }
  0x22   : > { %499 = vrot.lane.b32.xlu1 %v424_v33, %s2980_s20  ;;  %v450_v33 = vrot.slane %v3229_v20, 1  ;;  %5198 = vst [vmem:[#allocation15_spill] sm:$0xff] %v3260_v45 }
  0x23   : > { %497 = vrot.lane.b32.xlu0 %v3127_v36, %s2980_s20 }
  0x24   : > { %v3265_v51 = vsel %vm404_vm0, %v450_v33, %v3237_v25  ;;  %v3292_v33 = vld [vmem:[%s3032_s19 + $0x128] sm:$0xff]  ;;  %v3321_v25 = vld [vmem:[%s3032_s19 + $0x138] sm:$0xff] }
  0x25   : > { %5199 = vst [vmem:[#allocation16_spill] sm:$0xff] %v3265_v51  ;;  %5204 = vst [vmem:[#allocation21_spill] sm:$0xff] %v3292_v33 }
  0x26   : > { %503 = vrot.lane.b32.xlu1 %v429_v41, %s2980_s20  ;;  %v3252_v41 = vld [vmem:[%s3032_s19 + $0xf0] sm:$0xff] }
  0x27   : > { %501 = vrot.lane.b32.xlu0 %v3150_v44, %s2980_s20  ;;  %5197 = vst [vmem:[#allocation14_spill] sm:$0xff] %v3252_v41  ;;  %v455_v53 = vrot.slane %v3252_v41, 1  ;;  %v3367_v44 = vld [vmem:[%s3032_s19 + $0x168] sm:$0xff] }
  0x28   : > { %v480_v34 = vrot.slane %v3367_v44, 1 }
  0x2a   : > { %507 = vrot.lane.b32.xlu1 %v434_v49, %s2980_s20  ;;  %v458_v49 = vrot.slane %v3249_v37, 1 }
  0x2b   : > { %505 = vrot.lane.b32.xlu0 %v3173_v52, %s2980_s20 }
  0x2e   : > { %511 = vrot.lane.b32.xlu1 %v439_v57, %s2980_s20  ;;  %v3269_v57 = vld [vmem:[%s3032_s19 + $0x110] sm:$0xff] }
  0x2f   : > { %509 = vrot.lane.b32.xlu0 %v3196_v60, %s2980_s20  ;;  %5200 = vst [vmem:[#allocation17_spill] sm:$0xff] %v3269_v57  ;;  %v3283_v9 = vrot.slane %v3269_v57, 1  ;;  %v3344_v60 = vld [vmem:[%s3032_s19 + $0x150] sm:$0xff] }
  0x30   : > { %v475_v52 = vrot.slane %v3344_v60, 1 }
  0x31   : > { %5202 = vst [vmem:[#allocation19_spill] sm:$0xff] %v3283_v9  ;;  %v3311_v58 = vsel %vm404_vm0, %v460_v27, %v3283_v9 }
  0x32   : > { %515 = vrot.lane.b32.xlu1 %v444_v6, %s2980_s20  ;;  %v459_v6 = vsel %vm404_vm0, %v3260_v45, %v458_v49  ;;  %v464_v49 = vsel %vm404_vm0, %v3283_v9, %v463_v16  ;;  %5206 = vst [vmem:[#allocation23_spill] sm:$0xff] %v3311_v58 }
  0x33   : > { %513 = vrot.lane.b32.xlu0 %v3219_v13, %s2980_s20 }
  0x36   : > { %519 = vrot.lane.b32.xlu1 %v449_v21, %s2980_s20  ;;  %v3288_v21 = vsel %vm404_vm0, %v455_v53, %v3260_v45  ;;  %v3306_v53 = vrot.slane %v3292_v33, 1  ;;  %v3315_v45 = vld [vmem:[%s3032_s19 + $0x140] sm:$0xff] }
  0x37   : > { %517 = vrot.lane.b32.xlu0 %v3242_v29, %s2980_s20  ;;  %5203 = vst [vmem:[#allocation20_spill] sm:$0xff] %v3288_v21  ;;  %v3329_v27 = vrot.slane %v3315_v45, 1 }
  0x38   : > { %5205 = vst [vmem:[#allocation22_spill] sm:$0xff] %v3306_v53 }
  0x39   : > { %5207 = vst [vmem:[#allocation24_spill] sm:$0xff] %v3329_v27 }
  0x3a   : > { %523 = vrot.lane.b32.xlu1 %v454_v43, %s2980_s20  ;;  %v3295_v43 = vld [vmem:[%s3032_s19 + $0x130] sm:$0x3] }
  0x3b   : > { %521 = vrot.lane.b32.xlu0 %v3265_v51, %s2980_s20  ;;  %v468_v29 = vrot.slane %v3295_v43, 1  ;;  %v3338_v51 = vld [vmem:[%s3032_s19 + $0x158] sm:$0xff] }
  0x3c   : > { %v3352_v50 = vrot.slane %v3338_v51, 1 }
  0x3d   : > { %v469_v16 = vsel %vm404_vm0, %v3306_v53, %v468_v29 }
  0x3e   : > { %527 = vrot.lane.b32.xlu1 %v459_v6, %s2980_s20  ;;  %v465_v6 = vrot.slane %v3298_v8, 1  ;;  %5209 = vst [vmem:[#allocation26_spill] sm:$0xff] %v3352_v50 }
  0x3f   : > { %525 = vrot.lane.b32.xlu0 %v3288_v21, %s2980_s20  ;;  %v3318_v21 = vld [vmem:[%s3032_s19 + $0x148] sm:$0x3] }
  0x40   : > { %v473_v9 = vrot.slane %v3318_v21, 1  ;;  %v3334_v13 = vsel %vm404_vm0, %v465_v6, %v3306_v53 }
  0x41   : > { %5208 = vst [vmem:[#allocation25_spill] sm:$0xff] %v3334_v13 }
  0x42   : > { %531 = vrot.lane.b32.xlu1 %v464_v49, %s2980_s20  ;;  %v470_v49 = vrot.slane %v3321_v25, 1  ;;  %v474_v29 = vsel %vm404_vm0, %v3329_v27, %v473_v9 }
  0x43   : > { %529 = vrot.lane.b32.xlu0 %v3311_v58, %s2980_s20  ;;  %v3341_v58 = vld [vmem:[%s3032_s19 + $0x160] sm:$0x3] }
  0x44   : > { %v478_v6 = vrot.slane %v3341_v58, 1  ;;  %v3357_v53 = vsel %vm404_vm0, %v470_v49, %v3329_v27  ;;  %v3380_v27 = vsel %vm404_vm0, %v475_v52, %v3352_v50  ;;  %v582_v52 = vrot.slane %v3041_v2, 2 }
  0x45   : > { %5210 = vst [vmem:[#allocation27_spill] sm:$0xff] %v3357_v53  ;;  %5212 = vst [vmem:[#allocation29_spill] sm:$0xff] %v3380_v27 }
  0x46   : > { %535 = vrot.lane.b32.xlu1 %v469_v16, %s2980_s20  ;;  %v3364_v16 = vld [vmem:[%s3032_s19 + $0x178] sm:$0x3]  ;;  %v479_v9 = vsel %vm404_vm0, %v3352_v50, %v478_v6  ;;  %v583_v6 = vrot.slane %v3048_v5, 2  ;;  %v590_v5 = vrot.slane %v3052_v7, 2  ;;  %v620_v50 = vrot.slane %v3180_v55, 2 }
  0x47   : > { %533 = vrot.lane.b32.xlu0 %v3334_v13, %s2980_s20  ;;  %v3375_v13 = vrot.slane %v3361_v42, 1  ;;  %v483_v49 = vrot.slane %v3364_v16, 1 }
  0x49   : > { %5211 = vst [vmem:[#allocation28_spill] sm:$0xff] %v3375_v13  ;;  %v3392_v36 = vsel %vm404_vm0, %v480_v34, %v3375_v13  ;;  %v587_v34 = vrot.slane %v3035_v0, 2 }
  0x4a   : > { %539 = vrot.lane.b32.xlu1 %v474_v29, %s2980_s20  ;;  %v484_v29 = vsel %vm404_vm0, %v3375_v13, %v483_v49  ;;  %5213 = vst [vmem:[#allocation30_spill] sm:$0xff] %v3392_v36  ;;  %v3400_v49 = vrot.slane %v3038_v1, 2  ;;  %v610_v13 = vrot.slane %v3134_v39, 2 }
  0x4b   : > { %537 = vrot.lane.b32.xlu0 %v3357_v53, %s2980_s20  ;;  %v585_v53 = vrot.slane %v3057_v10, 2  ;;  %v584_v10 = vsel %vm581_vm1, %v582_v52, %v583_v6 }
  0x4c   : > { %v591_v2 = vsel %vm581_vm1, %v3400_v49, %v590_v5  ;;  %v3415_v7 = vsel %vm581_vm1, %v587_v34, %v3400_v49  ;;  %v600_v5 = vrot.slane %v3089_v23, 2 }
  0x4e   : > { %543 = vrot.lane.b32.xlu1 %v479_v9, %s2980_s20  ;;  %v586_v9 = vsel %vm581_vm1, %v583_v6, %v585_v53  ;;  %v595_v53 = vrot.slane %v3068_v14, 2  ;;  %v592_v6 = vrot.slane %v3071_v15, 2 }
  0x4f   : > { %541 = vrot.lane.b32.xlu0 %v3380_v27, %s2980_s20  ;;  %v625_v27 = vrot.slane %v3203_v63, 2 }
  0x52   : > { %547 = vrot.lane.b32.xlu1 %v484_v29, %s2980_s20  ;;  %v3410_v29 = vrot.slane %v3060_v11, 2 }
  0x53   : > { %545 = vrot.lane.b32.xlu0 %v3392_v36, %s2980_s20  ;;  %v615_v36 = vrot.slane %v3157_v47, 2 }
  0x54   : > { %v596_v52 = vsel %vm581_vm1, %v3410_v29, %v595_v53  ;;  %v3429_v14 = vsel %vm581_vm1, %v592_v6, %v3410_v29  ;;  %v605_v53 = vrot.slane %v3111_v31, 2  ;;  %v602_v6 = vrot.slane %v3114_v32, 2 }
  0x56   : > { %664 = vrot.lane.b32.xlu1 %v586_v9, %s2981_s21  ;;  %v3424_v9 = vrot.slane %v3086_v22, 2 }
  0x57   : > { %662 = vrot.lane.b32.xlu0 %v584_v10, %s2981_s21  ;;  %v597_v10 = vrot.slane %v3092_v24, 2 }
  0x58   : > { %5214 = vst [vmem:[#allocation31_spill] sm:$0xff] %v3424_v9  ;;  %v601_v34 = vsel %vm581_vm1, %v3424_v9, %v600_v5  ;;  %v3452_v5 = vrot.slane %v3131_v38, 2 }
  0x59   : > { %v3443_v23 = vsel %vm581_vm1, %v597_v10, %v3424_v9  ;;  %v607_v10 = vrot.slane %v3137_v40, 2 }
  0x5a   : > { %668 = vrot.lane.b32.xlu1 %v591_v2, %s2981_s21  ;;  %v3438_v2 = vrot.slane %v3108_v30, 2  ;;  %5216 = vst [vmem:[#allocation33_spill] sm:$0xff] %v3443_v23  ;;  %5217 = vst [vmem:[#allocation34_spill] sm:$0xff] %v3452_v5 }
  0x5b   : > { %666 = vrot.lane.b32.xlu0 %v3415_v7, %s2981_s21  ;;  %v3471_v39 = vsel %vm581_vm1, %v607_v10, %v3452_v5  ;;  %v617_v10 = vrot.slane %v3183_v56, 2 }
  0x5c   : > { %5215 = vst [vmem:[#allocation32_spill] sm:$0xff] %v3438_v2  ;;  %v3457_v31 = vsel %vm581_vm1, %v602_v6, %v3438_v2  ;;  %5220 = vst [vmem:[#allocation37_spill] sm:$0xff] %v3471_v39  ;;  %v612_v6 = vrot.slane %v3160_v48, 2 }
  0x5d   : > { %5218 = vst [vmem:[#allocation35_spill] sm:$0xff] %v3457_v31 }
  0x5e   : > { %672 = vrot.lane.b32.xlu1 %v596_v52, %s2981_s21  ;;  %v606_v52 = vsel %vm581_vm1, %v3438_v2, %v605_v53  ;;  %v3466_v53 = vrot.slane %v3154_v46, 2 }
  0x5f   : > { %670 = vrot.lane.b32.xlu0 %v3429_v14, %s2981_s21 }
  0x60   : > { %5219 = vst [vmem:[#allocation36_spill] sm:$0xff] %v3466_v53  ;;  %v3485_v47 = vsel %vm581_vm1, %v612_v6, %v3466_v53  ;;  %v622_v6 = vrot.slane %v3206_v3, 2 }
  0x61   : > { %5222 = vst [vmem:[#allocation39_spill] sm:$0xff] %v3485_v47 }
  0x62   : > { %676 = vrot.lane.b32.xlu1 %v601_v34, %s2981_s21  ;;  %v611_v34 = vsel %vm581_vm1, %v3452_v5, %v610_v13  ;;  %v3480_v13 = vrot.slane %v3177_v54, 2  ;;  %v652_v5 = vrot.slane %v3344_v60, 2 }
  0x63   : > { %674 = vrot.lane.b32.xlu0 %v3443_v23, %s2981_s21 }
  0x64   : > { %5221 = vst [vmem:[#allocation38_spill] sm:$0xff] %v3480_v13  ;;  %v3499_v55 = vsel %vm581_vm1, %v617_v10, %v3480_v13  ;;  %v627_v10 = vrot.slane %v3229_v20, 2 }
  0x65   : > { %5224 = vst [vmem:[#allocation41_spill] sm:$0xff] %v3499_v55 }
  0x66   : > { %680 = vrot.lane.b32.xlu1 %v606_v52, %s2981_s21  ;;  %v616_v52 = vsel %vm581_vm1, %v3466_v53, %v615_v36  ;;  %v3494_v36 = vrot.slane %v3200_v62, 2  ;;  %v630_v53 = vrot.slane %v3226_v19, 2 }
  0x67   : > { %678 = vrot.lane.b32.xlu0 %v3457_v31, %s2981_s21 }
  0x68   : > { %5223 = vst [vmem:[#allocation40_spill] sm:$0xff] %v3494_v36  ;;  %v3513_v63 = vsel %vm581_vm1, %v622_v6, %v3494_v36  ;;  %v632_v6 = vrot.slane %v3252_v41, 2 }
  0x69   : > { %5225 = vst [vmem:[#allocation42_spill] sm:$0xff] %v3513_v63 }
  0x6a   : > { %684 = vrot.lane.b32.xlu1 %v611_v34, %s2981_s21  ;;  %v621_v34 = vsel %vm581_vm1, %v3480_v13, %v620_v50  ;;  %v3508_v50 = vrot.slane %v3223_v17, 2  ;;  %v635_v13 = vrot.slane %v3249_v37, 2 }
  0x6b   : > { %682 = vrot.lane.b32.xlu0 %v3471_v39, %s2981_s21 }
  0x6c   : > { %v3527_v19 = vsel %vm581_vm1, %v627_v10, %v3508_v50  ;;  %v637_v10 = vrot.slane %v3275_v61, 2 }
  0x6e   : > { %688 = vrot.lane.b32.xlu1 %v616_v52, %s2981_s21  ;;  %v626_v52 = vsel %vm581_vm1, %v3494_v36, %v625_v27  ;;  %v3522_v27 = vrot.slane %v3246_v35, 2  ;;  %v640_v36 = vrot.slane %v3272_v59, 2 }
  0x6f   : > { %686 = vrot.lane.b32.xlu0 %v3485_v47, %s2981_s21  ;;  %v655_v47 = vrot.slane %v3341_v58, 2  ;;  %v3596_v58 = vrot.slane %v3361_v42, 2 }
  0x70   : > { %v3541_v37 = vsel %vm581_vm1, %v632_v6, %v3522_v27  ;;  %v642_v6 = vrot.slane %v3298_v8, 2 }
  0x71   : > { %5235 = vst [vmem:[#allocation52_spill] sm:$0xff] %v3596_v58 }
  0x72   : > { %692 = vrot.lane.b32.xlu1 %v621_v34, %s2981_s21  ;;  %v631_v34 = vsel %vm581_vm1, %v3508_v50, %v630_v53  ;;  %v3536_v53 = vrot.slane %v3269_v57, 2 }
  0x73   : > { %690 = vrot.lane.b32.xlu0 %v3499_v55, %s2981_s21  ;;  %v650_v55 = vrot.slane %v3318_v21, 2 }
  0x74   : > { %5226 = vst [vmem:[#allocation43_spill] sm:$0xff] %v3536_v53  ;;  %v3555_v59 = vsel %vm581_vm1, %v637_v10, %v3536_v53  ;;  %v647_v10 = vrot.slane %v3321_v25, 2 }
  0x75   : > { %5228 = vst [vmem:[#allocation45_spill] sm:$0xff] %v3555_v59 }
  0x76   : > { %696 = vrot.lane.b32.xlu1 %v626_v52, %s2981_s21  ;;  %v636_v52 = vsel %vm581_vm1, %v3522_v27, %v635_v13  ;;  %v3550_v13 = vrot.slane %v3292_v33, 2 }
  0x77   : > { %694 = vrot.lane.b32.xlu0 %v3513_v63, %s2981_s21  ;;  %v645_v63 = vrot.slane %v3295_v43, 2 }
  0x78   : > { %5227 = vst [vmem:[#allocation44_spill] sm:$0xff] %v3550_v13  ;;  %v3569_v43 = vsel %vm581_vm1, %v642_v6, %v3550_v13 }
  0x79   : > { %5230 = vst [vmem:[#allocation47_spill] sm:$0xff] %v3569_v43 }
  0x7a   : > { %700 = vrot.lane.b32.xlu1 %v631_v34, %s2981_s21  ;;  %v641_v34 = vsel %vm581_vm1, %v3536_v53, %v640_v36  ;;  %v3564_v36 = vrot.slane %v3315_v45, 2 }
  0x7b   : > { %698 = vrot.lane.b32.xlu0 %v3527_v19, %s2981_s21 }
  0x7c   : > { %5229 = vst [vmem:[#allocation46_spill] sm:$0xff] %v3564_v36  ;;  %v3585_v6 = vsel %vm581_vm1, %v647_v10, %v3564_v36 }
  0x7d   : > { %5233 = vst [vmem:[#allocation50_spill] sm:$0xff] %v3585_v6 }
  0x7e   : > { %704 = vrot.lane.b32.xlu1 %v636_v52, %s2981_s21  ;;  %v646_v52 = vsel %vm581_vm1, %v3550_v13, %v645_v63  ;;  %v3578_v63 = vrot.slane %v3338_v51, 2 }
  0x7f   : > { %702 = vrot.lane.b32.xlu0 %v3541_v37, %s2981_s21 }
  0x80   : > { %5231 = vst [vmem:[#allocation48_spill] sm:$0xff] %v3578_v63  ;;  %v3603_v10 = vsel %vm581_vm1, %v652_v5, %v3578_v63 }
  0x81   : > { %5237 = vst [vmem:[#allocation54_spill] sm:$0xff] %v3603_v10 }
  0x82   : > { %708 = vrot.lane.b32.xlu1 %v641_v34, %s2981_s21  ;;  %v651_v34 = vsel %vm581_vm1, %v3564_v36, %v650_v55  ;;  %v656_v55 = vsel %vm581_vm1, %v3578_v63, %v655_v47  ;;  %v657_v36 = vrot.slane %v3367_v44, 2 }
  0x83   : > { %706 = vrot.lane.b32.xlu0 %v3555_v59, %s2981_s21 }
  0x86   : > { %712 = vrot.lane.b32.xlu1 %v646_v52, %s2981_s21 }
  0x87   : > { %710 = vrot.lane.b32.xlu0 %v3569_v43, %s2981_s21 }
  0x88   : > { %v3581_v21 = vpop.permute.xlu1 %489 }
  0x89   : > { %5232 = vst [vmem:[#allocation49_spill] sm:$0xff] %v3581_v21  ;;  %v3588_v52 = vpop.permute.xlu0 %485  ;;  %v660_v21 = vrot.slane %v3364_v16, 2  ;;  %v3617_v16 = vsel %vm581_vm1, %v657_v36, %v3596_v58 }
  0x8a   : > { %5234 = vst [vmem:[#allocation51_spill] sm:$0xff] %v3588_v52  ;;  %716 = vrot.lane.b32.xlu1 %v651_v34, %s2981_s21  ;;  %5239 = vst [vmem:[#allocation56_spill] sm:$0xff] %v3617_v16 }
  0x8b   : > { %714 = vrot.lane.b32.xlu0 %v3585_v6, %s2981_s21  ;;  %v661_v47 = vsel %vm581_vm1, %v3596_v58, %v660_v21 }
  0x8c   : > { %v3599_v39 = vpop.permute.xlu1 %491 }
  0x8d   : > { %5236 = vst [vmem:[#allocation53_spill] sm:$0xff] %v3599_v39  ;;  %v3606_v34 = vpop.permute.xlu0 %487 }
  0x8e   : > { %5238 = vst [vmem:[#allocation55_spill] sm:$0xff] %v3606_v34  ;;  %720 = vrot.lane.b32.xlu1 %v656_v55, %s2981_s21 }
  0x8f   : > { %718 = vrot.lane.b32.xlu0 %v3603_v10, %s2981_s21 }
  0x90   : > { %v3613_v6 = vpop.permute.xlu1 %495 }
  0x91   : > { %v3619_v5 = vpop.permute.xlu0 %493 }
  0x92   : > { %724 = vrot.lane.b32.xlu1 %v661_v47, %s2981_s21 }
  0x93   : > { %722 = vrot.lane.b32.xlu0 %v3617_v16, %s2981_s21 }
  0x94   : > { %v3624_v55 = vpop.permute.xlu1 %499 }
  0x95   : > { %v3626_v63 = vpop.permute.xlu0 %497 }
  0x96   : > { %792 = vrot.lane.b32.xlu1 %v3038_v1, %s2982_s22 }
  0x97   : > { %790 = vrot.lane.b32.xlu0 %v3035_v0, %s2982_s22 }
  0x98   : > { %v3632_v36 = vpop.permute.xlu1 %503 }
  0x99   : > { %v3634_v21 = vpop.permute.xlu0 %501 }
  0x9a   : > { %796 = vrot.lane.b32.xlu1 %v3060_v11, %s2982_s22 }
  0x9b   : > { %794 = vrot.lane.b32.xlu0 %v3071_v15, %s2982_s22 }
  0x9c   : > { %v3640_v47 = vpop.permute.xlu1 %507 }
  0x9d   : > { %v3642_v58 = vpop.permute.xlu0 %505 }
  0x9e   : > { %800 = vrot.lane.b32.xlu1 %v3086_v22, %s2982_s22 }
  0x9f   : > { %798 = vrot.lane.b32.xlu0 %v3092_v24, %s2982_s22 }
  0xa0   : > { %v3648_v0 = vpop.permute.xlu1 %511 }
  0xa1   : > { %v3650_v1 = vpop.permute.xlu0 %509 }
  0xa2   : > { %804 = vrot.lane.b32.xlu1 %v3108_v30, %s2982_s22 }
  0xa3   : > { %802 = vrot.lane.b32.xlu0 %v3114_v32, %s2982_s22 }
  0xa4   : > { %v3656_v16 = vpop.permute.xlu1 %515 }
  0xa5   : > { %v3658_v10 = vpop.permute.xlu0 %513 }
  0xa6   : > { %808 = vrot.lane.b32.xlu1 %v3131_v38, %s2982_s22 }
  0xa7   : > { %806 = vrot.lane.b32.xlu0 %v3137_v40, %s2982_s22 }
  0xa8   : > { %v3664_v39 = vpop.permute.xlu1 %519 }
  0xa9   : > { %5240 = vst [vmem:[#allocation57_spill] sm:$0xff] %v3664_v39  ;;  %v3666_v34 = vpop.permute.xlu0 %517 }
  0xaa   : > { %5241 = vst [vmem:[#allocation58_spill] sm:$0xff] %v3666_v34  ;;  %812 = vrot.lane.b32.xlu1 %v3154_v46, %s2982_s22 }
  0xab   : > { %810 = vrot.lane.b32.xlu0 %v3160_v48, %s2982_s22 }
  0xac   : > { %v3672_v52 = vpop.permute.xlu1 %523 }
  0xad   : > { %5242 = vst [vmem:[#allocation59_spill] sm:$0xff] %v3672_v52  ;;  %v3674_v13 = vpop.permute.xlu0 %521 }
  0xae   : > { %5243 = vst [vmem:[#allocation60_spill] sm:$0xff] %v3674_v13  ;;  %816 = vrot.lane.b32.xlu1 %v3177_v54, %s2982_s22 }
  0xaf   : > { %814 = vrot.lane.b32.xlu0 %v3183_v56, %s2982_s22 }
  0xb0   : > { %v3680_v2 = vpop.permute.xlu1 %527 }
  0xb1   : > { %v3682_v39 = vpop.permute.xlu0 %525 }
  0xb2   : > { %820 = vrot.lane.b32.xlu1 %v3200_v62, %s2982_s22 }
  0xb3   : > { %818 = vrot.lane.b32.xlu0 %v3206_v3, %s2982_s22 }
  0xb4   : > { %v3688_v34 = vpop.permute.xlu1 %531 }
  0xb5   : > { %5244 = vst [vmem:[#allocation61_spill] sm:$0xff] %v3688_v34  ;;  %v3690_v52 = vpop.permute.xlu0 %529 }
  0xb6   : > { %5245 = vst [vmem:[#allocation62_spill] sm:$0xff] %v3690_v52  ;;  %824 = vrot.lane.b32.xlu1 %v3223_v17, %s2982_s22  ;;  %v2015_v52 = vld [vmem:[%s5125_s1 + $0x8] sm:$0xff] }
  0xb7   : > { %822 = vrot.lane.b32.xlu0 %v3229_v20, %s2982_s22 }
  0xb8   : > { %v3696_v13 = vpop.permute.xlu1 %535 }
  0xb9   : > { %5246 = vst [vmem:[#allocation63_spill] sm:$0xff] %v3696_v13  ;;  %v3698_v43 = vpop.permute.xlu0 %533 }
  0xba   : > { %5247 = vst [vmem:[#allocation64_spill] sm:$0xff] %v3698_v43  ;;  %828 = vrot.lane.b32.xlu1 %v3246_v35, %s2982_s22 }
  0xbb   : > { %826 = vrot.lane.b32.xlu0 %v3252_v41, %s2982_s22 }
  0xbc   : > { %v3704_v62 = vpop.permute.xlu1 %539 }
  0xbd   : > { %5248 = vst [vmem:[#allocation65_spill] sm:$0xff] %v3704_v62  ;;  %v3706_v3 = vpop.permute.xlu0 %537  ;;  %v5261_v62 = vld [vmem:[#allocation3_spill] sm:$0xff] }
  0xbe   : > { %5249 = vst [vmem:[#allocation66_spill] sm:$0xff] %v3706_v3  ;;  %832 = vrot.lane.b32.xlu1 %v3269_v57, %s2982_s22 }
  0xbf   : > { %830 = vrot.lane.b32.xlu0 %v3275_v61, %s2982_s22 }
  0xc0   : > { %v3712_v17 = vpop.permute.xlu1 %543 }
  0xc1   : > { %5250 = vst [vmem:[#allocation67_spill] sm:$0xff] %v3712_v17  ;;  %v3714_v20 = vpop.permute.xlu0 %541 }
  0xc2   : > { %5251 = vst [vmem:[#allocation68_spill] sm:$0xff] %v3714_v20  ;;  %836 = vrot.lane.b32.xlu1 %v3292_v33, %s2982_s22 }
  0xc3   : > { %834 = vrot.lane.b32.xlu0 %v3298_v8, %s2982_s22 }
  0xc4   : > { %v3720_v31 = vpop.permute.xlu1 %547 }
  0xc5   : > { %5252 = vst [vmem:[#allocation69_spill] sm:$0xff] %v3720_v31  ;;  %v3722_v53 = vpop.permute.xlu0 %545 }
  0xc6   : > { %5253 = vst [vmem:[#allocation70_spill] sm:$0xff] %v3722_v53  ;;  %840 = vrot.lane.b32.xlu1 %v3315_v45, %s2982_s22  ;;  %v3739_v53 = vld [vmem:[%s3032_s19 + $0x28] sm:$0x3] }
  0xc7   : > { %838 = vrot.lane.b32.xlu0 %v3321_v25, %s2982_s22  ;;  %v2662_v25 = vld [vmem:[%s3032_s19 + $0x188] sm:$0xff]  ;;  %v905_v45 = vrot.slane %v3739_v53, 1 }
  0xc8   : > { %v3728_v20 = vpop.permute.xlu1 %664 }
  0xc9   : > { %5254 = vst [vmem:[#allocation71_spill] sm:$0xff] %v3728_v20  ;;  %v3730_v17 = vpop.permute.xlu0 %662  ;;  %v2661_v20 = vld [vmem:[%s3032_s19 + $0x180] sm:$0xff] }
  0xca   : > { %5255 = vst [vmem:[#allocation72_spill] sm:$0xff] %v3730_v17  ;;  %844 = vrot.lane.b32.xlu1 %v3338_v51, %s2982_s22  ;;  %v3765_v17 = vld [vmem:[%s3032_s19 + $0x58] sm:$0x3] }
  0xcb   : > { %842 = vrot.lane.b32.xlu0 %v3344_v60, %s2982_s22  ;;  %v3753_v60 = vld [vmem:[%s3032_s19 + $0x40] sm:$0x3]  ;;  %5258 = vst [vmem:[#allocation75_spill] sm:$0xff] %v3765_v17 }
  0xcc   : > { %v3736_v8 = vpop.permute.xlu1 %668 }
  0xcd   : > { %5256 = vst [vmem:[#allocation73_spill] sm:$0xff] %v3736_v8  ;;  %v3741_v31 = vpop.permute.xlu0 %666 }
  0xce   : > { %5257 = vst [vmem:[#allocation74_spill] sm:$0xff] %v3741_v31  ;;  %848 = vrot.lane.b32.xlu1 %v3361_v42, %s2982_s22  ;;  %v906_v42 = vsel %vm404_vm0, %v3045_v4, %v905_v45  ;;  %v915_v4 = vrot.slane %v3765_v17, 1  ;;  %v3778_v45 = vld [vmem:[%s3032_s19 + $0x70] sm:$0x3]  ;;  %v5263_v17 = vld [vmem:[#allocation5_spill] sm:$0xff] }
  0xcf   : > { %846 = vrot.lane.b32.xlu0 %v3367_v44, %s2982_s22  ;;  %v910_v44 = vrot.slane %v3753_v60, 1  ;;  %5259 = vst [vmem:[#allocation76_spill] sm:$0xff] %v3778_v45 }
  0xd0   : > { %v3749_v51 = vpop.permute.xlu1 %672 }
  0xd1   : > { %v3755_v8 = vpop.permute.xlu0 %670 }
  0xd2   : > { %852 = vrot.lane.b32.xlu1 %v2662_v25, %s2982_s22 }
  0xd3   : > { %850 = vrot.lane.b32.xlu0 %v2661_v20, %s2982_s22  ;;  %v911_v20 = vsel %vm404_vm0, %v3080_v18, %v910_v44  ;;  %v3791_v44 = vld [vmem:[%s3032_s19 + $0x88] sm:$0x3] }
  0xd4   : > { %v3762_v31 = vpop.permute.xlu1 %676  ;;  %5260 = vst [vmem:[#allocation77_spill] sm:$0xff] %v3791_v44 }
  0xd5   : > { %v3767_v3 = vpop.permute.xlu0 %674 }
  0xd6   : > { %984 = vrot.lane.b32.xlu1 %v906_v42, %s2983_s23  ;;  %v920_v42 = vrot.slane %v3778_v45, 1 }
  0xd7   : > { %982 = vrot.lane.b32.xlu0 %v3064_v12, %s2983_s23  ;;  %v916_v12 = vsel %vm404_vm0, %v3099_v26, %v915_v4  ;;  %v2633_v4 = vld [vmem:[%s3032_s19 + $0xa0] sm:$0x3] }
  0xd8   : > { %v3775_v25 = vpop.permute.xlu1 %680 }
  0xd9   : > { %v3780_v9 = vpop.permute.xlu0 %678 }
  0xda   : > { %988 = vrot.lane.b32.xlu1 %v911_v20, %s2983_s23  ;;  %v5262_v20 = vld [vmem:[#allocation2_spill] sm:$0xff] }
  0xdb   : > { %986 = vrot.lane.b32.xlu0 %v3104_v28, %s2983_s23  ;;  %v921_v43 = vsel %vm404_vm0, %v5262_v20, %v920_v42  ;;  %v925_v28 = vrot.slane %v3791_v44, 1  ;;  %v5265_v20 = vld [vmem:[#allocation7_spill] sm:$0xff]  ;;  %v5266_v44 = vld [vmem:[#allocation6_spill] sm:$0xff] }
  0xdc   : > { %v3788_v18 = vpop.permute.xlu1 %684 }
  0xdd   : > { %v3793_v59 = vpop.permute.xlu0 %682 }
  0xde   : > { %992 = vrot.lane.b32.xlu1 %v916_v12, %s2983_s23  ;;  %v5264_v12 = vld [vmem:[#allocation4_spill] sm:$0xff] }
  0xdf   : > { %990 = vrot.lane.b32.xlu0 %v5261_v62, %s2983_s23  ;;  %v926_v33 = vsel %vm404_vm0, %v5264_v12, %v925_v28  ;;  %v930_v62 = vrot.slane %v2633_v4, 1  ;;  %v5269_v28 = vld [vmem:[#allocation9_spill] sm:$0xff] }
  0xe0   : > { %v3801_v26 = vpop.permute.xlu1 %688 }
  0xe1   : > { %v3804_v45 = vpop.permute.xlu0 %686  ;;  %v931_v23 = vsel %vm404_vm0, %v5266_v44, %v930_v62  ;;  %v5273_v44 = vld [vmem:[#allocation11_spill] sm:$0xff]  ;;  %v1081_v62 = vrot.slane %v3739_v53, 2 }
  0xe2   : > { %996 = vrot.lane.b32.xlu1 %v921_v43, %s2983_s23 }
  0xe3   : > { %994 = vrot.lane.b32.xlu0 %v5263_v17, %s2983_s23  ;;  %v2642_v17 = vld [vmem:[%s3032_s19 + $0xe8] sm:$0x3] }
  0xe4   : > { %v3811_v13 = vpop.permute.xlu1 %692  ;;  %v945_v12 = vrot.slane %v2642_v17, 1  ;;  %v1121_v53 = vrot.slane %v2642_v17, 2 }
  0xe5   : > { %v3813_v42 = vpop.permute.xlu0 %690 }
  0xe6   : > { %1000 = vrot.lane.b32.xlu1 %v926_v33, %s2983_s23 }
  0xe7   : > { %998 = vrot.lane.b32.xlu0 %v5265_v20, %s2983_s23  ;;  %v5272_v20 = vld [vmem:[#allocation16_spill] sm:$0xff] }
  0xe8   : > { %v3820_v43 = vpop.permute.xlu1 %696 }
  0xe9   : > { %5267 = vst [vmem:[#allocation3_spill] sm:$0xff] %v3820_v43  ;;  %v3822_v61 = vpop.permute.xlu0 %694 }
  0xea   : > { %5268 = vst [vmem:[#allocation2_spill] sm:$0xff] %v3822_v61  ;;  %1004 = vrot.lane.b32.xlu1 %v931_v23, %s2983_s23  ;;  %v5275_v23 = vld [vmem:[#allocation12_spill] sm:$0xff] }
  0xeb   : > { %1002 = vrot.lane.b32.xlu0 %v5269_v28, %s2983_s23  ;;  %v946_v28 = vsel %vm404_vm0, %v5275_v23, %v945_v12  ;;  %v3856_v12 = vld [vmem:[%s3032_s19 + $0x30] sm:$0xff] }
  0xec   : > { %v3828_v4 = vpop.permute.xlu1 %700 }
  0xed   : > { %5270 = vst [vmem:[#allocation5_spill] sm:$0xff] %v3828_v4  ;;  %v3830_v33 = vpop.permute.xlu0 %698 }
  0xee   : > { %5271 = vst [vmem:[#allocation4_spill] sm:$0xff] %v3830_v33  ;;  %1014 = vrot.lane.b32.xlu1 %v5272_v20, %s2983_s23  ;;  %v1082_v20 = vsel %vm581_vm1, %v3400_v49, %v1081_v62  ;;  %v1122_v49 = vsel %vm581_vm1, %v3508_v50, %v1121_v53  ;;  %v3866_v62 = vld [vmem:[%s3032_s19 + $0x38] sm:$0xff] }
  0xef   : > { %1006 = vrot.lane.b32.xlu0 %v5273_v44, %s2983_s23  ;;  %v1399_v50 = vrot.slane %v3866_v62, 1 }
  0xf0   : > { %v3837_v43 = vpop.permute.xlu1 %704 }
  0xf1   : > { %5274 = vst [vmem:[#allocation7_spill] sm:$0xff] %v3837_v43  ;;  %v3841_v61 = vpop.permute.xlu0 %702 }
  0xf2   : > { %5276 = vst [vmem:[#allocation6_spill] sm:$0xff] %v3841_v61  ;;  %1158 = vrot.lane.b32.xlu1 %v3415_v7, %s2984_s24  ;;  %v2022_v7 = vld [vmem:[%s5125_s1 + $0x40] sm:$0xff] }
  0xf3   : > { %1016 = vrot.lane.b32.xlu0 %v946_v28, %s2983_s23  ;;  %2821 = vmatprep.subr.mxu0 %v2022_v7  ;;  %v1398_v28 = vrot.slane %v3856_v12, 1 }
  0xf4   : > { %v3848_v44 = vpop.permute.xlu1 %708  ;;  %2887 = vmatprep.subr.mxu1 %v2022_v7  ;;  %2822 = vmatpush3.msra.mxu0 %v2022_v7 }
  0xf5   : > { %5277 = vst [vmem:[#allocation9_spill] sm:$0xff] %v3848_v44  ;;  %v3850_v4 = vpop.permute.xlu0 %706  ;;  %2896 = vmatpush3.msra.mxu1 %v2022_v7  ;;  %v1400_v33 = vsel %vm404_vm0, %v1398_v28, %v1399_v50  ;;  %v2017_v28 = vld [vmem:[%s5125_s1 + $0x18] sm:$0xff] }
  0xf6   : > { %5278 = vst [vmem:[#allocation16_spill] sm:$0xff] %v3850_v4  ;;  %1160 = vrot.lane.b32.xlu1 %v1082_v20, %s2984_s24  ;;  %v2020_v20 = vld [vmem:[%s5125_s1 + $0x30] sm:$0xff] }
  0xf7   : > { %1190 = vrot.lane.b32.xlu0 %v3527_v19, %s2984_s24  ;;  %v2021_v19 = vld [vmem:[%s5125_s1 + $0x38] sm:$0xff] }
  0xf8   : > { %v3861_v23 = vpop.permute.xlu1 %712  ;;  %2823 = vmatprep.subr.mxu0 %v2021_v19  ;;  %2888 = vmatprep.subr.mxu1 %v2021_v19 }
  0xf9   : > { %5279 = vst [vmem:[#allocation11_spill] sm:$0xff] %v3861_v23  ;;  %v3868_v17 = vpop.permute.xlu0 %710  ;;  %2824 = vmatpush3.msra.mxu0 %v2021_v19  ;;  %2897 = vmatpush3.msra.mxu1 %v2021_v19  ;;  %v3899_v19 = vld [vmem:[%s3032_s19 + $0x100] sm:$0x3] }
  0xfa   : > { %5280 = vst [vmem:[#allocation12_spill] sm:$0xff] %v3868_v17  ;;  %1286 = vrot.lane.b32.xlu1 %v3856_v12, %s2985_s27  ;;  %2825 = vmatprep.subr.mxu0 %v2020_v20  ;;  %v3904_v23 = vld [vmem:[%s3032_s19 + $0x40] sm:$0x3] }
  0xfb   : > { %1192 = vrot.lane.b32.xlu0 %v1122_v49, %s2984_s24  ;;  %2826 = vmatpush3.msra.mxu0 %v2020_v20  ;;  %v2019_v49 = vld [vmem:[%s5125_s1 + $0x28] sm:$0xff] }
  0xfc   : > { %v3881_v53 = vpop.permute.xlu1 %716  ;;  %2827 = vmatprep.subr.mxu0 %v2019_v49  ;;  %2889 = vmatprep.subr.mxu1 %v2020_v20 }
  0xfd   : > { %5281 = vst [vmem:[#allocation78_spill] sm:$0xff] %v3881_v53  ;;  %v3883_v7 = vpop.permute.xlu0 %714  ;;  %2828 = vmatpush3.msra.mxu0 %v2019_v49  ;;  %2898 = vmatpush3.msra.mxu1 %v2020_v20  ;;  %v1401_v20 = vrot.slane %v3904_v23, 1 }
  0xfe   : > { %5282 = vst [vmem:[#allocation79_spill] sm:$0xff] %v3883_v7  ;;  %1288 = vrot.lane.b32.xlu1 %v3866_v62, %s2985_s27  ;;  %v2018_v7 = vld [vmem:[%s5125_s1 + $0x20] sm:$0xff]  ;;  %2890 = vmatprep.subr.mxu1 %v2019_v49 }
  0xff   : > { %1318 = vrot.lane.b32.xlu0 %v3252_v41, %s2985_s27  ;;  %2829 = vmatprep.subr.mxu0 %v2018_v7  ;;  %v1402_v61 = vsel %vm404_vm0, %v1399_v50, %v1401_v20  ;;  %v3938_v41 = vld [vmem:[%s3032_s19 + $0x100] sm:$0x3] }
 0x100   : > { %v3896_v53 = vpop.permute.xlu1 %720  ;;  %2830 = vmatpush3.msra.mxu0 %v2018_v7  ;;  %2899 = vmatpush3.msra.mxu1 %v2019_v49  ;;  %v1574_v49 = vrot.slane %v3856_v12, 2  ;;  %v950_v50 = vrot.slane %v3938_v41, 1 }
 0x101   : > { %5283 = vst [vmem:[#allocation80_spill] sm:$0xff] %v3896_v53  ;;  %v3901_v17 = vpop.permute.xlu0 %718  ;;  %v1441_v53 = vrot.slane %v3899_v19, 1  ;;  %2831 = vmatprep.subr.mxu0 %v2017_v28  ;;  %2891 = vmatprep.subr.mxu1 %v2018_v7 }
 0x102   : > { %5284 = vst [vmem:[#allocation81_spill] sm:$0xff] %v3901_v17  ;;  %1478 = vrot.lane.b32.xlu1 %v1400_v33, %s2986_s11  ;;  %v2016_v17 = vld [vmem:[%s5125_s1 + $0x10] sm:$0xff]  ;;  %2832 = vmatpush3.msra.mxu0 %v2017_v28 }
 0x103   : > { %1320 = vrot.lane.b32.xlu0 %v3246_v35, %s2985_s27  ;;  %v5287_v33 = vld [vmem:[#allocation20_spill] sm:$0xff]  ;;  %2833 = vmatprep.subr.mxu0 %v2016_v17 }
 0x104   : > { %v3916_v4 = vpop.permute.xlu1 %724  ;;  %2900 = vmatpush3.msra.mxu1 %v2018_v7  ;;  %2834 = vmatpush3.msra.mxu0 %v2016_v17 }
 0x105   : > { %5285 = vst [vmem:[#allocation82_spill] sm:$0xff] %v3916_v4  ;;  %v3919_v44 = vpop.permute.xlu0 %722  ;;  %v5288_v4 = vld [vmem:[#allocation15_spill] sm:$0xff]  ;;  %2892 = vmatprep.subr.mxu1 %v2017_v28  ;;  %2835 = vmatprep.subr.mxu0 %v2015_v52 }
 0x106   : > { %5286 = vst [vmem:[#allocation83_spill] sm:$0xff] %v3919_v44  ;;  %1018 = vrot.lane.b32.xlu1 %v5287_v33, %s2983_s23  ;;  %v1442_v57 = vsel %vm404_vm0, %v5288_v4, %v1441_v53  ;;  %v1575_v44 = vrot.slane %v3866_v62, 2  ;;  %2901 = vmatpush3.msra.mxu1 %v2017_v28  ;;  %v2014_v53 = vld [vmem:[%s5125_s1] sm:$0xff] }
 0x107   : > { %1510 = vrot.lane.b32.xlu0 %v5287_v33, %s2986_s11  ;;  %2836 = vmatpush3.msra.mxu0 %v2015_v52 }
 0x108   : > { %v3932_v34 = vpop.permute.xlu1 %792  ;;  %2893 = vmatprep.subr.mxu1 %v2016_v17  ;;  %v1576_v62 = vsel %vm581_vm1, %v1574_v49, %v1575_v44  ;;  %2837 = vmatprep.subr.mxu0 %v2014_v53 }
 0x109   : > { %v3935_v43 = vpop.permute.xlu0 %790  ;;  %2902 = vmatpush3.msra.mxu1 %v2016_v17  ;;  %2838 = vmatpush3.msra.mxu0 %v2014_v53  ;;  %v1755_v17 = vsel %vm1750_vm2, %v3071_v15, %v3619_v5  ;;  %v1758_v15 = vsel %vm1750_vm2, %v3086_v22, %v3624_v55 }
 0x10a   : > { %1512 = vrot.lane.b32.xlu1 %v1442_v57, %s2986_s11  ;;  %2894 = vmatprep.subr.mxu1 %v2015_v52  ;;  %v1756_v57 = vsel %vm1750_vm2, %v3060_v11, %v3613_v6  ;;  %v1788_v11 = vsel %vm1783_vm3, %v1755_v17, %v3755_v8  ;;  %v1086_v8 = vrot.slane %v3753_v60, 2 }
 0x10b   : > { %1480 = vrot.lane.b32.xlu0 %v1402_v61, %s2986_s11  ;;  %2903 = vmatpush3.msra.mxu1 %v2015_v52  ;;  %v1577_v61 = vrot.slane %v3904_v23, 2  ;;  %v1789_v28 = vsel %vm1783_vm3, %v1756_v57, %v3749_v51  ;;  %v951_v52 = vsel %vm404_vm0, %v5288_v4, %v950_v50  ;;  %v1757_v51 = vsel %vm1750_vm2, %v3092_v24, %v3626_v63  ;;  %v4035_v57 = vld [vmem:[%s3032_s19 + $0x50] sm:$0xff] }
 0x10c   : > { %v3945_v12 = vpop.permute.xlu1 %796  ;;  %2895 = vmatprep.subr.mxu1 %v2014_v53  ;;  %v1791_v4 = vsel %vm1783_vm3, %v1758_v15, %v3762_v31  ;;  %v1760_v24 = vsel %vm1750_vm2, %v3108_v30, %v3632_v36  ;;  %v1087_v31 = vsel %vm581_vm1, %v3410_v29, %v1086_v8  ;;  %v1759_v63 = vsel %vm1750_vm2, %v3114_v32, %v3634_v21  ;;  %v4025_v21 = vld [vmem:[%s3032_s19 + $0x48] sm:$0xff] }
 0x10d   : > { %v3949_v7 = vpop.permute.xlu0 %794  ;;  %2904 = vmatpush3.msra.mxu1 %v2014_v53  ;;  %v1578_v5 = vsel %vm581_vm1, %v1575_v44, %v1577_v61  ;;  %v1790_v53 = vsel %vm1783_vm3, %v1757_v51, %v3767_v3  ;;  %v1793_v3 = vsel %vm1783_vm3, %v1760_v24, %v3775_v25  ;;  %v1126_v30 = vrot.slane %v3938_v41, 2  ;;  %v4084_v51 = vld [vmem:[%s3032_s19 + $0x118] sm:$0x3] }
 0x10e   : > { %1686 = vrot.lane.b32.xlu1 %v3541_v37, %s2987_s25  ;;  %v1762_v32 = vsel %vm1750_vm2, %v3131_v38, %v3640_v47  ;;  %v1761_v41 = vsel %vm1750_vm2, %v3137_v40, %v3642_v58  ;;  %v1403_v58 = vrot.slane %v4025_v21, 1 }
 0x10f   : > { %1654 = vrot.lane.b32.xlu0 %v1576_v62, %s2987_s25  ;;  %v1127_v50 = vsel %vm581_vm1, %v3522_v27, %v1126_v30  ;;  %v1794_v38 = vsel %vm1783_vm3, %v1761_v41, %v3793_v59  ;;  %v1404_v59 = vrot.slane %v4035_v57, 1  ;;  %v5296_v41 = vld [vmem:[#allocation14_spill] sm:$0xff] }
 0x110   : > { %v801_v20 = vpop.permute.xlu1 %800 }
 0x111   : > { %v3968_v6 = vsel %vm1816_vm4, %v1789_v28, %v801_v20  ;;  %v799_v23 = vpop.permute.xlu0 %798  ;;  %v2691_v20 = vld [vmem:[%s3032_s19 + $0x108] sm:$0xff] }
 0x112   : > { %v3971_v33 = vsel %vm1816_vm4, %v1788_v11, %v799_v23  ;;  %1162 = vrot.lane.b32.xlu1 %v3429_v14, %s2984_s24  ;;  %v1617_v14 = vrot.slane %v3899_v19, 2  ;;  %v4065_v11 = vld [vmem:[%s3032_s19 + $0x110] sm:$0xff]  ;;  %v1443_v15 = vrot.slane %v2691_v20, 1  ;;  %v1619_v24 = vrot.slane %v2691_v20, 2 }
 0x113   : > { %1020 = vrot.lane.b32.xlu0 %v951_v52, %s2983_s23  ;;  %v1444_v8 = vrot.slane %v4065_v11, 1 }
 0x114   : > { %v805_v49 = vpop.permute.xlu1 %804  ;;  %v1618_v19 = vsel %vm581_vm1, %v3522_v27, %v1617_v14  ;;  %v1764_v27 = vsel %vm1750_vm2, %v3154_v46, %v3648_v0 }
 0x115   : > { %v3990_v22 = vsel %vm1816_vm4, %v1791_v4, %v805_v49  ;;  %v803_v55 = vpop.permute.xlu0 %802  ;;  %v1797_v17 = vsel %vm1783_vm3, %v1764_v27, %v3801_v26  ;;  %v2669_v49 = vld [vmem:[%s3032_s19 + $0x58] sm:$0x3]  ;;  %v5298_v27 = vld [vmem:[#allocation6_spill] sm:$0xff] }
 0x116   : > { %v3993_v44 = vsel %vm1816_vm4, %v1790_v53, %v803_v55  ;;  %1656 = vrot.lane.b32.xlu1 %v1578_v5, %s2987_s25  ;;  %v5295_v55 = vld [vmem:[#allocation23_spill] sm:$0xff] }
 0x117   : > { %1194 = vrot.lane.b32.xlu0 %v3541_v37, %s2984_s24  ;;  %v1792_v37 = vsel %vm1783_vm3, %v1759_v63, %v3780_v9  ;;  %v1795_v9 = vsel %vm1783_vm3, %v1762_v32, %v3788_v18  ;;  %v1763_v18 = vsel %vm1750_vm2, %v3160_v48, %v3650_v1  ;;  %v1766_v48 = vsel %vm1750_vm2, %v3177_v54, %v3656_v16 }
 0x118   : > { %v809_v60 = vpop.permute.xlu1 %808  ;;  %v1796_v52 = vsel %vm1783_vm3, %v1763_v18, %v3804_v45  ;;  %v1405_v1 = vsel %vm404_vm0, %v1403_v58, %v1404_v59  ;;  %v1765_v45 = vsel %vm1750_vm2, %v3183_v56, %v3658_v10  ;;  %v1799_v26 = vsel %vm1783_vm3, %v1766_v48, %v3811_v13  ;;  %v5300_v18 = vld [vmem:[#allocation17_spill] sm:$0xff] }
 0x119   : > { %v4014_v36 = vsel %vm1816_vm4, %v1793_v3, %v809_v60  ;;  %v807_v29 = vpop.permute.xlu0 %806  ;;  %v1798_v54 = vsel %vm1783_vm3, %v1765_v45, %v3813_v42  ;;  %v1446_v56 = vrot.slane %v4084_v51, 1  ;;  %v1445_v10 = vsel %vm404_vm0, %v1443_v15, %v1444_v8  ;;  %v5304_v45 = vld [vmem:[#allocation19_spill] sm:$0xff]  ;;  %v5305_v15 = vld [vmem:[#allocation16_spill] sm:$0xff] }
 0x11a   : > { %v4017_v62 = vsel %vm1816_vm4, %v1792_v37, %v807_v29  ;;  %1164 = vrot.lane.b32.xlu1 %v1087_v31, %s2984_s24  ;;  %v1406_v42 = vrot.slane %v2669_v49, 1  ;;  %v1620_v31 = vrot.slane %v4065_v11, 2  ;;  %v1579_v3 = vrot.slane %v4025_v21, 2  ;;  %v4117_v29 = vld [vmem:[%s3032_s19 + $0x118] sm:$0x3] }
 0x11b   : > { %1688 = vrot.lane.b32.xlu0 %v1618_v19, %s2987_s25  ;;  %v1447_v63 = vsel %vm404_vm0, %v1444_v8, %v1446_v56  ;;  %v1580_v60 = vrot.slane %v4035_v57, 2  ;;  %v1772_v32 = vsel %vm1750_vm2, %v3246_v35, %v3680_v2  ;;  %v5307_v56 = vld [vmem:[#allocation63_spill] sm:$0xff] }
 0x11c   : > { %v813_v25 = vpop.permute.xlu1 %812  ;;  %v1407_v30 = vsel %vm404_vm0, %v1404_v59, %v1406_v42 }
 0x11d   : > { %v4040_v47 = vsel %vm1816_vm4, %v1795_v9, %v813_v25  ;;  %v811_v61 = vpop.permute.xlu0 %810  ;;  %v1771_v9 = vsel %vm1750_vm2, %v5296_v41, %v3682_v39  ;;  %v5297_v25 = vld [vmem:[#allocation7_spill] sm:$0xff]  ;;  %v5299_v39 = vld [vmem:[#allocation61_spill] sm:$0xff] }
 0x11e   : > { %5289 = vst [vmem:[#allocation20_spill] sm:$0xff] %v4040_v47  ;;  %v4043_v40 = vsel %vm1816_vm4, %v1794_v38, %v811_v61  ;;  %1290 = vrot.lane.b32.xlu1 %v4025_v21, %s2985_s27  ;;  %v1621_v21 = vsel %vm581_vm1, %v1619_v24, %v1620_v31  ;;  %v1581_v38 = vsel %vm581_vm1, %v1579_v3, %v1580_v60  ;;  %v955_v61 = vrot.slane %v4117_v29, 1  ;;  %v5309_v24 = vld [vmem:[#allocation75_spill] sm:$0xff]  ;;  %v2938_v3 = vld [vmem:[%s3032_s19 + $0x120] sm:$0xff] }
 0x11f   : > { %5290 = vst [vmem:[#allocation15_spill] sm:$0xff] %v4043_v40  ;;  %1196 = vrot.lane.b32.xlu0 %v1127_v50, %s2984_s24  ;;  %v1805_v50 = vsel %vm1783_vm3, %v1772_v32, %v5297_v25  ;;  %v1804_v58 = vsel %vm1783_vm3, %v1771_v9, %v5298_v27  ;;  %v1622_v25 = vrot.slane %v4084_v51, 2  ;;  %v2939_v27 = vld [vmem:[%s3032_s19 + $0x140] sm:$0xff]  ;;  %v5315_v51 = vld [vmem:[#allocation31_spill] sm:$0xff] }
 0x120   : > { %v817_v28 = vpop.permute.xlu1 %816  ;;  %v5346_v40 = vld [vmem:[#allocation2_spill] sm:$0xff] }
 0x121   : > { %v4062_v46 = vsel %vm1816_vm4, %v1797_v17, %v817_v28  ;;  %v815_v0 = vpop.permute.xlu0 %814  ;;  %v1774_v17 = vsel %vm1750_vm2, %v5300_v18, %v5299_v39  ;;  %v1582_v28 = vrot.slane %v2669_v49, 2  ;;  %v5306_v49 = vld [vmem:[#allocation33_spill] sm:$0xff] }
 0x122   : > { %5291 = vst [vmem:[#allocation84_spill] sm:$0xff] %v4062_v46  ;;  %v4068_v23 = vsel %vm1816_vm4, %v1796_v52, %v815_v0  ;;  %1292 = vrot.lane.b32.xlu1 %v4035_v57, %s2985_s27  ;;  %v5302_v52 = vld [vmem:[#allocation18_spill] sm:$0xff]  ;;  %v5314_v39 = vld [vmem:[#allocation45_spill] sm:$0xff] }
 0x123   : > { %5292 = vst [vmem:[#allocation85_spill] sm:$0xff] %v4068_v23  ;;  %1322 = vrot.lane.b32.xlu0 %v2691_v20, %s2985_s27  ;;  %v5301_v20 = vld [vmem:[#allocation62_spill] sm:$0xff] }
 0x124   : > { %v821_v5 = vpop.permute.xlu1 %820  ;;  %v1773_v0 = vsel %vm1750_vm2, %v5302_v52, %v5301_v20  ;;  %v5317_v52 = vld [vmem:[#allocation78_spill] sm:$0xff] }
 0x125   : > { %v4089_v16 = vsel %vm1816_vm4, %v1799_v26, %v821_v5  ;;  %v819_v4 = vpop.permute.xlu0 %818  ;;  %v956_v26 = vsel %vm404_vm0, %v5304_v45, %v955_v61  ;;  %v1806_v5 = vsel %vm1783_vm3, %v1773_v0, %v5305_v15  ;;  %v5318_v45 = vld [vmem:[#allocation79_spill] sm:$0xff] }
 0x126   : > { %5293 = vst [vmem:[#allocation86_spill] sm:$0xff] %v4089_v16  ;;  %v4093_v14 = vsel %vm1816_vm4, %v1798_v54, %v819_v4  ;;  %1482 = vrot.lane.b32.xlu1 %v1405_v1, %s2986_s11 }
 0x127   : > { %5294 = vst [vmem:[#allocation87_spill] sm:$0xff] %v4093_v14  ;;  %1324 = vrot.lane.b32.xlu0 %v4065_v11, %s2985_s27  ;;  %v5303_v11 = vld [vmem:[#allocation9_spill] sm:$0xff] }
 0x128   : > { %v4099_v13 = vpop.permute.xlu1 %824  ;;  %v1807_v48 = vsel %vm1783_vm3, %v1774_v17, %v5303_v11  ;;  %v2940_v17 = vld [vmem:[%s3032_s19 + $0x138] sm:$0xff] }
 0x129   : > { %v4102_v53 = vpop.permute.xlu0 %822 }
 0x12a   : > { %1022 = vrot.lane.b32.xlu1 %v5295_v55, %s2983_s23  ;;  %v1583_v55 = vsel %vm581_vm1, %v1580_v60, %v1582_v28  ;;  %v5316_v28 = vld [vmem:[#allocation66_spill] sm:$0xff] }
 0x12b   : > { %1514 = vrot.lane.b32.xlu0 %v1445_v10, %s2986_s11  ;;  %v5308_v10 = vld [vmem:[#allocation21_spill] sm:$0xff]  ;;  %v1777_v20 = vsel %vm1750_vm2, %v2940_v17, %v5316_v28  ;;  %v5329_v28 = vld [vmem:[#allocation82_spill] sm:$0xff] }
 0x12c   : > { %v4111_v19 = vpop.permute.xlu1 %828  ;;  %v1776_v42 = vsel %vm1750_vm2, %v5308_v10, %v5307_v56  ;;  %v5320_v56 = vld [vmem:[#allocation67_spill] sm:$0xff]  ;;  %v2942_v10 = vld [vmem:[%s3032_s19 + $0x150] sm:$0xff] }
 0x12d   : > { %v4114_v37 = vpop.permute.xlu0 %826 }
 0x12e   : > { %1516 = vrot.lane.b32.xlu1 %v1447_v63, %s2986_s11  ;;  %v1091_v63 = vrot.slane %v5309_v24, 2  ;;  %v5322_v24 = vld [vmem:[#allocation80_spill] sm:$0xff] }
 0x12f   : > { %1484 = vrot.lane.b32.xlu0 %v1407_v30, %s2986_s11  ;;  %v5310_v30 = vld [vmem:[#allocation64_spill] sm:$0xff] }
 0x130   : > { %v833_v57 = vpop.permute.xlu1 %832  ;;  %v1775_v32 = vsel %vm1750_vm2, %v2938_v3, %v5310_v30  ;;  %v1092_v18 = vsel %vm581_vm1, %v5315_v51, %v1091_v63  ;;  %v5323_v30 = vld [vmem:[#allocation43_spill] sm:$0xff] }
 0x131   : > { %v4135_v35 = vsel %vm1816_vm4, %v1805_v50, %v833_v57  ;;  %v831_v2 = vpop.permute.xlu0 %830  ;;  %v5312_v50 = vld [vmem:[#allocation12_spill] sm:$0xff]  ;;  %v2944_v51 = vld [vmem:[%s3032_s19 + $0x168] sm:$0xff] }
 0x132   : > { %v4138_v59 = vsel %vm1816_vm4, %v1804_v58, %v831_v2  ;;  %1690 = vrot.lane.b32.xlu1 %v1621_v21, %s2987_s25  ;;  %v5311_v21 = vld [vmem:[#allocation11_spill] sm:$0xff]  ;;  %v1808_v57 = vsel %vm1783_vm3, %v1775_v32, %v5312_v50  ;;  %v5313_v58 = vld [vmem:[#allocation65_spill] sm:$0xff] }
 0x133   : > { %1658 = vrot.lane.b32.xlu0 %v1581_v38, %s2987_s25  ;;  %v1809_v41 = vsel %vm1783_vm3, %v1776_v42, %v5311_v21  ;;  %v1778_v2 = vsel %vm1750_vm2, %v2939_v27, %v5313_v58  ;;  %v5321_v42 = vld [vmem:[#allocation68_spill] sm:$0xff]  ;;  %v4219_v21 = vld [vmem:[%s3032_s19 + $0x68] sm:$0xff]  ;;  %v5327_v27 = vld [vmem:[#allocation69_spill] sm:$0xff] }
 0x134   : > { %v837_v1 = vpop.permute.xlu1 %836  ;;  %v1811_v0 = vsel %vm1783_vm3, %v1778_v2, %v5317_v52 }
 0x135   : > { %v4155_v8 = vsel %vm1816_vm4, %v1807_v48, %v837_v1  ;;  %v835_v54 = vpop.permute.xlu0 %834  ;;  %v1623_v48 = vsel %vm581_vm1, %v1620_v31, %v1622_v25  ;;  %v1131_v1 = vrot.slane %v4117_v29, 2  ;;  %v2670_v29 = vld [vmem:[%s3032_s19 + $0x60] sm:$0xff] }
 0x136   : > { %v4158_v4 = vsel %vm1816_vm4, %v1806_v5, %v835_v54  ;;  %1166 = vrot.lane.b32.xlu1 %v5306_v49, %s2984_s24  ;;  %v2941_v49 = vld [vmem:[%s3032_s19 + $0x158] sm:$0xff]  ;;  %v1408_v2 = vrot.slane %v2670_v29, 1 }
 0x137   : > { %1024 = vrot.lane.b32.xlu0 %v956_v26, %s2983_s23  ;;  %v1810_v26 = vsel %vm1783_vm3, %v1777_v20, %v5318_v45  ;;  %v1780_v31 = vsel %vm1750_vm2, %v2941_v49, %v5320_v56  ;;  %v1132_v32 = vsel %vm581_vm1, %v5323_v30, %v1131_v1 }
 0x138   : > { %v841_v9 = vpop.permute.xlu1 %840  ;;  %v1813_v63 = vsel %vm1783_vm3, %v1780_v31, %v5322_v24  ;;  %v2672_v24 = vld [vmem:[%s3032_s19 + $0x70] sm:$0x3] }
 0x139   : > { %v4177_v38 = vsel %vm1816_vm4, %v1809_v41, %v841_v9  ;;  %v839_v60 = vpop.permute.xlu0 %838  ;;  %v5324_v41 = vld [vmem:[#allocation81_spill] sm:$0xff] }
 0x13a   : > { %v4180_v61 = vsel %vm1816_vm4, %v1808_v57, %v839_v60  ;;  %1660 = vrot.lane.b32.xlu1 %v1583_v55, %s2987_s25  ;;  %v1779_v55 = vsel %vm1750_vm2, %v2942_v10, %v5321_v42  ;;  %v2943_v60 = vld [vmem:[%s3032_s19 + $0x170] sm:$0xff] }
 0x13b   : > { %1198 = vrot.lane.b32.xlu0 %v5314_v39, %s2984_s24  ;;  %v1812_v9 = vsel %vm1783_vm3, %v1779_v55, %v5324_v41  ;;  %v1782_v58 = vsel %vm1750_vm2, %v2943_v60, %v5327_v27  ;;  %v1409_v39 = vrot.slane %v4219_v21, 1  ;;  %v2696_v42 = vld [vmem:[%s3032_s19 + $0x130] sm:$0x3] }
 0x13c   : > { %v845_v11 = vpop.permute.xlu1 %844  ;;  %v1815_v20 = vsel %vm1783_vm3, %v1782_v58, %v5329_v28  ;;  %v1584_v58 = vrot.slane %v2670_v29, 2  ;;  %v2651_v28 = vld [vmem:[%s3032_s19 + $0x130] sm:$0x3] }
 0x13d   : > { %v4200_v15 = vsel %vm1816_vm4, %v1811_v0, %v845_v11  ;;  %v843_v5 = vpop.permute.xlu0 %842  ;;  %v2694_v0 = vld [vmem:[%s3032_s19 + $0x120] sm:$0xff]  ;;  %v5330_v11 = vld [vmem:[#allocation83_spill] sm:$0xff]  ;;  %v1410_v49 = vsel %vm404_vm0, %v1408_v2, %v1409_v39  ;;  %v1585_v2 = vrot.slane %v4219_v21, 2 }
 0x13e   : > { %5319 = vst [vmem:[#allocation23_spill] sm:$0xff] %v4200_v15  ;;  %v4203_v54 = vsel %vm1816_vm4, %v1810_v26, %v843_v5  ;;  %1168 = vrot.lane.b32.xlu1 %v1092_v18, %s2984_s24  ;;  %v5328_v18 = vld [vmem:[#allocation70_spill] sm:$0xff]  ;;  %v2695_v26 = vld [vmem:[%s3032_s19 + $0x128] sm:$0xff]  ;;  %v1448_v56 = vrot.slane %v2694_v0, 1 }
 0x13f   : > { %1692 = vrot.lane.b32.xlu0 %v1623_v48, %s2987_s25  ;;  %v1781_v17 = vsel %vm1750_vm2, %v2944_v51, %v5328_v18  ;;  %v1449_v10 = vrot.slane %v2695_v26, 1  ;;  %v1625_v60 = vrot.slane %v2695_v26, 2 }
 0x140   : > { %v849_v3 = vpop.permute.xlu1 %848  ;;  %v1814_v48 = vsel %vm1783_vm3, %v1781_v17, %v5330_v11 }
 0x141   : > { %v4224_v25 = vsel %vm1816_vm4, %v1813_v63, %v849_v3  ;;  %v847_v50 = vpop.permute.xlu0 %846  ;;  %v1451_v63 = vrot.slane %v2696_v42, 1  ;;  %v1450_v30 = vsel %vm404_vm0, %v1448_v56, %v1449_v10 }
 0x142   : > { %5325 = vst [vmem:[#allocation14_spill] sm:$0xff] %v4224_v25  ;;  %v4227_v57 = vsel %vm1816_vm4, %v1812_v9, %v847_v50  ;;  %1294 = vrot.lane.b32.xlu1 %v2670_v29, %s2985_s27  ;;  %v5333_v9 = vld [vmem:[#allocation25_spill] sm:$0xff]  ;;  %v1624_v50 = vrot.slane %v2694_v0, 2  ;;  %v960_v29 = vrot.slane %v2651_v28, 1 }
 0x143   : > { %5326 = vst [vmem:[#allocation7_spill] sm:$0xff] %v4227_v57  ;;  %1200 = vrot.lane.b32.xlu0 %v1132_v32, %s2984_s24  ;;  %v1411_v32 = vrot.slane %v2672_v24, 1  ;;  %v1452_v27 = vsel %vm404_vm0, %v1449_v10, %v1451_v63  ;;  %v5336_v10 = vld [vmem:[#allocation76_spill] sm:$0xff] }
 0x144   : > { %v853_v52 = vpop.permute.xlu1 %852  ;;  %v1096_v63 = vrot.slane %v5336_v10, 2 }
 0x145   : > { %v4244_v1 = vsel %vm1816_vm4, %v1815_v20, %v853_v52  ;;  %v851_v45 = vpop.permute.xlu0 %850  ;;  %v1412_v18 = vsel %vm404_vm0, %v1409_v39, %v1411_v32  ;;  %v1626_v20 = vsel %vm581_vm1, %v1624_v50, %v1625_v60  ;;  %v5340_v50 = vld [vmem:[#allocation32_spill] sm:$0xff] }
 0x146   : > { %5331 = vst [vmem:[#allocation6_spill] sm:$0xff] %v4244_v1  ;;  %v4248_v5 = vsel %vm1816_vm4, %v1814_v48, %v851_v45  ;;  %1296 = vrot.lane.b32.xlu1 %v4219_v21, %s2985_s27  ;;  %v1587_v21 = vrot.slane %v2672_v24, 2  ;;  %v5334_v48 = vld [vmem:[#allocation22_spill] sm:$0xff]  ;;  %v1627_v24 = vrot.slane %v2696_v42, 2  ;;  %v2673_v42 = vld [vmem:[%s3032_s19 + $0x78] sm:$0xff] }
 0x147   : > { %5332 = vst [vmem:[#allocation61_spill] sm:$0xff] %v4248_v5  ;;  %1326 = vrot.lane.b32.xlu0 %v2694_v0, %s2985_s27  ;;  %v1586_v0 = vsel %vm581_vm1, %v1584_v58, %v1585_v2  ;;  %v961_v45 = vsel %vm404_vm0, %v5334_v48, %v960_v29  ;;  %v5342_v29 = vld [vmem:[#allocation44_spill] sm:$0xff]  ;;  %v4321_v48 = vld [vmem:[%s3032_s19 + $0x80] sm:$0xff]  ;;  %v5343_v5 = vld [vmem:[#allocation27_spill] sm:$0xff]  ;;  %v1589_v23 = vrot.slane %v2673_v42, 2 }
 0x148   : > { %v4254_v31 = vpop.permute.xlu1 %984  ;;  %v1588_v56 = vsel %vm581_vm1, %v1585_v2, %v1587_v21  ;;  %v1628_v2 = vsel %vm581_vm1, %v1625_v60, %v1627_v24  ;;  %v1413_v60 = vrot.slane %v2673_v42, 1 }
 0x149   : > { %v4257_v55 = vpop.permute.xlu0 %982 }
 0x14a   : > { %1486 = vrot.lane.b32.xlu1 %v1410_v49, %s2986_s11  ;;  %v5335_v49 = vld [vmem:[#allocation35_spill] sm:$0xff] }
 0x14b   : > { %1328 = vrot.lane.b32.xlu0 %v2695_v26, %s2985_s27 }
 0x14c   : > { %v4262_v3 = vpop.permute.xlu1 %988 }
 0x14d   : > { %v4265_v41 = vpop.permute.xlu0 %986 }
 0x14e   : > { %1026 = vrot.lane.b32.xlu1 %v5333_v9, %s2983_s23  ;;  %v5339_v9 = vld [vmem:[#allocation47_spill] sm:$0xff] }
 0x14f   : > { %1518 = vrot.lane.b32.xlu0 %v1450_v30, %s2986_s11 }
 0x150   : > { %v4272_v51 = vpop.permute.xlu1 %992 }
 0x151   : > { %v4275_v17 = vpop.permute.xlu0 %990 }
 0x152   : > { %1520 = vrot.lane.b32.xlu1 %v1452_v27, %s2986_s11  ;;  %v1097_v27 = vsel %vm581_vm1, %v5340_v50, %v1096_v63  ;;  %v4332_v63 = vld [vmem:[%s3032_s19 + $0x140] sm:$0xff] }
 0x153   : > { %1488 = vrot.lane.b32.xlu0 %v1412_v18, %s2986_s11  ;;  %v1136_v18 = vrot.slane %v2651_v28, 2  ;;  %v1414_v28 = vrot.slane %v4321_v48, 1  ;;  %v5184_v25 = vrot.slane %v4332_v63, 2 }
 0x154   : > { %v4281_v52 = vpop.permute.xlu1 %996 }
 0x155   : > { %v4284_v11 = vpop.permute.xlu0 %994  ;;  %v1137_v21 = vsel %vm581_vm1, %v5342_v29, %v1136_v18  ;;  %v1415_v24 = vsel %vm404_vm0, %v1413_v60, %v1414_v28  ;;  %v2675_v29 = vld [vmem:[%s3032_s19 + $0x88] sm:$0x3] }
 0x156   : > { %1694 = vrot.lane.b32.xlu1 %v1626_v20, %s2987_s25  ;;  %v1416_v1 = vrot.slane %v2675_v29, 1 }
 0x157   : > { %1662 = vrot.lane.b32.xlu0 %v1586_v0, %s2987_s25 }
 0x158   : > { %v4288_v39 = vpop.permute.xlu1 %1000 }
 0x159   : > { %v4292_v26 = vpop.permute.xlu0 %998 }
 0x15a   : > { %1170 = vrot.lane.b32.xlu1 %v5335_v49, %s2984_s24 }
 0x15b   : > { %1028 = vrot.lane.b32.xlu0 %v961_v45, %s2983_s23 }
 0x15c   : > { %v4299_v30 = vpop.permute.xlu1 %1004 }
 0x15d   : > { %5337 = vst [vmem:[#allocation17_spill] sm:$0xff] %v4299_v30  ;;  %v4301_v32 = vpop.permute.xlu0 %1002  ;;  %v4362_v30 = vld [vmem:[%s3032_s19 + $0x148] sm:$0x3] }
 0x15e   : > { %5338 = vst [vmem:[#allocation62_spill] sm:$0xff] %v4301_v32  ;;  %1664 = vrot.lane.b32.xlu1 %v1588_v56, %s2987_s25  ;;  %v2697_v56 = vld [vmem:[%s3032_s19 + $0x138] sm:$0xff] }
 0x15f   : > { %1202 = vrot.lane.b32.xlu0 %v5339_v9, %s2984_s24  ;;  %v1453_v9 = vrot.slane %v2697_v56, 1  ;;  %v1629_v46 = vrot.slane %v2697_v56, 2 }
 0x160   : > { %v4308_v58 = vpop.permute.xlu1 %1014 }
 0x161   : > { %v4311_v20 = vpop.permute.xlu0 %1006 }
 0x162   : > { %5341 = vst [vmem:[#allocation18_spill] sm:$0xff] %v4311_v20  ;;  %1172 = vrot.lane.b32.xlu1 %v1097_v27, %s2984_s24  ;;  %v1454_v27 = vrot.slane %v4332_v63, 1  ;;  %v1590_v20 = vrot.slane %v4321_v48, 2 }
 0x163   : > { %1696 = vrot.lane.b32.xlu0 %v1628_v2, %s2987_s25  ;;  %v4340_v2 = vld [vmem:[%s3032_s19 + $0x148] sm:$0x3] }
 0x164   : > { %v4316_v0 = vpop.permute.xlu1 %1158  ;;  %v1455_v60 = vsel %vm404_vm0, %v1453_v9, %v1454_v27  ;;  %v1417_v9 = vsel %vm404_vm0, %v1414_v28, %v1416_v1  ;;  %v2945_v1 = vld [vmem:[%s3032_s19 + $0xc0] sm:$0xff] }
 0x165   : > { %v4323_v45 = vpop.permute.xlu0 %1016  ;;  %v5344_v28 = vld [vmem:[#allocation58_spill] sm:$0xff] }
 0x166   : > { %1298 = vrot.lane.b32.xlu1 %v2673_v42, %s2985_s27  ;;  %v1591_v42 = vsel %vm581_vm1, %v1589_v23, %v1590_v20  ;;  %v5347_v23 = vld [vmem:[#allocation72_spill] sm:$0xff] }
 0x167   : > { %1204 = vrot.lane.b32.xlu0 %v1137_v21, %s2984_s24  ;;  %v1456_v21 = vrot.slane %v4340_v2, 1 }
 0x168   : > { %v4328_v49 = vpop.permute.xlu1 %1160 }
 0x169   : > { %v1191_v10 = vpop.permute.xlu0 %1190 }
 0x16a   : > { %1300 = vrot.lane.b32.xlu1 %v4321_v48, %s2985_s27  ;;  %v965_v48 = vrot.slane %v4362_v30, 1 }
 0x16b   : > { %1330 = vrot.lane.b32.xlu0 %v2697_v56, %s2985_s27 }
 0x16c   : > { %v1287_v50 = vpop.permute.xlu1 %1286 }
 0x16d   : > { %v4342_v18 = vpop.permute.xlu0 %1192 }
 0x16e   : > { %1490 = vrot.lane.b32.xlu1 %v1415_v24, %s2986_s11  ;;  %v1457_v24 = vsel %vm404_vm0, %v1454_v27, %v1456_v21  ;;  %v1767_v21 = vsel %vm1750_vm2, %v2945_v1, %v5344_v28 }
 0x16f   : > { %1332 = vrot.lane.b32.xlu0 %v4332_v63, %s2985_s27 }
 0x170   : > { %v4349_v16 = vpop.permute.xlu1 %1288 }
 0x171   : > { %v1319_v14 = vpop.permute.xlu0 %1318 }
 0x172   : > { %1030 = vrot.lane.b32.xlu1 %v5343_v5, %s2983_s23  ;;  %v1631_v5 = vsel %vm581_vm1, %v1629_v46, %v5184_v25  ;;  %v1800_v46 = vsel %vm1783_vm3, %v1767_v21, %v5346_v40  ;;  %v5349_v21 = vld [vmem:[#allocation37_spill] sm:$0xff] }
 0x173   : > { %1522 = vrot.lane.b32.xlu0 %v1455_v60, %s2986_s11  ;;  %v1592_v60 = vrot.slane %v2675_v29, 2  ;;  %v1833_v32 = vsel %vm1816_vm4, %v1800_v46, %v4102_v53  ;;  %v5348_v29 = vld [vmem:[#allocation24_spill] sm:$0xff] }
 0x174   : > { %v1479_v57 = vpop.permute.xlu1 %1478  ;;  %v1866_v40 = vsel %vm1849_vm5, %v1833_v32, %v4308_v58  ;;  %v5350_v32 = vld [vmem:[#allocation77_spill] sm:$0xff] }
 0x175   : > { %v4359_v47 = vpop.permute.xlu0 %1320  ;;  %v1899_v53 = vsel %vm1882_vm6, %v1866_v40, %v1191_v10  ;;  %v1101_v58 = vrot.slane %v5350_v32, 2  ;;  %v5356_v32 = vld [vmem:[#allocation57_spill] sm:$0xff] }
 0x176   : > { %1524 = vrot.lane.b32.xlu1 %v1457_v24, %s2986_s11  ;;  %v2946_v24 = vld [vmem:[%s3032_s19] sm:$0xff] }
 0x177   : > { %1492 = vrot.lane.b32.xlu0 %v1417_v9, %s2986_s11  ;;  %v5345_v9 = vld [vmem:[#allocation51_spill] sm:$0xff] }
 0x178   : > { %v4369_v56 = vpop.permute.xlu1 %1018  ;;  %v1751_v15 = vsel %vm1750_vm2, %v2946_v24, %v5345_v9  ;;  %v1632_v9 = vrot.slane %v4340_v2, 2  ;;  %v5353_v2 = vld [vmem:[#allocation50_spill] sm:$0xff] }
 0x179   : > { %v1511_v27 = vpop.permute.xlu0 %1510  ;;  %v1784_v25 = vsel %vm1783_vm3, %v1751_v15, %v5347_v23  ;;  %v5351_v23 = vld [vmem:[#allocation55_spill] sm:$0xff] }
 0x17a   : > { %1698 = vrot.lane.b32.xlu1 %v1631_v5, %s2987_s25  ;;  %v966_v5 = vsel %vm404_vm0, %v5348_v29, %v965_v48  ;;  %v1817_v28 = vsel %vm1816_vm4, %v1784_v25, %v3935_v43  ;;  %v1593_v48 = vsel %vm581_vm1, %v1590_v20, %v1592_v60  ;;  %v1932_v25 = vsel %vm1915_vm7, %v1899_v53, %v1319_v14 }
 0x17b   : > { %1666 = vrot.lane.b32.xlu0 %v1591_v42, %s2987_s25  ;;  %v1850_v15 = vsel %vm1849_vm5, %v1817_v28, %v4257_v55  ;;  %v1965_v10 = vsel %vm1948_vm8, %v1932_v25, %v1511_v27 }
 0x17c   : > { %v4387_v1 = vpop.permute.xlu1 %1512  ;;  %v1883_v43 = vsel %vm1882_vm6, %v1850_v15, %v4316_v0  ;;  %v2947_v0 = vld [vmem:[%s3032_s19 + $0x8] sm:$0xff]  ;;  %v5355_v15 = vrot.slane %v4332_v63, 2 }
 0x17d   : > { %v1481_v42 = vpop.permute.xlu0 %1480  ;;  %v1916_v55 = vsel %vm1915_vm7, %v1883_v43, %v1287_v50  ;;  %v1752_v14 = vsel %vm1750_vm2, %v2947_v0, %v5351_v23  ;;  %v5352_v50 = vld [vmem:[#allocation71_spill] sm:$0xff] }
 0x17e   : > { %1174 = vrot.lane.b32.xlu1 %v5349_v21, %s2984_s24  ;;  %v1949_v20 = vsel %vm1948_vm8, %v1916_v55, %v1479_v57  ;;  %v1785_v27 = vsel %vm1783_vm3, %v1752_v14, %v5352_v50  ;;  %v5354_v57 = vld [vmem:[#allocation34_spill] sm:$0xff]  ;;  %v1633_v53 = vsel %vm581_vm1, %v5355_v15, %v1632_v9  ;;  %v1141_v21 = vrot.slane %v4362_v30, 2  ;;  %v2676_v30 = vld [vmem:[%s3032_s19 + $0x90] sm:$0xff]  ;;  %v5357_v55 = vld [vmem:[#allocation3_spill] sm:$0xff] }
 0x17f   : > { %1032 = vrot.lane.b32.xlu0 %v966_v5, %s2983_s23  ;;  %v1102_v5 = vsel %vm581_vm1, %v5354_v57, %v1101_v58  ;;  %v1818_v28 = vsel %vm1816_vm4, %v1785_v27, %v3932_v34  ;;  %v2948_v34 = vld [vmem:[%s3032_s19 + $0xc8] sm:$0xff]  ;;  %v1418_v23 = vrot.slane %v2676_v30, 1  ;;  %v4485_v15 = vld [vmem:[%s3032_s19 + $0x160] sm:$0x3] }
 0x180   : > { %v1687_v24 = vpop.permute.xlu1 %1686  ;;  %v1768_v58 = vsel %vm1750_vm2, %v2948_v34, %v5356_v32 }
 0x181   : > { %v1655_v60 = vpop.permute.xlu0 %1654  ;;  %v1998_v46 = vsel %vm1981_vm9, %v1965_v10, %v1687_v24 }
 0x182   : > { %1668 = vrot.lane.b32.xlu1 %v1593_v48, %s2987_s25  ;;  %v1982_v29 = vsel %vm1981_vm9, %v1949_v20, %v1655_v60  ;;  %2863 = vmatprep.mubr.msk.f32.mxu1 %vm2030_vm10, %v1998_v46  ;;  %v1851_v48 = vsel %vm1849_vm5, %v1818_v28, %v4254_v31  ;;  %v1801_v31 = vsel %vm1783_vm3, %v1768_v58, %v5357_v55  ;;  %v4452_v20 = vld [vmem:[%s3032_s19 + $0x98] sm:$0xff] }
 0x183   : > { %1206 = vrot.lane.b32.xlu0 %v5353_v2, %s2984_s24  ;;  %2839 = vmatprep.mubr.msk.f32.mxu0 %vm2030_vm10, %v1982_v29  ;;  %v1884_v25 = vsel %vm1882_vm6, %v1851_v48, %v4328_v49  ;;  %v5358_v49 = vld [vmem:[#allocation46_spill] sm:$0xff]  ;;  %v1834_v60 = vsel %vm1816_vm4, %v1801_v31, %v4099_v13  ;;  %v1419_v13 = vrot.slane %v4452_v20, 1  ;;  %v4475_v2 = vld [vmem:[%s3032_s19 + $0x158] sm:$0xff] }
 0x184   : > { %v4426_v40 = vpop.permute.xlu1 %1162  ;;  %v1917_v63 = vsel %vm1915_vm7, %v1884_v25, %v4349_v16  ;;  %v1142_v9 = vsel %vm581_vm1, %v5358_v49, %v1141_v21  ;;  %v1867_v0 = vsel %vm1849_vm5, %v1834_v60, %v4323_v45  ;;  %v2700_v45 = vld [vmem:[%s3032_s19 + $0x150] sm:$0xff]  ;;  %v1459_v28 = vrot.slane %v4475_v2, 1  ;;  %v5359_v58 = vld [vmem:[#allocation29_spill] sm:$0xff] }
 0x185   : > { %v4434_v43 = vpop.permute.xlu0 %1020  ;;  %v1950_v10 = vsel %vm1948_vm8, %v1917_v63, %v1481_v42  ;;  %v1900_v42 = vsel %vm1882_vm6, %v1867_v0, %v4342_v18  ;;  %v1458_v57 = vrot.slane %v2700_v45, 1  ;;  %v1461_v21 = vrot.slane %v4485_v15, 1 }
 0x186   : > { %1176 = vrot.lane.b32.xlu1 %v1102_v5, %s2984_s24  ;;  %v1933_v14 = vsel %vm1915_vm7, %v1900_v42, %v4359_v47  ;;  %v1420_v47 = vsel %vm404_vm0, %v1418_v23, %v1419_v13  ;;  %v1634_v63 = vrot.slane %v2700_v45, 2  ;;  %v1635_v55 = vrot.slane %v4475_v2, 2 }
 0x187   : > { %1700 = vrot.lane.b32.xlu0 %v1633_v53, %s2987_s25  ;;  %v1966_v50 = vsel %vm1948_vm8, %v1933_v14, %v4387_v1  ;;  %v2678_v53 = vld [vmem:[%s3032_s19 + $0xa0] sm:$0x3]  ;;  %v1460_v25 = vsel %vm404_vm0, %v1458_v57, %v1459_v28  ;;  %v1462_v31 = vsel %vm404_vm0, %v1459_v28, %v1461_v21  ;;  %v2949_v14 = vld [vmem:[%s3032_s19 + $0xd8] sm:$0xff] }
 0x188   : > { %v1657_v24 = vpop.permute.xlu1 %1656  ;;  %v1421_v34 = vrot.slane %v2678_v53, 1  ;;  %v1636_v0 = vsel %vm581_vm1, %v1634_v63, %v1635_v55  ;;  %v1597_v57 = vrot.slane %v2678_v53, 2  ;;  %v5363_v28 = vld [vmem:[#allocation74_spill] sm:$0xff] }
 0x189   : > { %v1983_v16 = vsel %vm1981_vm9, %v1950_v10, %v1657_v24  ;;  %v4457_v46 = vpop.permute.xlu0 %1194  ;;  %v1594_v10 = vrot.slane %v2676_v30, 2  ;;  %v1595_v24 = vrot.slane %v4452_v20, 2 }
 0x18a   : > { %1302 = vrot.lane.b32.xlu1 %v2676_v30, %s2985_s27  ;;  %2840 = vmatmul.mubr.msk.f32.vlgmr.msra.gmra.mxu0 %vm2030_vm10, %v1983_v16  ;;  %v4507_v16 = vld [vmem:[%s3032_s19 + $0x160] sm:$0x3] }
 0x18b   : > { %1208 = vrot.lane.b32.xlu0 %v1142_v9, %s2984_s24  ;;  %v1422_v9 = vsel %vm404_vm0, %v1419_v13, %v1421_v34  ;;  %v1596_v30 = vsel %vm581_vm1, %v1594_v10, %v1595_v24  ;;  %v970_v23 = vrot.slane %v4507_v16, 1 }
 0x18c   : > { %v4469_v29 = vpop.permute.xlu1 %1164 }
 0x18d   : > { %v1689_v27 = vpop.permute.xlu0 %1688 }
 0x18e   : > { %v1999_v18 = vsel %vm1981_vm9, %v1966_v50, %v1689_v27  ;;  %1304 = vrot.lane.b32.xlu1 %v4452_v20, %s2985_s27  ;;  %v2950_v50 = vld [vmem:[%s3032_s19 + $0x18] sm:$0xff] }
 0x18f   : > { %1334 = vrot.lane.b32.xlu0 %v2700_v45, %s2985_s27  ;;  %2864 = vmatmul.mubr.msk.f32.vlgmr.msra.gmra.mxu1 %vm2030_vm10, %v1999_v18  ;;  %v5360_v45 = vld [vmem:[#allocation60_spill] sm:$0xff]  ;;  %v5361_v27 = vld [vmem:[#allocation49_spill] sm:$0xff] }
 0x190   : > { %v1291_v5 = vpop.permute.xlu1 %1290  ;;  %v1769_v13 = vsel %vm1750_vm2, %v2949_v14, %v5360_v45  ;;  %v5362_v18 = vld [vmem:[#allocation4_spill] sm:$0xff] }
 0x191   : > { %v4487_v1 = vpop.permute.xlu0 %1196 }
 0x192   : > { %1494 = vrot.lane.b32.xlu1 %v1420_v47, %s2986_s11  ;;  %v1802_v47 = vsel %vm1783_vm3, %v1769_v13, %v5362_v18 }
 0x193   : > { %1336 = vrot.lane.b32.xlu0 %v4475_v2, %s2985_s27  ;;  %v1753_v2 = vsel %vm1750_vm2, %v2950_v50, %v5361_v27 }
 0x194   : > { %v4494_v48 = vpop.permute.xlu1 %1292  ;;  %v1786_v21 = vsel %vm1783_vm3, %v1753_v2, %v5363_v28  ;;  %v2952_v2 = vld [vmem:[%s3032_s19 + $0x20] sm:$0xff] }
 0x195   : > { %v1323_v32 = vpop.permute.xlu0 %1322 }
 0x196   : > { %1034 = vrot.lane.b32.xlu1 %v5359_v58, %s2983_s23  ;;  %v5364_v58 = vld [vmem:[#allocation26_spill] sm:$0xff] }
 0x197   : > { %1526 = vrot.lane.b32.xlu0 %v1460_v25, %s2986_s11  ;;  %v1835_v25 = vsel %vm1816_vm4, %v1802_v47, %v4114_v37  ;;  %v971_v63 = vsel %vm404_vm0, %v5364_v58, %v970_v23  ;;  %v5365_v37 = vld [vmem:[#allocation39_spill] sm:$0xff] }
 0x198   : > { %v1483_v49 = vpop.permute.xlu1 %1482  ;;  %v1868_v10 = vsel %vm1849_vm5, %v1835_v25, %v4369_v56  ;;  %v2951_v56 = vld [vmem:[%s3032_s19 + $0xa0] sm:$0x3]  ;;  %v1146_v25 = vrot.slane %v4507_v16, 2  ;;  %v5371_v16 = vld [vmem:[#allocation5_spill] sm:$0xff] }
 0x199   : > { %v4504_v60 = vpop.permute.xlu0 %1324  ;;  %v1106_v14 = vrot.slane %v2951_v56, 2 }
 0x19a   : > { %1528 = vrot.lane.b32.xlu1 %v1462_v31, %s2986_s11  ;;  %v1819_v31 = vsel %vm1816_vm4, %v1786_v21, %v3949_v7  ;;  %v1598_v7 = vsel %vm581_vm1, %v1595_v24, %v1597_v57 }
 0x19b   : > { %1496 = vrot.lane.b32.xlu0 %v1422_v9, %s2986_s11  ;;  %v1852_v53 = vsel %vm1849_vm5, %v1819_v31, %v4265_v41 }
 0x19c   : > { %v4512_v42 = vpop.permute.xlu1 %1022 }
 0x19d   : > { %v1515_v20 = vpop.permute.xlu0 %1514 }
 0x19e   : > { %1702 = vrot.lane.b32.xlu1 %v1636_v0, %s2987_s25  ;;  %v1901_v0 = vsel %vm1882_vm6, %v1868_v10, %v4457_v46  ;;  %v1637_v46 = vrot.slane %v4485_v15, 2  ;;  %v5368_v15 = vld [vmem:[#allocation54_spill] sm:$0xff] }
 0x19f   : > { %1670 = vrot.lane.b32.xlu0 %v1596_v30, %s2987_s25  ;;  %v1885_v30 = vsel %vm1882_vm6, %v1852_v53, %v4426_v40  ;;  %v1934_v23 = vsel %vm1915_vm7, %v1901_v0, %v1323_v32  ;;  %v5366_v32 = vld [vmem:[#allocation53_spill] sm:$0xff]  ;;  %v2953_v10 = vld [vmem:[%s3032_s19 + $0xe0] sm:$0xff]  ;;  %v5370_v53 = vld [vmem:[#allocation59_spill] sm:$0xff] }
 0x1a0   : > { %v1517_v34 = vpop.permute.xlu1 %1516  ;;  %v1918_v41 = vsel %vm1915_vm7, %v1885_v30, %v1291_v5  ;;  %v1967_v45 = vsel %vm1948_vm8, %v1934_v23, %v1515_v20  ;;  %v1754_v18 = vsel %vm1750_vm2, %v2952_v2, %v5366_v32  ;;  %v5367_v5 = vld [vmem:[#allocation73_spill] sm:$0xff]  ;;  %v1638_v21 = vsel %vm581_vm1, %v1635_v55, %v1637_v46  ;;  %v2679_v55 = vld [vmem:[%s3032_s19 + $0xa8] sm:$0xff] }
 0x1a1   : > { %v1485_v9 = vpop.permute.xlu0 %1484  ;;  %v1951_v50 = vsel %vm1948_vm8, %v1918_v41, %v1483_v49  ;;  %v1787_v20 = vsel %vm1783_vm3, %v1754_v18, %v5367_v5  ;;  %v5369_v49 = vld [vmem:[#allocation36_spill] sm:$0xff]  ;;  %v2681_v5 = vld [vmem:[%s3032_s19 + $0xb8] sm:$0x3] }
 0x1a2   : > { %1178 = vrot.lane.b32.xlu1 %v5365_v37, %s2984_s24  ;;  %v1107_v47 = vsel %vm581_vm1, %v5369_v49, %v1106_v14  ;;  %v1820_v57 = vsel %vm1816_vm4, %v1787_v20, %v3945_v12  ;;  %v1770_v12 = vsel %vm1750_vm2, %v2953_v10, %v5370_v53  ;;  %v1599_v10 = vrot.slane %v2679_v55, 2 }
 0x1a3   : > { %1036 = vrot.lane.b32.xlu0 %v971_v63, %s2983_s23  ;;  %v1853_v58 = vsel %vm1849_vm5, %v1820_v57, %v4262_v3  ;;  %v1803_v3 = vsel %vm1783_vm3, %v1770_v12, %v5371_v16  ;;  %v2660_v16 = vld [vmem:[%s3032_s19 + $0x178] sm:$0x3] }
 0x1a4   : > { %v1691_v13 = vpop.permute.xlu1 %1690  ;;  %v1886_v31 = vsel %vm1882_vm6, %v1853_v58, %v4469_v29  ;;  %v5372_v29 = vld [vmem:[#allocation48_spill] sm:$0xff]  ;;  %v1836_v56 = vsel %vm1816_vm4, %v1803_v3, %v4111_v19 }
 0x1a5   : > { %v2000_v27 = vsel %vm1981_vm9, %v1967_v45, %v1691_v13  ;;  %v1659_v40 = vpop.permute.xlu0 %1658  ;;  %v1919_v0 = vsel %vm1915_vm7, %v1886_v31, %v4494_v48  ;;  %v1147_v23 = vsel %vm581_vm1, %v5372_v29, %v1146_v25  ;;  %v1869_v41 = vsel %vm1849_vm5, %v1836_v56, %v4434_v43  ;;  %v2703_v43 = vld [vmem:[%s3032_s19 + $0x168] sm:$0xff] }
 0x1a6   : > { %v1984_v24 = vsel %vm1981_vm9, %v1951_v50, %v1659_v40  ;;  %1672 = vrot.lane.b32.xlu1 %v1598_v7, %s2987_s25  ;;  %2866 = vmatprep.mubr.msk.f32.mxu1 %vm2030_vm10, %v2000_v27  ;;  %v1952_v37 = vsel %vm1948_vm8, %v1919_v0, %v1485_v9  ;;  %v4592_v7 = vld [vmem:[%s3032_s19 + $0xb0] sm:$0xff]  ;;  %v1902_v9 = vsel %vm1882_vm6, %v1869_v41, %v4487_v1  ;;  %v1423_v45 = vrot.slane %v2679_v55, 1 }
 0x1a7   : > { %1210 = vrot.lane.b32.xlu0 %v5368_v15, %s2984_s24  ;;  %2842 = vmatprep.mubr.msk.f32.mxu0 %vm2030_vm10, %v1984_v24  ;;  %v1424_v13 = vrot.slane %v4592_v7, 1  ;;  %v1935_v19 = vsel %vm1915_vm7, %v1902_v9, %v4504_v60  ;;  %v4612_v40 = vld [vmem:[%s3032_s19 + $0x170] sm:$0xff]  ;;  %v1463_v2 = vrot.slane %v2703_v43, 1  ;;  %v2705_v24 = vld [vmem:[%s3032_s19 + $0x178] sm:$0x3]  ;;  %v1639_v25 = vrot.slane %v2703_v43, 2 }
 0x1a8   : > { %v4568_v28 = vpop.permute.xlu1 %1166  ;;  %v1968_v50 = vsel %vm1948_vm8, %v1935_v19, %v1517_v34  ;;  %v1464_v18 = vrot.slane %v4612_v40, 1  ;;  %v1466_v20 = vrot.slane %v2705_v24, 1  ;;  %v1640_v58 = vrot.slane %v4612_v40, 2 }
 0x1a9   : > { %v4574_v63 = vpop.permute.xlu0 %1024  ;;  %v1425_v60 = vsel %vm404_vm0, %v1423_v45, %v1424_v13  ;;  %v1600_v53 = vrot.slane %v4592_v7, 2  ;;  %v975_v29 = vrot.slane %v2660_v16, 1  ;;  %v5375_v45 = vld [vmem:[#allocation8_spill] sm:$0xff]  ;;  %v1870_v19 = vsel %vm1849_vm5, %v4138_v59, %v4512_v42 }
 0x1aa   : > { %1180 = vrot.lane.b32.xlu1 %v1107_v47, %s2984_s24  ;;  %v1465_v49 = vsel %vm404_vm0, %v1463_v2, %v1464_v18  ;;  %v1426_v47 = vrot.slane %v2681_v5, 1  ;;  %v1467_v31 = vsel %vm404_vm0, %v1464_v18, %v1466_v20  ;;  %v1602_v18 = vrot.slane %v2681_v5, 2 }
 0x1ab   : > { %1704 = vrot.lane.b32.xlu0 %v1638_v21, %s2987_s25  ;;  %v5373_v21 = vld [vmem:[#allocation30_spill] sm:$0xff]  ;;  %v1601_v56 = vsel %vm581_vm1, %v1599_v10, %v1600_v53  ;;  %v1151_v5 = vrot.slane %v2660_v16, 2  ;;  %v5378_v10 = vld [vmem:[#allocation52_spill] sm:$0xff] }
 0x1ac   : > { %v1661_v30 = vpop.permute.xlu1 %1660  ;;  %v1427_v0 = vsel %vm404_vm0, %v1424_v13, %v1426_v47  ;;  %v1603_v47 = vsel %vm581_vm1, %v1600_v53, %v1602_v18  ;;  %v4740_v18 = vld [vmem:[%s3032_s19 + $0xd0] sm:$0x3] }
 0x1ad   : > { %v1985_v48 = vsel %vm1981_vm9, %v1952_v37, %v1661_v30  ;;  %v1199_v14 = vpop.permute.xlu0 %1198  ;;  %v2636_v37 = vld [vmem:[%s3032_s19 + $0xb8] sm:$0x3]  ;;  %v1641_v30 = vsel %vm581_vm1, %v1639_v25, %v1640_v58  ;;  %v1152_v53 = vsel %vm581_vm1, %v5378_v10, %v1151_v5  ;;  %v2663_v10 = vld [vmem:[%s3032_s19 + $0x190] sm:$0x3] }
 0x1ae   : > { %1306 = vrot.lane.b32.xlu1 %v2679_v55, %s2985_s27  ;;  %2843 = vmatmul.mubr.msk.f32.gmra.mxu0 %vm2030_vm10, %v1985_v48  ;;  %v935_v55 = vrot.slane %v2636_v37, 1  ;;  %v5380_v5 = vld [vmem:[#allocation13_spill] sm:$0xff] }
 0x1af   : > { %1212 = vrot.lane.b32.xlu0 %v1147_v23, %s2984_s24 }
 0x1b0   : > { %v4607_v46 = vpop.permute.xlu1 %1168  ;;  %v936_v13 = vsel %vm404_vm0, %v5375_v45, %v935_v55  ;;  %v2682_v55 = vld [vmem:[%s3032_s19 + $0xc0] sm:$0xff] }
 0x1b1   : > { %v1693_v27 = vpop.permute.xlu0 %1692  ;;  %v1428_v45 = vrot.slane %v2682_v55, 1 }
 0x1b2   : > { %v2001_v1 = vsel %vm1981_vm9, %v1968_v50, %v1693_v27  ;;  %1308 = vrot.lane.b32.xlu1 %v4592_v7, %s2985_s27  ;;  %v5374_v7 = vld [vmem:[#allocation28_spill] sm:$0xff]  ;;  %v1854_v50 = vsel %vm1849_vm5, %v3971_v33, %v4275_v17  ;;  %v1903_v27 = vsel %vm1882_vm6, %v1870_v19, %v1199_v14 }
 0x1b3   : > { %1338 = vrot.lane.b32.xlu0 %v2703_v43, %s2985_s27  ;;  %2867 = vmatmul.mubr.msk.f32.gmra.mxu1 %vm2030_vm10, %v2001_v1  ;;  %v976_v41 = vsel %vm404_vm0, %v5374_v7, %v975_v29  ;;  %v4713_v7 = vld [vmem:[%s3032_s19 + $0xc8] sm:$0xff] }
 0x1b4   : > { %v1295_v32 = vpop.permute.xlu1 %1294 }
 0x1b5   : > { %v4622_v34 = vpop.permute.xlu0 %1200 }
 0x1b6   : > { %1498 = vrot.lane.b32.xlu1 %v1425_v60, %s2986_s11  ;;  %v1642_v60 = vrot.slane %v2705_v24, 2  ;;  %v5377_v24 = vld [vmem:[#allocation41_spill] sm:$0xff] }
 0x1b7   : > { %1340 = vrot.lane.b32.xlu0 %v4612_v40, %s2985_s27  ;;  %v1887_v40 = vsel %vm1882_vm6, %v1854_v50, %v4568_v28  ;;  %v5376_v28 = vld [vmem:[#allocation56_spill] sm:$0xff] }
 0x1b8   : > { %v1297_v15 = vpop.permute.xlu1 %1296  ;;  %v1920_v2 = vsel %vm1915_vm7, %v1887_v40, %v1295_v32  ;;  %v1643_v32 = vsel %vm581_vm1, %v1640_v58, %v1642_v60 }
 0x1b9   : > { %v1327_v57 = vpop.permute.xlu0 %1326 }
 0x1ba   : > { %1038 = vrot.lane.b32.xlu1 %v5373_v21, %s2983_s23  ;;  %v1936_v1 = vsel %vm1915_vm7, %v1903_v27, %v1327_v57  ;;  %v1111_v57 = vrot.slane %v2636_v37, 2  ;;  %v1855_v21 = vsel %vm1849_vm5, %v3968_v6, %v4272_v51  ;;  %v5379_v51 = vld [vmem:[#allocation38_spill] sm:$0xff] }
 0x1bb   : > { %1530 = vrot.lane.b32.xlu0 %v1465_v49, %s2986_s11  ;;  %v2955_v27 = vld [vmem:[%s3032_s19 + $0x180] sm:$0xff] }
 0x1bc   : > { %v1487_v12 = vpop.permute.xlu1 %1486  ;;  %v977_v40 = vrot.slane %v2955_v27, 1 }
 0x1bd   : > { %v1329_v3 = vpop.permute.xlu0 %1328  ;;  %v1953_v33 = vsel %vm1948_vm8, %v1920_v2, %v1487_v12 }
 0x1be   : > { %1532 = vrot.lane.b32.xlu1 %v1467_v31, %s2986_s11  ;;  %v1888_v31 = vsel %vm1882_vm6, %v1855_v21, %v4607_v46  ;;  %v1605_v21 = vrot.slane %v4713_v7, 2 }
 0x1bf   : > { %1500 = vrot.lane.b32.xlu0 %v1427_v0, %s2986_s11  ;;  %v1921_v58 = vsel %vm1915_vm7, %v1888_v31, %v1297_v15  ;;  %v1112_v0 = vsel %vm581_vm1, %v5379_v51, %v1111_v57  ;;  %v1871_v15 = vsel %vm1849_vm5, %v4135_v35, %v4574_v63  ;;  %v1604_v57 = vrot.slane %v2682_v55, 2 }
 0x1c0   : > { %v4641_v23 = vpop.permute.xlu1 %1026  ;;  %v1904_v37 = vsel %vm1882_vm6, %v1871_v15, %v4622_v34  ;;  %v980_v51 = vrot.slane %v2663_v10, 1 }
 0x1c1   : > { %v1519_v48 = vpop.permute.xlu0 %1518  ;;  %v1937_v29 = vsel %vm1915_vm7, %v1904_v37, %v1329_v3  ;;  %v1872_v37 = vsel %vm1849_vm5, %v4158_v4, %v4641_v23 }
 0x1c2   : > { %1706 = vrot.lane.b32.xlu1 %v1641_v30, %s2987_s25  ;;  %v1969_v59 = vsel %vm1948_vm8, %v1936_v1, %v1519_v48  ;;  %v2706_v30 = vld [vmem:[%s3032_s19 + $0x180] sm:$0xff]  ;;  %v4709_v48 = vld [vmem:[%s3032_s19 + $0x188] sm:$0xff] }
 0x1c3   : > { %1674 = vrot.lane.b32.xlu0 %v1601_v56, %s2987_s25  ;;  %v1468_v34 = vrot.slane %v2706_v30, 1  ;;  %v1469_v3 = vrot.slane %v4709_v48, 1 }
 0x1c4   : > { %v1521_v9 = vpop.permute.xlu1 %1520 }
 0x1c5   : > { %v1489_v43 = vpop.permute.xlu0 %1488  ;;  %v1970_v35 = vsel %vm1948_vm8, %v1937_v29, %v1521_v9  ;;  %v1429_v9 = vrot.slane %v4713_v7, 1  ;;  %v1470_v1 = vsel %vm404_vm0, %v1468_v34, %v1469_v3 }
 0x1c6   : > { %1040 = vrot.lane.b32.xlu1 %v976_v41, %s2983_s23  ;;  %v1954_v12 = vsel %vm1948_vm8, %v1921_v58, %v1489_v43  ;;  %v4726_v43 = vld [vmem:[%s3032_s19 + $0x188] sm:$0xff] }
 0x1c7   : > { %1008 = vrot.lane.b32.xlu0 %v936_v13, %s2983_s23  ;;  %v978_v50 = vrot.slane %v4726_v43, 1  ;;  %v1430_v2 = vsel %vm404_vm0, %v1428_v45, %v1429_v9  ;;  %v1154_v29 = vrot.slane %v4726_v43, 2 }
 0x1c8   : > { %v1695_v42 = vpop.permute.xlu1 %1694 }
 0x1c9   : > { %v2002_v17 = vsel %vm1981_vm9, %v1969_v59, %v1695_v42  ;;  %v1663_v14 = vpop.permute.xlu0 %1662  ;;  %v4737_v59 = vld [vmem:[%s3032_s19 + $0x190] sm:$0x3]  ;;  %v981_v4 = vsel %vm404_vm0, %v978_v50, %v980_v51 }
 0x1ca   : > { %v1986_v20 = vsel %vm1981_vm9, %v1953_v33, %v1663_v14  ;;  %1214 = vrot.lane.b32.xlu1 %v5376_v28, %s2984_s24  ;;  %2869 = vmatprep.mubr.msk.f32.mxu1 %vm2030_vm10, %v2002_v17  ;;  %v979_v33 = vsel %vm404_vm0, %v977_v40, %v978_v50  ;;  %v1471_v17 = vrot.slane %v4737_v59, 1  ;;  %v1607_v50 = vrot.slane %v4740_v18, 2 }
 0x1cb   : > { %1182 = vrot.lane.b32.xlu0 %v5377_v24, %s2984_s24  ;;  %2845 = vmatprep.mubr.msk.f32.mxu0 %vm2030_vm10, %v1986_v20  ;;  %v1431_v20 = vrot.slane %v4740_v18, 1  ;;  %v1644_v24 = vrot.slane %v2706_v30, 2  ;;  %v1156_v18 = vrot.slane %v2663_v10, 2  ;;  %v2710_v10 = vld [vmem:[%s3032_s19 + $0x1a0] sm:$0xff] }
 0x1cc   : > { %v4674_v49 = vpop.permute.xlu1 %1170  ;;  %v1474_v51 = vrot.slane %v2710_v10, 1 }
 0x1cd   : > { %v4680_v25 = vpop.permute.xlu0 %1028  ;;  %v1432_v58 = vsel %vm404_vm0, %v1429_v9, %v1431_v20  ;;  %v1647_v9 = vrot.slane %v4737_v59, 2  ;;  %v5382_v59 = vld [vmem:[#allocation42_spill] sm:$0xff] }
 0x1ce   : > { %1708 = vrot.lane.b32.xlu1 %v1643_v32, %s2987_s25  ;;  %v1645_v32 = vrot.slane %v4709_v48, 2 }
 0x1cf   : > { %1676 = vrot.lane.b32.xlu0 %v1603_v47, %s2987_s25  ;;  %v1472_v47 = vsel %vm404_vm0, %v1469_v3, %v1471_v17 }
 0x1d0   : > { %v1665_v6 = vpop.permute.xlu1 %1664 }
 0x1d1   : > { %v1987_v46 = vsel %vm1981_vm9, %v1954_v12, %v1665_v6  ;;  %v4693_v16 = vpop.permute.xlu0 %1202  ;;  %v2639_v12 = vld [vmem:[%s3032_s19 + $0xd0] sm:$0x3]  ;;  %v1646_v6 = vsel %vm581_vm1, %v1644_v24, %v1645_v32  ;;  %v1157_v24 = vsel %vm581_vm1, %v1154_v29, %v1156_v18 }
 0x1d2   : > { %1216 = vrot.lane.b32.xlu1 %v1152_v53, %s2984_s24  ;;  %2846 = vmatmul.mubr.msk.f32.gmra.mxu0 %vm2030_vm10, %v1987_v46  ;;  %v1606_v46 = vsel %vm581_vm1, %v1604_v57, %v1605_v21  ;;  %v940_v15 = vrot.slane %v2639_v12, 1 }
 0x1d3   : > { %1184 = vrot.lane.b32.xlu0 %v1112_v0, %s2984_s24 }
 0x1d4   : > { %v4705_v56 = vpop.permute.xlu1 %1172 }
 0x1d5   : > { %v1697_v63 = vpop.permute.xlu0 %1696 }
 0x1d6   : > { %v2003_v41 = vsel %vm1981_vm9, %v1970_v35, %v1697_v63  ;;  %1342 = vrot.lane.b32.xlu1 %v2706_v30, %s2985_s27  ;;  %v1153_v35 = vrot.slane %v2955_v27, 2  ;;  %v1857_v27 = vsel %vm1849_vm5, %v3990_v22, %v4281_v52  ;;  %v1608_v22 = vsel %vm581_vm1, %v1605_v21, %v1607_v50 }
 0x1d7   : > { %1310 = vrot.lane.b32.xlu0 %v2682_v55, %s2985_s27  ;;  %2870 = vmatmul.mubr.msk.f32.gmra.mxu1 %vm2030_vm10, %v2003_v41  ;;  %v1856_v55 = vsel %vm1849_vm5, %v3993_v44, %v4284_v11  ;;  %v5381_v11 = vld [vmem:[#allocation10_spill] sm:$0xff]  ;;  %v1116_v52 = vrot.slane %v2639_v12, 2 }
 0x1d8   : > { %v1299_v13 = vpop.permute.xlu1 %1298  ;;  %v1889_v63 = vsel %vm1882_vm6, %v1856_v55, %v4674_v49  ;;  %v2686_v12 = vld [vmem:[%s3032_s19 + $0xe0] sm:$0xff] }
 0x1d9   : > { %v4721_v19 = vpop.permute.xlu0 %1204  ;;  %v1922_v23 = vsel %vm1915_vm7, %v1889_v63, %v1299_v13  ;;  %v1155_v13 = vsel %vm581_vm1, %v1153_v35, %v1154_v29  ;;  %v2687_v29 = vld [vmem:[%s3032_s19 + $0xe8] sm:$0x3] }
 0x1da   : > { %1344 = vrot.lane.b32.xlu1 %v4709_v48, %s2985_s27  ;;  %v1905_v48 = vsel %vm1882_vm6, %v1872_v37, %v4693_v16  ;;  %v941_v16 = vsel %vm404_vm0, %v5381_v11, %v940_v15  ;;  %v1434_v15 = vrot.slane %v2686_v12, 1  ;;  %v2711_v37 = vld [vmem:[%s3032_s19 + $0x1a8] sm:$0x3] }
 0x1db   : > { %1312 = vrot.lane.b32.xlu0 %v4713_v7, %s2985_s27 }
 0x1dc   : > { %v4733_v60 = vpop.permute.xlu1 %1300 }
 0x1dd   : > { %v1331_v42 = vpop.permute.xlu0 %1330 }
 0x1de   : > { %1534 = vrot.lane.b32.xlu1 %v1470_v1, %s2986_s11  ;;  %v1938_v7 = vsel %vm1915_vm7, %v1905_v48, %v1331_v42  ;;  %v1890_v1 = vsel %vm1882_vm6, %v1857_v27, %v4705_v56  ;;  %v1648_v42 = vsel %vm581_vm1, %v1645_v32, %v1647_v9  ;;  %v1476_v48 = vrot.slane %v2711_v37, 1 }
 0x1df   : > { %1502 = vrot.lane.b32.xlu0 %v1430_v2, %s2986_s11  ;;  %v1923_v2 = vsel %vm1915_vm7, %v1890_v1, %v4733_v60  ;;  %v1873_v60 = vsel %vm1849_vm5, %v4155_v8, %v4680_v25  ;;  %v5383_v8 = vld [vmem:[#allocation40_spill] sm:$0xff]  ;;  %v1612_v27 = vrot.slane %v2687_v29, 2 }
 0x1e0   : > { %v1491_v14 = vpop.permute.xlu1 %1490  ;;  %v1906_v20 = vsel %vm1882_vm6, %v1873_v60, %v4721_v19  ;;  %v1117_v25 = vsel %vm581_vm1, %v5383_v8, %v1116_v52  ;;  %v2709_v19 = vld [vmem:[%s3032_s19 + $0x198] sm:$0xff]  ;;  %v1859_v60 = vsel %vm1849_vm5, %v4014_v36, %v4288_v39 }
 0x1e1   : > { %v4747_v28 = vpop.permute.xlu0 %1332  ;;  %v1955_v34 = vsel %vm1948_vm8, %v1922_v23, %v1491_v14  ;;  %v1649_v23 = vrot.slane %v2709_v19, 2 }
 0x1e2   : > { %1042 = vrot.lane.b32.xlu1 %v979_v33, %s2983_s23  ;;  %v1939_v32 = vsel %vm1915_vm7, %v1906_v20, %v4747_v28 }
 0x1e3   : > { %1010 = vrot.lane.b32.xlu0 %v5380_v5, %s2983_s23 }
 0x1e4   : > { %v4755_v31 = vpop.permute.xlu1 %1030 }
 0x1e5   : > { %v1523_v53 = vpop.permute.xlu0 %1522  ;;  %v1874_v1 = vsel %vm1849_vm5, %v4180_v61, %v4755_v31 }
 0x1e6   : > { %1536 = vrot.lane.b32.xlu1 %v1472_v47, %s2986_s11  ;;  %v1971_v41 = vsel %vm1948_vm8, %v1938_v7, %v1523_v53  ;;  %v1436_v7 = vrot.slane %v2687_v29, 1  ;;  %v5385_v29 = vld [vmem:[#allocation15_spill] sm:$0xff] }
 0x1e7   : > { %1504 = vrot.lane.b32.xlu0 %v1432_v58, %s2986_s11  ;;  %v2685_v58 = vld [vmem:[%s3032_s19 + $0xd8] sm:$0xff] }
 0x1e8   : > { %v1525_v0 = vpop.permute.xlu1 %1524  ;;  %v1609_v11 = vrot.slane %v2685_v58, 2 }
 0x1e9   : > { %v1493_v30 = vpop.permute.xlu0 %1492  ;;  %v1972_v47 = vsel %vm1948_vm8, %v1939_v32, %v1525_v0  ;;  %v1433_v0 = vrot.slane %v2685_v58, 1 }
 0x1ea   : > { %1710 = vrot.lane.b32.xlu1 %v1646_v6, %s2987_s25  ;;  %v1956_v33 = vsel %vm1948_vm8, %v1923_v2, %v1493_v30  ;;  %v1473_v6 = vrot.slane %v2709_v19, 1 }
 0x1eb   : > { %1678 = vrot.lane.b32.xlu0 %v1606_v46, %s2987_s25  ;;  %v1435_v63 = vsel %vm404_vm0, %v1433_v0, %v1434_v15 }
 0x1ec   : > { %v1699_v44 = vpop.permute.xlu1 %1698  ;;  %v1475_v55 = vsel %vm404_vm0, %v1473_v6, %v1474_v51 }
 0x1ed   : > { %v2004_v3 = vsel %vm1981_vm9, %v1971_v41, %v1699_v44  ;;  %v1667_v45 = vpop.permute.xlu0 %1666  ;;  %v1650_v41 = vrot.slane %v2710_v10, 2  ;;  %v1477_v44 = vsel %vm404_vm0, %v1474_v51, %v1476_v48 }
 0x1ee   : > { %v1988_v49 = vsel %vm1981_vm9, %v1955_v34, %v1667_v45  ;;  %1044 = vrot.lane.b32.xlu1 %v981_v4, %s2983_s23  ;;  %2872 = vmatprep.mubr.msk.f32.mxu1 %vm2030_vm10, %v2004_v3  ;;  %v1437_v3 = vsel %vm404_vm0, %v1434_v15, %v1436_v7 }
 0x1ef   : > { %1012 = vrot.lane.b32.xlu0 %v941_v16, %s2983_s23  ;;  %2848 = vmatprep.mubr.msk.f32.mxu0 %vm2030_vm10, %v1988_v49  ;;  %v1610_v16 = vrot.slane %v2686_v12, 2  ;;  %v1651_v49 = vsel %vm581_vm1, %v1649_v23, %v1650_v41 }
 0x1f0   : > { %v4792_v43 = vpop.permute.xlu1 %1174 }
 0x1f1   : > { %v4798_v40 = vpop.permute.xlu0 %1032  ;;  %v1611_v50 = vsel %vm581_vm1, %v1609_v11, %v1610_v16 }
 0x1f2   : > { %1218 = vrot.lane.b32.xlu1 %v1155_v13, %s2984_s24  ;;  %v1652_v13 = vrot.slane %v2711_v37, 2 }
 0x1f3   : > { %1186 = vrot.lane.b32.xlu0 %v5382_v59, %s2984_s24  ;;  %v1858_v59 = vsel %vm1849_vm5, %v4017_v62, %v4292_v26  ;;  %v1613_v62 = vsel %vm581_vm1, %v1610_v16, %v1612_v27 }
 0x1f4   : > { %v1669_v17 = vpop.permute.xlu1 %1668  ;;  %v1891_v18 = vsel %vm1882_vm6, %v1858_v59, %v4792_v43 }
 0x1f5   : > { %v1989_v14 = vsel %vm1981_vm9, %v1956_v33, %v1669_v17  ;;  %v1207_v56 = vpop.permute.xlu0 %1206  ;;  %v1653_v17 = vsel %vm581_vm1, %v1650_v41, %v1652_v13 }
 0x1f6   : > { %1712 = vrot.lane.b32.xlu1 %v1648_v42, %s2987_s25  ;;  %2849 = vmatmul.mubr.msk.f32.gmra.mxu0 %vm2030_vm10, %v1989_v14  ;;  %v1907_v42 = vsel %vm1882_vm6, %v1874_v1, %v1207_v56 }
 0x1f7   : > { %1680 = vrot.lane.b32.xlu0 %v1608_v22, %s2987_s25 }
 0x1f8   : > { %v4822_v5 = vpop.permute.xlu1 %1176 }
 0x1f9   : > { %v1701_v57 = vpop.permute.xlu0 %1700 }
 0x1fa   : > { %v2005_v21 = vsel %vm1981_vm9, %v1972_v47, %v1701_v57  ;;  %1220 = vrot.lane.b32.xlu1 %v1157_v24, %s2984_s24  ;;  %v1892_v24 = vsel %vm1882_vm6, %v1859_v60, %v4822_v5 }
 0x1fb   : > { %1188 = vrot.lane.b32.xlu0 %v1117_v25, %s2984_s24  ;;  %2873 = vmatmul.mubr.msk.f32.gmra.mxu1 %vm2030_vm10, %v2005_v21  ;;  %v1875_v21 = vsel %vm1849_vm5, %v4177_v38, %v4798_v40  ;;  %s2779_s24 = sshll.u32 %s5403_s12, 8 }
 0x1fc   : > { %v1303_v28 = vpop.permute.xlu1 %1302  ;;  %s4945_s28 = scalar_lea.vmem %s5127_s3, %s2779_s24 }
 0x1fd   : > { %v4834_v53 = vpop.permute.xlu0 %1208  ;;  %v1924_v61 = vsel %vm1915_vm7, %v1891_v18, %v1303_v28 }
 0x1fe   : > { %1346 = vrot.lane.b32.xlu1 %v2709_v19, %s2985_s27  ;;  %v1908_v36 = vsel %vm1882_vm6, %v1875_v21, %v4834_v53 }
 0x1ff   : > { %1314 = vrot.lane.b32.xlu0 %v2685_v58, %s2985_s27 }
 0x200   : > { %v1305_v46 = vpop.permute.xlu1 %1304 }
 0x201   : > { %v1335_v30 = vpop.permute.xlu0 %1334  ;;  %v1925_v32 = vsel %vm1915_vm7, %v1892_v24, %v1305_v46 }
 0x202   : > { %1348 = vrot.lane.b32.xlu1 %v2710_v10, %s2985_s27  ;;  %v1940_v33 = vsel %vm1915_vm7, %v1907_v42, %v1335_v30  ;;  %v5384_v30 = vld [vmem:[#allocation62_spill] sm:$0xff] }
 0x203   : > { %1316 = vrot.lane.b32.xlu0 %v2686_v12, %s2985_s27 }
 0x204   : > { %v1495_v35 = vpop.permute.xlu1 %1494 }
 0x205   : > { %v1337_v4 = vpop.permute.xlu0 %1336  ;;  %v1957_v26 = vsel %vm1948_vm8, %v1924_v61, %v1495_v35 }
 0x206   : > { %1538 = vrot.lane.b32.xlu1 %v1475_v55, %s2986_s11  ;;  %v1941_v39 = vsel %vm1915_vm7, %v1908_v36, %v1337_v4  ;;  %v1860_v55 = vsel %vm1849_vm5, %v5385_v29, %v5384_v30  ;;  %v5389_v29 = vld [vmem:[#allocation7_spill] sm:$0xff] }
 0x207   : > { %1506 = vrot.lane.b32.xlu0 %v1435_v63, %s2986_s11 }
 0x208   : > { %v1035_v34 = vpop.permute.xlu1 %1034 }
 0x209   : > { %v1527_v45 = vpop.permute.xlu0 %1526  ;;  %v1876_v15 = vsel %vm1849_vm5, %v4203_v54, %v1035_v34 }
 0x20a   : > { %1540 = vrot.lane.b32.xlu1 %v1477_v44, %s2986_s11  ;;  %v1973_v31 = vsel %vm1948_vm8, %v1940_v33, %v1527_v45  ;;  %v5386_v45 = vld [vmem:[#allocation23_spill] sm:$0xff] }
 0x20b   : > { %1508 = vrot.lane.b32.xlu0 %v1437_v3, %s2986_s11 }
 0x20c   : > { %v1529_v9 = vpop.permute.xlu1 %1528 }
 0x20d   : > { %v1497_v2 = vpop.permute.xlu0 %1496  ;;  %v1974_v19 = vsel %vm1948_vm8, %v1941_v39, %v1529_v9  ;;  %v5387_v9 = vld [vmem:[#allocation17_spill] sm:$0xff] }
 0x20e   : > { %1714 = vrot.lane.b32.xlu1 %v1651_v49, %s2987_s25  ;;  %v1958_v8 = vsel %vm1948_vm8, %v1925_v32, %v1497_v2 }
 0x20f   : > { %1682 = vrot.lane.b32.xlu0 %v1611_v50, %s2987_s25  ;;  %v5388_v50 = vld [vmem:[#allocation20_spill] sm:$0xff] }
 0x210   : > { %v1703_v22 = vpop.permute.xlu1 %1702  ;;  %v1861_v27 = vsel %vm1849_vm5, %v5388_v50, %v5387_v9 }
 0x211   : > { %v2006_v52 = vsel %vm1981_vm9, %v1973_v31, %v1703_v22  ;;  %v1671_v14 = vpop.permute.xlu0 %1670 }
 0x212   : > { %v1990_v43 = vsel %vm1981_vm9, %v1957_v26, %v1671_v14  ;;  %1716 = vrot.lane.b32.xlu1 %v1653_v17, %s2987_s25  ;;  %2875 = vmatprep.mubr.msk.f32.mxu1 %vm2030_vm10, %v2006_v52  ;;  %v4937_v14 = vld [vmem:[%s5126_s2] ss:$0 sm:$0xff] }
 0x213   : > { %1684 = vrot.lane.b32.xlu0 %v1613_v62, %s2987_s25  ;;  %2851 = vmatprep.mubr.msk.f32.mxu0 %vm2030_vm10, %v1990_v43 }
 0x214   : > { %v1179_v56 = vpop.permute.xlu1 %1178 }
 0x215   : > { %v1037_v20 = vpop.permute.xlu0 %1036  ;;  %v1893_v35 = vsel %vm1882_vm6, %v1860_v55, %v1179_v56 }
 0x216   : > { %v1877_v49 = vsel %vm1849_vm5, %v5386_v45, %v1037_v20 }
 0x218   : > { %v1673_v25 = vpop.permute.xlu1 %1672 }
 0x219   : > { %v1991_v47 = vsel %vm1981_vm9, %v1958_v8, %v1673_v25  ;;  %v1211_v57 = vpop.permute.xlu0 %1210 }
 0x21a   : > { %2852 = vmatmul.mubr.msk.f32.gmra.mxu0 %vm2030_vm10, %v1991_v47  ;;  %v1909_v48 = vsel %vm1882_vm6, %v1876_v15, %v1211_v57 }
 0x21c   : > { %v1181_v5 = vpop.permute.xlu1 %1180 }
 0x21d   : > { %v1705_v28 = vpop.permute.xlu0 %1704  ;;  %v1894_v2 = vsel %vm1882_vm6, %v1861_v27, %v1181_v5  ;;  %v5392_v27 = vld [vmem:[#allocation14_spill] sm:$0xff] }
 0x21e   : > { %v2007_v58 = vsel %vm1981_vm9, %v1974_v19, %v1705_v28 }
 0x21f   : > { %2876 = vmatmul.mubr.msk.f32.gmra.mxu1 %vm2030_vm10, %v2007_v58 }
 0x220   : > { %v1307_v10 = vpop.permute.xlu1 %1306 }
 0x221   : > { %v1213_v12 = vpop.permute.xlu0 %1212  ;;  %v1926_v7 = vsel %vm1915_vm7, %v1893_v35, %v1307_v10  ;;  %v5390_v35 = vld [vmem:[#allocation18_spill] sm:$0xff] }
 0x222   : > { %v1910_v1 = vsel %vm1882_vm6, %v1877_v49, %v1213_v12 }
 0x224   : > { %v1309_v6 = vpop.permute.xlu1 %1308 }
 0x225   : > { %v1339_v51 = vpop.permute.xlu0 %1338  ;;  %v1927_v42 = vsel %vm1915_vm7, %v1894_v2, %v1309_v6 }
 0x226   : > { %v1942_v63 = vsel %vm1915_vm7, %v1909_v48, %v1339_v51 }
 0x228   : > { %v1499_v38 = vpop.permute.xlu1 %1498 }
 0x229   : > { %v1341_v40 = vpop.permute.xlu0 %1340  ;;  %v1959_v41 = vsel %vm1948_vm8, %v1926_v7, %v1499_v38 }
 0x22a   : > { %v1943_v59 = vsel %vm1915_vm7, %v1910_v1, %v1341_v40 }
 0x22c   : > { %v4894_v0 = vpop.permute.xlu1 %1038 }
 0x22d   : > { %v1531_v46 = vpop.permute.xlu0 %1530  ;;  %v1878_v55 = vsel %vm1849_vm5, %v5389_v29, %v4894_v0 }
 0x22e   : > { %v1975_v4 = vsel %vm1948_vm8, %v1942_v63, %v1531_v46  ;;  %v5391_v63 = vld [vmem:[#allocation85_spill] sm:$0xff] }
 0x22f   : > { %v1862_v7 = vsel %vm1849_vm5, %v5391_v63, %v5390_v35 }
 0x230   : > { %v1533_v53 = vpop.permute.xlu1 %1532 }
 0x231   : > { %v1501_v37 = vpop.permute.xlu0 %1500  ;;  %v1976_v18 = vsel %vm1948_vm8, %v1943_v59, %v1533_v53  ;;  %v5393_v59 = vld [vmem:[#allocation84_spill] sm:$0xff] }
 0x232   : > { %v1960_v17 = vsel %vm1948_vm8, %v1927_v42, %v1501_v37 }
 0x234   : > { %v1707_v23 = vpop.permute.xlu1 %1706 }
 0x235   : > { %v2008_v54 = vsel %vm1981_vm9, %v1975_v4, %v1707_v23  ;;  %v1675_v44 = vpop.permute.xlu0 %1674 }
 0x236   : > { %v1992_v11 = vsel %vm1981_vm9, %v1959_v41, %v1675_v44  ;;  %2878 = vmatprep.mubr.msk.f32.mxu1 %vm2030_vm10, %v2008_v54 }
 0x237   : > { %2854 = vmatprep.mubr.msk.f32.mxu0 %vm2030_vm10, %v1992_v11 }
 0x238   : > { %v4911_v16 = vpop.permute.xlu1 %1040 }
 0x239   : > { %v4913_v34 = vpop.permute.xlu0 %1008  ;;  %v1879_v1 = vsel %vm1849_vm5, %v5392_v27, %v4911_v16 }
 0x23a   : > { %v1863_v42 = vsel %vm1849_vm5, %v5393_v59, %v4913_v34 }
 0x23c   : > { %v1215_v3 = vpop.permute.xlu1 %1214 }
 0x23d   : > { %v1183_v13 = vpop.permute.xlu0 %1182  ;;  %v1911_v4 = vsel %vm1882_vm6, %v1878_v55, %v1215_v3 }
 0x23e   : > { %v1895_v23 = vsel %vm1882_vm6, %v1862_v7, %v1183_v13  ;;  %v5395_v7 = vld [vmem:[#allocation87_spill] sm:$0xff] }
 0x240   : > { %v1709_v33 = vpop.permute.xlu1 %1708 }
 0x241   : > { %v2009_v61 = vsel %vm1981_vm9, %v1976_v18, %v1709_v33  ;;  %v1677_v31 = vpop.permute.xlu0 %1676 }
 0x242   : > { %v1993_v22 = vsel %vm1981_vm9, %v1960_v17, %v1677_v31  ;;  %2879 = vmatmul.mubr.msk.f32.gmra.mxu1 %vm2030_vm10, %v2009_v61 }
 0x243   : > { %2855 = vmatmul.mubr.msk.f32.gmra.mxu0 %vm2030_vm10, %v1993_v22 }
 0x244   : > { %v4930_v62 = vpop.permute.xlu1 %1216 }
 0x245   : > { %v4932_v26 = vpop.permute.xlu0 %1184  ;;  %v1912_v18 = vsel %vm1882_vm6, %v1879_v1, %v4930_v62 }
 0x246   : > { %v1896_v33 = vsel %vm1882_vm6, %v1863_v42, %v4932_v26 }
 0x248   : > { %v1343_v52 = vpop.permute.xlu1 %1342 }
 0x249   : > { %v1311_v43 = vpop.permute.xlu0 %1310  ;;  %v1944_v41 = vsel %vm1915_vm7, %v1911_v4, %v1343_v52 }
 0x24a   : > { %v2841_v56 = vpop.f32.mrf.mxu0  ;;  %v1928_v54 = vsel %vm1915_vm7, %v1895_v23, %v1311_v43 }
 0x24b   : > { %v2199_v60 = vadd.f32 %v2841_v56, %v4937_v14 }
 0x24c   : > { %v1345_v20 = vpop.permute.xlu1 %1344  ;;  %v2193_v24 = vpop.f32.mrf.mxu0 }
 0x24d   : > { %vm2353_vm11 = vcmp.ge.f32.partialorder %v2199_v60, 0.0  ;;  %v2385_v32 = vmul.f32 0.1, %v2199_v60  ;;  %v2194_v8 = vadd.f32 %v4937_v14, %v2193_v24  ;;  %v1313_v25 = vpop.permute.xlu0 %1312  ;;  %v1945_v17 = vsel %vm1915_vm7, %v1912_v18, %v1345_v20 }
 0x24e   : > { %v1929_v61 = vsel %vm1915_vm7, %v1896_v33, %v1313_v25 }
 0x24f   : > { %v2417_v47 = vsel %vm2353_vm11, %v2199_v60, %v2385_v32  ;;  %vm2352_vm12 = vcmp.ge.f32.partialorder %v2194_v8, 0.0  ;;  %v2384_v57 = vmul.f32 0.1, %v2194_v8  ;;  %v2865_v21 = vpop.f32.mrf.mxu1 }
 0x250   : > { %v2746_v36 = vadd.f32 -0.4, %v2417_v47  ;;  %v2279_v39 = vadd.f32 %v2865_v21, %v4937_v14  ;;  %v1535_v5 = vpop.permute.xlu1 %1534 }
 0x251   : > { %v2416_v19 = vsel %vm2352_vm12, %v2194_v8, %v2384_v57  ;;  %v2273_v28 = vpop.f32.mrf.mxu1  ;;  %v1503_v58 = vpop.permute.xlu0 %1502  ;;  %v1977_v44 = vsel %vm1948_vm8, %v1944_v41, %v1535_v5 }
 0x252   : > { %2481 = vst.msk [vmem:[%s4945_s28 + $0x8] sm:$0xff] %vm1750_vm2, %v2746_v36  ;;  %v2745_v10 = vadd.f32 -0.4, %v2416_v19  ;;  %vm2369_vm13 = vcmp.ge.f32.partialorder %v2279_v39, 0.0  ;;  %v2401_v12 = vmul.f32 0.1, %v2279_v39  ;;  %v2274_v6 = vadd.f32 %v4937_v14, %v2273_v28 }
 0x253   : > { %v1961_v0 = vsel %vm1948_vm8, %v1928_v54, %v1503_v58 }
 0x254   : > { %2480 = vst.msk [vmem:[%s4945_s28] sm:$0xff] %vm1750_vm2, %v2745_v10  ;;  %v2433_v51 = vsel %vm2369_vm13, %v2279_v39, %v2401_v12  ;;  %vm2368_vm14 = vcmp.ge.f32.partialorder %v2274_v6, 0.0  ;;  %v2400_v38 = vmul.f32 0.1, %v2274_v6  ;;  %v4953_v40 = vpop.permute.xlu1 %1042 }
 0x255   : > { %v2762_v46 = vadd.f32 -0.4, %v2433_v51  ;;  %v4955_v53 = vpop.permute.xlu0 %1010 }
 0x256   : > { %v2432_v15 = vsel %vm2368_vm14, %v2274_v6, %v2400_v38  ;;  %v1864_v4 = vsel %vm1849_vm5, %v5395_v7, %v4955_v53 }
 0x257   : > { %2497 = vst.msk [vmem:[%s4945_s28 + $0x88] sm:$0xff] %vm1750_vm2, %v2762_v46  ;;  %v2761_v37 = vadd.f32 -0.4, %v2432_v15 }
 0x258   : > { %v1537_v30 = vpop.permute.xlu1 %1536 }
 0x259   : > { %2496 = vst.msk [vmem:[%s4945_s28 + $0x80] sm:$0xff] %vm1750_vm2, %v2761_v37  ;;  %v1505_v48 = vpop.permute.xlu0 %1504  ;;  %v1978_v31 = vsel %vm1948_vm8, %v1945_v17, %v1537_v30 }
 0x25a   : > { %v1962_v16 = vsel %vm1948_vm8, %v1929_v61, %v1505_v48  ;;  %v5394_v48 = vld [vmem:[#allocation61_spill] sm:$0xff] }
 0x25b   : > { %v1880_v35 = vsel %vm1849_vm5, %v5394_v48, %v4953_v40  ;;  %v5396_v40 = vld [vmem:[#allocation6_spill] sm:$0xff] }
 0x25c   : > { %v1711_v11 = vpop.permute.xlu1 %1710 }
 0x25d   : > { %v2010_v45 = vsel %vm1981_vm9, %v1977_v44, %v1711_v11  ;;  %v1679_v49 = vpop.permute.xlu0 %1678 }
 0x25e   : > { %v1994_v9 = vsel %vm1981_vm9, %v1961_v0, %v1679_v49  ;;  %2881 = vmatprep.mubr.msk.f32.mxu1 %vm2030_vm10, %v2010_v45 }
 0x25f   : > { %2857 = vmatprep.mubr.msk.f32.mxu0 %vm2030_vm10, %v1994_v9 }
 0x260   : > { %v4977_v3 = vpop.permute.xlu1 %1044 }
 0x261   : > { %v4979_v13 = vpop.permute.xlu0 %1012  ;;  %v1881_v45 = vsel %vm1849_vm5, %v5396_v40, %v4977_v3 }
 0x264   : > { %v1219_v50 = vpop.permute.xlu1 %1218 }
 0x265   : > { %v1187_v2 = vpop.permute.xlu0 %1186  ;;  %v1913_v23 = vsel %vm1882_vm6, %v1880_v35, %v1219_v50  ;;  %v5397_v50 = vld [vmem:[#allocation86_spill] sm:$0xff] }
 0x266   : > { %v1897_v41 = vsel %vm1882_vm6, %v1864_v4, %v1187_v2  ;;  %v1865_v27 = vsel %vm1849_vm5, %v5397_v50, %v4979_v13 }
 0x268   : > { %v1713_v22 = vpop.permute.xlu1 %1712 }
 0x269   : > { %v2011_v52 = vsel %vm1981_vm9, %v1978_v31, %v1713_v22  ;;  %v1681_v43 = vpop.permute.xlu0 %1680 }
 0x26a   : > { %v1995_v34 = vsel %vm1981_vm9, %v1962_v16, %v1681_v43  ;;  %2882 = vmatmul.mubr.msk.f32.gmra.mxu1 %vm2030_vm10, %v2011_v52 }
 0x26b   : > { %2858 = vmatmul.mubr.msk.f32.gmra.mxu0 %vm2030_vm10, %v1995_v34 }
 0x26c   : > { %v1221_v62 = vpop.permute.xlu1 %1220 }
 0x26d   : > { %v1189_v26 = vpop.permute.xlu0 %1188  ;;  %v1914_v1 = vsel %vm1882_vm6, %v1881_v45, %v1221_v62 }
 0x26e   : > { %v2844_v56 = vpop.f32.mrf.mxu0  ;;  %v1898_v59 = vsel %vm1882_vm6, %v1865_v27, %v1189_v26 }
 0x26f   : > { %v2209_v60 = vadd.f32 %v2844_v56, %v4937_v14 }
 0x270   : > { %v1347_v20 = vpop.permute.xlu1 %1346  ;;  %v2203_v24 = vpop.f32.mrf.mxu0 }
 0x271   : > { %vm2355_vm15 = vcmp.ge.f32.partialorder %v2209_v60, 0.0  ;;  %v2387_v32 = vmul.f32 0.1, %v2209_v60  ;;  %v2204_v8 = vadd.f32 %v4937_v14, %v2203_v24  ;;  %v1315_v25 = vpop.permute.xlu0 %1314  ;;  %v1946_v54 = vsel %vm1915_vm7, %v1913_v23, %v1347_v20 }
 0x272   : > { %v1930_v44 = vsel %vm1915_vm7, %v1897_v41, %v1315_v25 }
 0x273   : > { %v2419_v47 = vsel %vm2355_vm15, %v2209_v60, %v2387_v32  ;;  %vm2354_vm0 = vcmp.ge.f32.partialorder %v2204_v8, 0.0  ;;  %v2386_v57 = vmul.f32 0.1, %v2204_v8  ;;  %v2868_v21 = vpop.f32.mrf.mxu1 }
 0x274   : > { %v2748_v36 = vadd.f32 -0.4, %v2419_v47  ;;  %v2289_v39 = vadd.f32 %v2868_v21, %v4937_v14  ;;  %v1349_v5 = vpop.permute.xlu1 %1348 }
 0x275   : > { %v2418_v19 = vsel %vm2354_vm0, %v2204_v8, %v2386_v57  ;;  %v2283_v28 = vpop.f32.mrf.mxu1  ;;  %v1317_v58 = vpop.permute.xlu0 %1316  ;;  %v1947_v42 = vsel %vm1915_vm7, %v1914_v1, %v1349_v5 }
 0x276   : > { %2483 = vst.msk [vmem:[%s4945_s28 + $0x18] sm:$0xff] %vm1750_vm2, %v2748_v36  ;;  %v2747_v10 = vadd.f32 -0.4, %v2418_v19  ;;  %vm2371_vm1 = vcmp.ge.f32.partialorder %v2289_v39, 0.0  ;;  %v2403_v12 = vmul.f32 0.1, %v2289_v39  ;;  %v2284_v6 = vadd.f32 %v4937_v14, %v2283_v28 }
 0x277   : > { %v1931_v3 = vsel %vm1915_vm7, %v1898_v59, %v1317_v58 }
 0x278   : > { %2482 = vst.msk [vmem:[%s4945_s28 + $0x10] sm:$0xff] %vm1750_vm2, %v2747_v10  ;;  %v2435_v51 = vsel %vm2371_vm1, %v2289_v39, %v2403_v12  ;;  %vm2370_vm3 = vcmp.ge.f32.partialorder %v2284_v6, 0.0  ;;  %v2402_v38 = vmul.f32 0.1, %v2284_v6  ;;  %v1539_v46 = vpop.permute.xlu1 %1538 }
 0x279   : > { %v2764_v15 = vadd.f32 -0.4, %v2435_v51  ;;  %v1507_v37 = vpop.permute.xlu0 %1506  ;;  %v1979_v11 = vsel %vm1948_vm8, %v1946_v54, %v1539_v46 }
 0x27a   : > { %v2434_v30 = vsel %vm2370_vm3, %v2284_v6, %v2402_v38  ;;  %v1963_v49 = vsel %vm1948_vm8, %v1930_v44, %v1507_v37 }
 0x27b   : > { %2499 = vst.msk [vmem:[%s4945_s28 + $0x98] sm:$0xff] %vm1750_vm2, %v2764_v15  ;;  %v2763_v29 = vadd.f32 -0.4, %v2434_v30 }
 0x27c   : > { %v1541_v55 = vpop.permute.xlu1 %1540 }
 0x27d   : > { %2498 = vst.msk [vmem:[%s4945_s28 + $0x90] sm:$0xff] %vm1750_vm2, %v2763_v29  ;;  %v1509_v63 = vpop.permute.xlu0 %1508  ;;  %v1980_v18 = vsel %vm1948_vm8, %v1947_v42, %v1541_v55 }
 0x27e   : > { %v1964_v17 = vsel %vm1948_vm8, %v1931_v3, %v1509_v63 }
 0x280   : > { %v1715_v0 = vpop.permute.xlu1 %1714 }
 0x281   : > { %v2012_v9 = vsel %vm1981_vm9, %v1979_v11, %v1715_v0  ;;  %v1683_v53 = vpop.permute.xlu0 %1682 }
 0x282   : > { %v1996_v2 = vsel %vm1981_vm9, %v1963_v49, %v1683_v53  ;;  %2884 = vmatprep.mubr.msk.f32.mxu1 %vm2030_vm10, %v2012_v9 }
 0x283   : > { %2860 = vmatprep.mubr.msk.f32.mxu0 %vm2030_vm10, %v1996_v2 }
 0x284   : > { %v1717_v33 = vpop.permute.xlu1 %1716 }
 0x285   : > { %v2013_v13 = vsel %vm1981_vm9, %v1980_v18, %v1717_v33  ;;  %v1685_v61 = vpop.permute.xlu0 %1684 }
 0x286   : > { %v1997_v31 = vsel %vm1981_vm9, %v1964_v17, %v1685_v61  ;;  %2885 = vmatmul.mubr.msk.f32.gmra.mxu1 %vm2030_vm10, %v2013_v13 }
 0x287   : > { %2861 = vmatmul.mubr.msk.f32.gmra.mxu0 %vm2030_vm10, %v1997_v31 }
 0x292   : > { %v2847_v22 = vpop.f32.mrf.mxu0 }
 0x293   : > { %v2219_v16 = vadd.f32 %v2847_v22, %v4937_v14 }
 0x294   : > { %v2213_v52 = vpop.f32.mrf.mxu0 }
 0x295   : > { %vm2357_vm4 = vcmp.ge.f32.partialorder %v2219_v16, 0.0  ;;  %v2389_v43 = vmul.f32 0.1, %v2219_v16  ;;  %v2214_v34 = vadd.f32 %v4937_v14, %v2213_v52 }
 0x297   : > { %v2421_v62 = vsel %vm2357_vm4, %v2219_v16, %v2389_v43  ;;  %vm2356_vm5 = vcmp.ge.f32.partialorder %v2214_v34, 0.0  ;;  %v2388_v26 = vmul.f32 0.1, %v2214_v34  ;;  %v2871_v56 = vpop.f32.mrf.mxu1 }
 0x298   : > { %v2750_v60 = vadd.f32 -0.4, %v2421_v62  ;;  %v2299_v20 = vadd.f32 %v2871_v56, %v4937_v14 }
 0x299   : > { %v2420_v24 = vsel %vm2356_vm5, %v2214_v34, %v2388_v26  ;;  %v2293_v32 = vpop.f32.mrf.mxu1 }
 0x29a   : > { %2485 = vst.msk [vmem:[%s4945_s28 + $0x28] sm:$0xff] %vm1750_vm2, %v2750_v60  ;;  %v2749_v8 = vadd.f32 -0.4, %v2420_v24  ;;  %vm2373_vm6 = vcmp.ge.f32.partialorder %v2299_v20, 0.0  ;;  %v2405_v25 = vmul.f32 0.1, %v2299_v20  ;;  %v2294_v47 = vadd.f32 %v4937_v14, %v2293_v32 }
 0x29c   : > { %2484 = vst.msk [vmem:[%s4945_s28 + $0x20] sm:$0xff] %vm1750_vm2, %v2749_v8  ;;  %v2437_v57 = vsel %vm2373_vm6, %v2299_v20, %v2405_v25  ;;  %vm2372_vm7 = vcmp.ge.f32.partialorder %v2294_v47, 0.0  ;;  %v2404_v21 = vmul.f32 0.1, %v2294_v47 }
 0x29d   : > { %v2766_v36 = vadd.f32 -0.4, %v2437_v57 }
 0x29e   : > { %v2436_v39 = vsel %vm2372_vm7, %v2294_v47, %v2404_v21 }
 0x29f   : > { %2501 = vst.msk [vmem:[%s4945_s28 + $0xa8] sm:$0xff] %vm1750_vm2, %v2766_v36  ;;  %v2765_v5 = vadd.f32 -0.4, %v2436_v39 }
 0x2a1   : > { %2500 = vst.msk [vmem:[%s4945_s28 + $0xa0] sm:$0xff] %vm1750_vm2, %v2765_v5 }
 0x2b6   : > { %v2850_v19 = vpop.f32.mrf.mxu0 }
 0x2b7   : > { %v2229_v28 = vadd.f32 %v2850_v19, %v4937_v14 }
 0x2b8   : > { %v2223_v58 = vpop.f32.mrf.mxu0 }
 0x2b9   : > { %vm2359_vm8 = vcmp.ge.f32.partialorder %v2229_v28, 0.0  ;;  %v2391_v10 = vmul.f32 0.1, %v2229_v28  ;;  %v2224_v12 = vadd.f32 %v4937_v14, %v2223_v58 }
 0x2bb   : > { %v2423_v6 = vsel %vm2359_vm8, %v2229_v28, %v2391_v10  ;;  %vm2358_vm9 = vcmp.ge.f32.partialorder %v2224_v12, 0.0  ;;  %v2390_v51 = vmul.f32 0.1, %v2224_v12  ;;  %v2874_v38 = vpop.f32.mrf.mxu1 }
 0x2bc   : > { %v2752_v46 = vadd.f32 -0.4, %v2423_v6  ;;  %v2309_v15 = vadd.f32 %v2874_v38, %v4937_v14 }
 0x2bd   : > { %v2422_v37 = vsel %vm2358_vm9, %v2224_v12, %v2390_v51  ;;  %v2303_v30 = vpop.f32.mrf.mxu1 }
 0x2be   : > { %2487 = vst.msk [vmem:[%s4945_s28 + $0x38] sm:$0xff] %vm1750_vm2, %v2752_v46  ;;  %v2751_v29 = vadd.f32 -0.4, %v2422_v37  ;;  %vm2375_vm10 = vcmp.ge.f32.partialorder %v2309_v15, 0.0  ;;  %v2407_v55 = vmul.f32 0.1, %v2309_v15  ;;  %v2304_v48 = vadd.f32 %v4937_v14, %v2303_v30 }
 0x2c0   : > { %2486 = vst.msk [vmem:[%s4945_s28 + $0x30] sm:$0xff] %vm1750_vm2, %v2751_v29  ;;  %v2439_v35 = vsel %vm2375_vm10, %v2309_v15, %v2407_v55  ;;  %vm2374_vm11 = vcmp.ge.f32.partialorder %v2304_v48, 0.0  ;;  %v2406_v63 = vmul.f32 0.1, %v2304_v48 }
 0x2c1   : > { %v2768_v7 = vadd.f32 -0.4, %v2439_v35 }
 0x2c2   : > { %v2438_v4 = vsel %vm2374_vm11, %v2304_v48, %v2406_v63 }
 0x2c3   : > { %2503 = vst.msk [vmem:[%s4945_s28 + $0xb8] sm:$0xff] %vm1750_vm2, %v2768_v7  ;;  %v2767_v23 = vadd.f32 -0.4, %v2438_v4 }
 0x2c5   : > { %2502 = vst.msk [vmem:[%s4945_s28 + $0xb0] sm:$0xff] %vm1750_vm2, %v2767_v23 }
 0x2da   : > { %v2853_v41 = vpop.f32.mrf.mxu0 }
 0x2db   : > { %v2239_v54 = vadd.f32 %v2853_v41, %v4937_v14 }
 0x2dc   : > { %v2233_v44 = vpop.f32.mrf.mxu0 }
 0x2dd   : > { %vm2361_vm12 = vcmp.ge.f32.partialorder %v2239_v54, 0.0  ;;  %v2393_v11 = vmul.f32 0.1, %v2239_v54  ;;  %v2234_v0 = vadd.f32 %v4937_v14, %v2233_v44 }
 0x2df   : > { %v2425_v40 = vsel %vm2361_vm12, %v2239_v54, %v2393_v11  ;;  %vm2360_vm13 = vcmp.ge.f32.partialorder %v2234_v0, 0.0  ;;  %v2392_v45 = vmul.f32 0.1, %v2234_v0  ;;  %v2877_v49 = vpop.f32.mrf.mxu1 }
 0x2e0   : > { %v2754_v9 = vadd.f32 -0.4, %v2425_v40  ;;  %v2319_v53 = vadd.f32 %v2877_v49, %v4937_v14 }
 0x2e1   : > { %v2424_v50 = vsel %vm2360_vm13, %v2234_v0, %v2392_v45  ;;  %v2313_v27 = vpop.f32.mrf.mxu1 }
 0x2e2   : > { %2489 = vst.msk [vmem:[%s4945_s28 + $0x48] sm:$0xff] %vm1750_vm2, %v2754_v9  ;;  %v2753_v1 = vadd.f32 -0.4, %v2424_v50  ;;  %vm2377_vm14 = vcmp.ge.f32.partialorder %v2319_v53, 0.0  ;;  %v2409_v2 = vmul.f32 0.1, %v2319_v53  ;;  %v2314_v59 = vadd.f32 %v4937_v14, %v2313_v27 }
 0x2e4   : > { %2488 = vst.msk [vmem:[%s4945_s28 + $0x40] sm:$0xff] %vm1750_vm2, %v2753_v1  ;;  %v2441_v42 = vsel %vm2377_vm14, %v2319_v53, %v2409_v2  ;;  %vm2376_vm15 = vcmp.ge.f32.partialorder %v2314_v59, 0.0  ;;  %v2408_v3 = vmul.f32 0.1, %v2314_v59 }
 0x2e5   : > { %v2770_v18 = vadd.f32 -0.4, %v2441_v42 }
 0x2e6   : > { %v2440_v33 = vsel %vm2376_vm15, %v2314_v59, %v2408_v3 }
 0x2e7   : > { %2505 = vst.msk [vmem:[%s4945_s28 + $0xc8] sm:$0xff] %vm1750_vm2, %v2770_v18  ;;  %v2769_v17 = vadd.f32 -0.4, %v2440_v33 }
 0x2e9   : > { %2504 = vst.msk [vmem:[%s4945_s28 + $0xc0] sm:$0xff] %vm1750_vm2, %v2769_v17 }
 0x302   : > { %v2880_v13 = vpop.f32.mrf.mxu1 }
 0x303   : > { %v2856_v61 = vpop.f32.mrf.mxu0  ;;  %v2329_v31 = vadd.f32 %v2880_v13, %v4937_v14 }
 0x304   : > { %v2249_v22 = vadd.f32 %v2856_v61, %v4937_v14  ;;  %v2323_v16 = vpop.f32.mrf.mxu1 }
 0x305   : > { %vm2379_vm0 = vcmp.ge.f32.partialorder %v2329_v31, 0.0  ;;  %v2411_v52 = vmul.f32 0.1, %v2329_v31  ;;  %v2243_v43 = vpop.f32.mrf.mxu0  ;;  %v2324_v34 = vadd.f32 %v4937_v14, %v2323_v16 }
 0x306   : > { %vm2363_vm1 = vcmp.ge.f32.partialorder %v2249_v22, 0.0  ;;  %v2395_v62 = vmul.f32 0.1, %v2249_v22  ;;  %v2244_v26 = vadd.f32 %v4937_v14, %v2243_v43 }
 0x307   : > { %v2443_v56 = vsel %vm2379_vm0, %v2329_v31, %v2411_v52  ;;  %vm2378_vm3 = vcmp.ge.f32.partialorder %v2324_v34, 0.0  ;;  %v2410_v60 = vmul.f32 0.1, %v2324_v34 }
 0x308   : > { %v2427_v20 = vsel %vm2363_vm1, %v2249_v22, %v2395_v62  ;;  %v2772_v24 = vadd.f32 -0.4, %v2443_v56  ;;  %vm2362_vm4 = vcmp.ge.f32.partialorder %v2244_v26, 0.0  ;;  %v2394_v32 = vmul.f32 0.1, %v2244_v26 }
 0x309   : > { %v2756_v8 = vadd.f32 -0.4, %v2427_v20  ;;  %v2442_v25 = vsel %vm2378_vm3, %v2324_v34, %v2410_v60 }
 0x30a   : > { %2507 = vst.msk [vmem:[%s4945_s28 + $0xd8] sm:$0xff] %vm1750_vm2, %v2772_v24  ;;  %v2426_v47 = vsel %vm2362_vm4, %v2244_v26, %v2394_v32  ;;  %v2771_v57 = vadd.f32 -0.4, %v2442_v25 }
 0x30b   : > { %2491 = vst.msk [vmem:[%s4945_s28 + $0x58] sm:$0xff] %vm1750_vm2, %v2756_v8  ;;  %v2755_v21 = vadd.f32 -0.4, %v2426_v47 }
 0x30c   : > { %2506 = vst.msk [vmem:[%s4945_s28 + $0xd0] sm:$0xff] %vm1750_vm2, %v2771_v57 }
 0x30d   : > { %2490 = vst.msk [vmem:[%s4945_s28 + $0x50] sm:$0xff] %vm1750_vm2, %v2755_v21 }
 0x32a   : > { %v2883_v36 = vpop.f32.mrf.mxu1 }
 0x32b   : > { %v2859_v39 = vpop.f32.mrf.mxu0  ;;  %v2339_v5 = vadd.f32 %v2883_v36, %v4937_v14 }
 0x32c   : > { %v2259_v19 = vadd.f32 %v2859_v39, %v4937_v14  ;;  %v2333_v28 = vpop.f32.mrf.mxu1 }
 0x32d   : > { %vm2381_vm5 = vcmp.ge.f32.partialorder %v2339_v5, 0.0  ;;  %v2413_v58 = vmul.f32 0.1, %v2339_v5  ;;  %v2253_v10 = vpop.f32.mrf.mxu0  ;;  %v2334_v12 = vadd.f32 %v4937_v14, %v2333_v28 }
 0x32e   : > { %vm2365_vm6 = vcmp.ge.f32.partialorder %v2259_v19, 0.0  ;;  %v2397_v6 = vmul.f32 0.1, %v2259_v19  ;;  %v2254_v51 = vadd.f32 %v4937_v14, %v2253_v10 }
 0x32f   : > { %v2445_v38 = vsel %vm2381_vm5, %v2339_v5, %v2413_v58  ;;  %vm2380_vm7 = vcmp.ge.f32.partialorder %v2334_v12, 0.0  ;;  %v2412_v46 = vmul.f32 0.1, %v2334_v12 }
 0x330   : > { %v2429_v15 = vsel %vm2365_vm6, %v2259_v19, %v2397_v6  ;;  %v2774_v37 = vadd.f32 -0.4, %v2445_v38  ;;  %vm2364_vm8 = vcmp.ge.f32.partialorder %v2254_v51, 0.0  ;;  %v2396_v30 = vmul.f32 0.1, %v2254_v51 }
 0x331   : > { %v2758_v29 = vadd.f32 -0.4, %v2429_v15  ;;  %v2444_v55 = vsel %vm2380_vm7, %v2334_v12, %v2412_v46 }
 0x332   : > { %2509 = vst.msk [vmem:[%s4945_s28 + $0xe8] sm:$0xff] %vm1750_vm2, %v2774_v37  ;;  %v2428_v48 = vsel %vm2364_vm8, %v2254_v51, %v2396_v30  ;;  %v2773_v35 = vadd.f32 -0.4, %v2444_v55 }
 0x333   : > { %2493 = vst.msk [vmem:[%s4945_s28 + $0x68] sm:$0xff] %vm1750_vm2, %v2758_v29  ;;  %v2757_v63 = vadd.f32 -0.4, %v2428_v48 }
 0x334   : > { %2508 = vst.msk [vmem:[%s4945_s28 + $0xe0] sm:$0xff] %vm1750_vm2, %v2773_v35 }
 0x335   : > { %2492 = vst.msk [vmem:[%s4945_s28 + $0x60] sm:$0xff] %vm1750_vm2, %v2757_v63 }
 0x346   : > { %v2886_v7 = vpop.f32.mrf.mxu1 }
 0x347   : > { %v2862_v4 = vpop.f32.mrf.mxu0  ;;  %v2349_v23 = vadd.f32 %v2886_v7, %v4937_v14 }
 0x348   : > { %v2269_v41 = vadd.f32 %v2862_v4, %v4937_v14  ;;  %v2343_v54 = vpop.f32.mrf.mxu1 }
 0x349   : > { %vm2383_vm9 = vcmp.ge.f32.partialorder %v2349_v23, 0.0  ;;  %v2415_v44 = vmul.f32 0.1, %v2349_v23  ;;  %v2263_v11 = vpop.f32.mrf.mxu0  ;;  %v2344_v0 = vadd.f32 %v4937_v14, %v2343_v54 }
 0x34a   : > { %vm2367_vm10 = vcmp.ge.f32.partialorder %v2269_v41, 0.0  ;;  %v2399_v40 = vmul.f32 0.1, %v2269_v41  ;;  %v2264_v45 = vadd.f32 %v4937_v14, %v2263_v11 }
 0x34b   : > { %v2447_v49 = vsel %vm2383_vm9, %v2349_v23, %v2415_v44  ;;  %vm2382_vm11 = vcmp.ge.f32.partialorder %v2344_v0, 0.0  ;;  %v2414_v9 = vmul.f32 0.1, %v2344_v0 }
 0x34c   : > { %v2431_v53 = vsel %vm2367_vm10, %v2269_v41, %v2399_v40  ;;  %v2776_v50 = vadd.f32 -0.4, %v2447_v49  ;;  %vm2366_vm12 = vcmp.ge.f32.partialorder %v2264_v45, 0.0  ;;  %v2398_v27 = vmul.f32 0.1, %v2264_v45 }
 0x34d   : > { %v2760_v1 = vadd.f32 -0.4, %v2431_v53  ;;  %v2446_v2 = vsel %vm2382_vm11, %v2344_v0, %v2414_v9 }
 0x34e   : > { %2511 = vst.msk [vmem:[%s4945_s28 + $0xf8] sm:$0xff] %vm1750_vm2, %v2776_v50  ;;  %v2430_v59 = vsel %vm2366_vm12, %v2264_v45, %v2398_v27  ;;  %v2775_v42 = vadd.f32 -0.4, %v2446_v2 }
 0x34f   : > { %2495 = vst.msk [vmem:[%s4945_s28 + $0x78] sm:$0xff] %vm1750_vm2, %v2760_v1  ;;  %v2759_v3 = vadd.f32 -0.4, %v2430_v59 }
 0x350   : > { %2510 = vst.msk [vmem:[%s4945_s28 + $0xf0] sm:$0xff] %vm1750_vm2, %v2775_v42 }
 0x351   : > { %2494 = vst.msk [vmem:[%s4945_s28 + $0x70] sm:$0xff] %vm1750_vm2, %v2759_v3 }
 0x352 PF: > { %s13_s14 = sadd.s32 1, %s2978_s14   ;;  %s5398_s12 = smov %s2974_s13 }
 0x353   : > { %p10_p5 = scmp.ge.s32.totalorder %s13_s14, 4   ;;  %s5399_s13 = smov %s5401_s15 }
 0x355   :  { %12 = sbr.rel (!%p10_p5) target bundleno = 2 (0x2), region = 64 }

</bundles_post_ra>
